<compile_context>
chip_gen: v7x
topology: tpu7x:2x2x1
jax: 0.10.0
libtpu: 0.0.40
codegen_flags: <defaults>
</compile_context>

<pallas_src>
import jax
import jax.numpy as jnp
from jax import lax
from jax.experimental import pallas as pl
from jax.experimental.pallas import tpu as pltpu


# ----------------------------------------------------------------------------
# Fused kernel: two (conv3x3 + folded BN + ReLU) stages, one batch element.
# ----------------------------------------------------------------------------
def _im2col_3x3(xpad, h, w, c):
    """(h+2, w+2, c) padded NHWC tile -> (h*w, 9*c) tap-major im2col slab."""
    taps = [xpad[ky:ky + h, kx:kx + w, :].reshape(h * w, c)
            for ky in range(3) for kx in range(3)]
    return jnp.concatenate(taps, axis=-1)


def _stageblock_kernel(x_ref, w1_ref, s1_ref, w2_ref, s2_ref, o_ref,
                       xpad_ref, mid_ref):
    """y = relu(bn2(conv2(relu(bn1(conv1(x)))))) for one batch element.

    x_ref  : (1, H, W, Cin)        NHWC input tile (f32)
    w1_ref : (9*Cin,  Cmid) bf16   tap-major folded (conv1 * bn1-scale)
    s1_ref : (1, Cmid)      f32    (b1 - mean1) * scale1 + beta1
    w2_ref : (9*Cmid, Cout) bf16   tap-major folded (conv2 * bn2-scale)
    s2_ref : (1, Cout)      f32
    o_ref  : (1, H*W, Cout)        output tile (row-major == NHWC)
    xpad_ref / mid_ref : VMEM scratch, zero-padded (H+2, W+2, C) tiles (bf16)
    """
    h, w, cin = x_ref.shape[1], x_ref.shape[2], x_ref.shape[3]
    cmid = s1_ref.shape[1]
    cout = s2_ref.shape[1]

    # Zero the padded scratch every step (cheap: ~23 KiB of vector stores).
    # The interior is fully overwritten below; the 1-pixel halo ring stays 0,
    # which implements conv padding=1.  Unconditional (not pl.when(pid==0))
    # so it is also correct when the "parallel" batch axis is split across
    # TensorCores and a given core never sees program_id == 0.
    xpad_ref[...] = jnp.zeros_like(xpad_ref)
    mid_ref[...] = jnp.zeros_like(mid_ref)

    # ---- stage 1: conv3x3(pad=1) + folded BN + ReLU -------------------------
    xpad_ref[pl.ds(1, h), pl.ds(1, w), :] = x_ref[0].astype(xpad_ref.dtype)
    col1 = _im2col_3x3(xpad_ref[...], h, w, cin)          # (H*W, 9*Cin) bf16
    acc1 = jnp.dot(col1, w1_ref[...],
                   preferred_element_type=jnp.float32)     # MXU, f32 accum
    y1 = jnp.maximum(acc1 + s1_ref[...], 0.0)              # f32 epilogue

    # ---- stage 2: conv3x3(pad=1) + folded BN + ReLU -------------------------
    # Intermediate stays resident in VMEM scratch (no HBM round trip).
    mid_ref[pl.ds(1, h), pl.ds(1, w), :] = (
        y1.reshape(h, w, cmid).astype(mid_ref.dtype))
    col2 = _im2col_3x3(mid_ref[...], h, w, cmid)           # (H*W, 9*Cmid) bf16
    acc2 = jnp.dot(col2, w2_ref[...],
                   preferred_element_type=jnp.float32)
    y2 = jnp.maximum(acc2 + s2_ref[...], 0.0)

    o_ref[...] = y2[None].astype(o_ref.dtype)              # (1, H*W, Cout)


def _stageblock_pallas(x_nhwc, w1, s1, w2, s2):
    b, h, w, cin = x_nhwc.shape
    cmid = w1.shape[1]
    cout = w2.shape[1]
    return pl.pallas_call(
        _stageblock_kernel,
        out_shape=jax.ShapeDtypeStruct((b, h * w, cout), x_nhwc.dtype),
        grid=(b,),
        in_specs=[
            pl.BlockSpec((1, h, w, cin), lambda i: (i, 0, 0, 0)),
            pl.BlockSpec((9 * cin, cmid), lambda i: (0, 0)),
            pl.BlockSpec((1, cmid), lambda i: (0, 0)),
            pl.BlockSpec((9 * cmid, cout), lambda i: (0, 0)),
            pl.BlockSpec((1, cout), lambda i: (0, 0)),
        ],
        out_specs=pl.BlockSpec((1, h * w, cout), lambda i: (i, 0, 0)),
        scratch_shapes=[
            pltpu.VMEM((h + 2, w + 2, cin), jnp.bfloat16),   # padded input
            pltpu.VMEM((h + 2, w + 2, cmid), jnp.bfloat16),  # padded stage-1 out
        ],
        compiler_params=pltpu.CompilerParams(
            dimension_semantics=("parallel",),               # batch over cores
            vmem_limit_bytes=32 * 1024 * 1024,
        ),
    )(x_nhwc, w1, s1, w2, s2)


# ----------------------------------------------------------------------------
# Wrapper: fold inference BatchNorm (+ conv bias) into weights/shift and run.
# ----------------------------------------------------------------------------
def _fold_conv_bn(conv_w, conv_b, gamma, beta, mean, var, eps=1e-5):
    """PyTorch (Cout,Cin,3,3) conv + eval-mode BN -> (tap-major bf16 W, f32 shift)."""
    s = gamma / jnp.sqrt(var + eps)                   # (Cout,)  -- fold in f32
    w = jnp.transpose(conv_w, (2, 3, 1, 0))           # (3, 3, Cin, Cout)
    cin, cout = w.shape[2], w.shape[3]
    w9 = (w * s).reshape(9 * cin, cout)               # scale folded into weights
    shift = (conv_b - mean) * s + beta                # bias + BN folded into shift
    return w9.astype(jnp.bfloat16), shift.astype(jnp.float32).reshape(1, cout)


def stageblock_forward(x_nchw, p):
    x = jnp.transpose(x_nchw, (0, 2, 3, 1))           # NCHW -> NHWC (C on lanes)
    w1, s1 = _fold_conv_bn(p["w1"], p["b1"], p["g1"], p["be1"], p["m1"], p["v1"])
    w2, s2 = _fold_conv_bn(p["w2"], p["b2"], p["g2"], p["be2"], p["m2"], p["v2"])
    b, h, w, _ = x.shape
    cout = s2.shape[1]
    y = _stageblock_pallas(x, w1, s1, w2, s2)         # (B, H*W, Cout)
    y = y.reshape(b, h, w, cout)                      # free (same row-major layout)
    return jnp.transpose(y, (0, 3, 1, 2))             # NHWC -> NCHW


# ----------------------------------------------------------------------------
# Pure-JAX reference (XLA conv) for correctness checking.
# ----------------------------------------------------------------------------
def _reference(x_nchw, p):
    def stage(x, w, b, g, be, m, v):
        y = lax.conv_general_dilated(
            x, w, window_strides=(1, 1), padding=((1, 1), (1, 1)),
            dimension_numbers=("NCHW", "OIHW", "NCHW"))
        y = y + b[None, :, None, None]
        s = g / jnp.sqrt(v + 1e-5)
        y = (y - m[None, :, None, None]) * s[None, :, None, None] + be[None, :, None, None]
        return jnp.maximum(y, 0.0)

    y = stage(x_nchw, p["w1"], p["b1"], p["g1"], p["be1"], p["m1"], p["v1"])
    y = stage(y, p["w2"], p["b2"], p["g2"], p["be2"], p["m2"], p["v2"])
    return y


# ----------------------------------------------------------------------------
# Deterministic example
# ----------------------------------------------------------------------------
if __name__ == "__main__":
    B, CIN, COUT, H, W = 2, 4, 32, 16, 16

    ks = jax.random.split(jax.random.PRNGKey(0), 16)

    def nrm(k, shape, s=0.1):
        return (s * jax.random.normal(k, shape)).astype(jnp.float32)

    params = dict(
        w1=nrm(ks[1], (COUT, CIN, 3, 3)),  b1=nrm(ks[2], (COUT,)),
        g1=1.0 + nrm(ks[3], (COUT,)),      be1=nrm(ks[4], (COUT,)),
        m1=nrm(ks[5], (COUT,)),
        v1=jax.random.uniform(ks[6], (COUT,), minval=0.5, maxval=1.5).astype(jnp.float32),
        w2=nrm(ks[7], (COUT, COUT, 3, 3)), b2=nrm(ks[8], (COUT,)),
        g2=1.0 + nrm(ks[9], (COUT,)),      be2=nrm(ks[10], (COUT,)),
        m2=nrm(ks[11], (COUT,)),
        v2=jax.random.uniform(ks[12], (COUT,), minval=0.5, maxval=1.5).astype(jnp.float32),
    )
    x = jax.random.normal(ks[0], (B, CIN, H, W), jnp.float32)

    out = jax.block_until_ready(jax.jit(stageblock_forward)(x, params))
    ref = jax.block_until_ready(jax.jit(_reference)(x, params))

    assert out.shape == (B, COUT, H, W)
    assert bool(jnp.all(jnp.isfinite(out)))
    assert bool(jnp.all(out >= 0.0))                      # ReLU output
    # MXU operands are bf16 (f32 accumulation), reference is all-f32, so the
    # tolerance reflects bf16 operand rounding through two conv stages.
    max_err = float(jnp.max(jnp.abs(out - ref)))
    mean_err = float(jnp.mean(jnp.abs(out - ref)))
    assert max_err < 6e-2, f"mismatch vs reference: max abs err = {max_err}"
    assert mean_err < 1e-2, f"mismatch vs reference: mean abs err = {mean_err}"
    print("KERNEL_OK")
</pallas_src>

<mosaic_0001>
module attributes {stable_mosaic.version = 11 : i64} {
  func.func @_stageblock_kernel(%arg0: i32, %arg1: memref<1x16x16x4xf32, #tpu.memory_space<vmem>>, %arg2: memref<36x32xbf16, #tpu.memory_space<vmem>>, %arg3: memref<1x32xf32, #tpu.memory_space<vmem>>, %arg4: memref<288x32xbf16, #tpu.memory_space<vmem>>, %arg5: memref<1x32xf32, #tpu.memory_space<vmem>>, %arg6: memref<1x256x32xf32, #tpu.memory_space<vmem>>, %arg7: memref<18x18x4xbf16, #tpu.memory_space<vmem>>, %arg8: memref<18x18x32xbf16, #tpu.memory_space<vmem>>) attributes {dimension_semantics = [#tpu.dimension_semantics<parallel>], iteration_bounds = array<i64: 2>, scalar_prefetch = 0 : i64, scratch_operands = 2 : i64, tpu.core_type = #tpu.core_type<tc>, window_params = [{transform_indices = @transform_0, window_bounds = array<i64: 1, 16, 16, 4>}, {pipeline_mode = #tpu.pipeline_mode<synchronous>, transform_indices = @transform_1, window_bounds = array<i64: 36, 32>}, {pipeline_mode = #tpu.pipeline_mode<synchronous>, transform_indices = @transform_2, window_bounds = array<i64: 1, 32>}, {pipeline_mode = #tpu.pipeline_mode<synchronous>, transform_indices = @transform_3, window_bounds = array<i64: 288, 32>}, {pipeline_mode = #tpu.pipeline_mode<synchronous>, transform_indices = @transform_4, window_bounds = array<i64: 1, 32>}, {transform_indices = @transform_5, window_bounds = array<i64: 1, 256, 32>}]} {
    %cst = arith.constant 0.000000e+00 : bf16
    %0 = vector.broadcast %cst : bf16 to vector<18x18x4xbf16>
    %c0 = arith.constant 0 : index
    %c0_0 = arith.constant 0 : index
    %c0_1 = arith.constant 0 : index
    %1 = vector.load %arg7[%c0, %c0_0, %c0_1] : memref<18x18x4xbf16, #tpu.memory_space<vmem>>, vector<18x18x4xbf16>
    tpu.vector_store %arg7[%c0, %c0_0, %c0_1], %0 {strides = array<i32>} : memref<18x18x4xbf16, #tpu.memory_space<vmem>>, vector<18x18x4xbf16>,
    %cst_2 = arith.constant 0.000000e+00 : bf16
    %2 = vector.broadcast %cst_2 : bf16 to vector<18x18x32xbf16>
    %c0_3 = arith.constant 0 : index
    %c0_4 = arith.constant 0 : index
    %c0_5 = arith.constant 0 : index
    %3 = vector.load %arg8[%c0_3, %c0_4, %c0_5] : memref<18x18x32xbf16, #tpu.memory_space<vmem>>, vector<18x18x32xbf16>
    tpu.vector_store %arg8[%c0_3, %c0_4, %c0_5], %2 {strides = array<i32>} : memref<18x18x32xbf16, #tpu.memory_space<vmem>>, vector<18x18x32xbf16>,
    %c0_6 = arith.constant 0 : index
    %c0_7 = arith.constant 0 : index
    %c0_8 = arith.constant 0 : index
    %c0_9 = arith.constant 0 : index
    %4 = vector.load %arg1[%c0_6, %c0_7, %c0_8, %c0_9] : memref<1x16x16x4xf32, #tpu.memory_space<vmem>>, vector<1x16x16x4xf32>
    %5 = vector.shape_cast %4 : vector<1x16x16x4xf32> to vector<16x16x4xf32>
    %6 = arith.truncf %5 : vector<16x16x4xf32> to vector<16x16x4xbf16>
    %c1 = arith.constant 1 : index
    %c1_10 = arith.constant 1 : index
    %c0_11 = arith.constant 0 : index
    %7 = vector.load %arg7[%c1, %c1_10, %c0_11] : memref<18x18x4xbf16, #tpu.memory_space<vmem>>, vector<16x16x4xbf16>
    tpu.vector_store %arg7[%c1, %c1_10, %c0_11], %6 {strides = array<i32>} : memref<18x18x4xbf16, #tpu.memory_space<vmem>>, vector<16x16x4xbf16>,
    %c0_12 = arith.constant 0 : index
    %c0_13 = arith.constant 0 : index
    %c0_14 = arith.constant 0 : index
    %8 = vector.load %arg7[%c0_12, %c0_13, %c0_14] : memref<18x18x4xbf16, #tpu.memory_space<vmem>>, vector<18x18x4xbf16>
    %9 = vector.extract_strided_slice %8 {offsets = [0, 0, 0], sizes = [16, 16, 4], strides = [1, 1, 1]} : vector<18x18x4xbf16> to vector<16x16x4xbf16>
    %10 = vector.shape_cast %9 : vector<16x16x4xbf16> to vector<256x4xbf16>
    %11 = vector.extract_strided_slice %8 {offsets = [0, 1, 0], sizes = [16, 16, 4], strides = [1, 1, 1]} : vector<18x18x4xbf16> to vector<16x16x4xbf16>
    %12 = vector.shape_cast %11 : vector<16x16x4xbf16> to vector<256x4xbf16>
    %13 = vector.extract_strided_slice %8 {offsets = [0, 2, 0], sizes = [16, 16, 4], strides = [1, 1, 1]} : vector<18x18x4xbf16> to vector<16x16x4xbf16>
    %14 = vector.shape_cast %13 : vector<16x16x4xbf16> to vector<256x4xbf16>
    %15 = vector.extract_strided_slice %8 {offsets = [1, 0, 0], sizes = [16, 16, 4], strides = [1, 1, 1]} : vector<18x18x4xbf16> to vector<16x16x4xbf16>
    %16 = vector.shape_cast %15 : vector<16x16x4xbf16> to vector<256x4xbf16>
    %17 = vector.extract_strided_slice %8 {offsets = [1, 1, 0], sizes = [16, 16, 4], strides = [1, 1, 1]} : vector<18x18x4xbf16> to vector<16x16x4xbf16>
    %18 = vector.shape_cast %17 : vector<16x16x4xbf16> to vector<256x4xbf16>
    %19 = vector.extract_strided_slice %8 {offsets = [1, 2, 0], sizes = [16, 16, 4], strides = [1, 1, 1]} : vector<18x18x4xbf16> to vector<16x16x4xbf16>
    %20 = vector.shape_cast %19 : vector<16x16x4xbf16> to vector<256x4xbf16>
    %21 = vector.extract_strided_slice %8 {offsets = [2, 0, 0], sizes = [16, 16, 4], strides = [1, 1, 1]} : vector<18x18x4xbf16> to vector<16x16x4xbf16>
    %22 = vector.shape_cast %21 : vector<16x16x4xbf16> to vector<256x4xbf16>
    %23 = vector.extract_strided_slice %8 {offsets = [2, 1, 0], sizes = [16, 16, 4], strides = [1, 1, 1]} : vector<18x18x4xbf16> to vector<16x16x4xbf16>
    %24 = vector.shape_cast %23 : vector<16x16x4xbf16> to vector<256x4xbf16>
    %25 = vector.extract_strided_slice %8 {offsets = [2, 2, 0], sizes = [16, 16, 4], strides = [1, 1, 1]} : vector<18x18x4xbf16> to vector<16x16x4xbf16>
    %26 = vector.shape_cast %25 : vector<16x16x4xbf16> to vector<256x4xbf16>
    %27 = tpu.concatenate %10, %12, %14, %16, %18, %20, %22, %24, %26 in 1 : vector<256x4xbf16>, vector<256x4xbf16>, vector<256x4xbf16>, vector<256x4xbf16>, vector<256x4xbf16>, vector<256x4xbf16>, vector<256x4xbf16>, vector<256x4xbf16>, vector<256x4xbf16> -> vector<256x36xbf16>
    %c0_15 = arith.constant 0 : index
    %c0_16 = arith.constant 0 : index
    %28 = vector.load %arg2[%c0_15, %c0_16] : memref<36x32xbf16, #tpu.memory_space<vmem>>, vector<36x32xbf16>
    %cst_17 = arith.constant dense<0.000000e+00> : vector<256x32xf32>
    %29 = tpu.matmul %27, %28, %cst_17 {dimension_numbers = #tpu.dot_dimension_numbers<[1], [0], [0], [1], [0, 0, 1, 1], [], []>} : vector<256x36xbf16>, vector<36x32xbf16>, vector<256x32xf32> -> vector<256x32xf32>
    %c0_18 = arith.constant 0 : index
    %c0_19 = arith.constant 0 : index
    %30 = vector.load %arg3[%c0_18, %c0_19] : memref<1x32xf32, #tpu.memory_space<vmem>>, vector<1x32xf32>
    %31 = vector.broadcast %30 : vector<1x32xf32> to vector<256x32xf32>
    %32 = arith.addf %29, %31 : vector<256x32xf32>
    %cst_20 = arith.constant 0.000000e+00 : f32
    %33 = vector.broadcast %cst_20 : f32 to vector<256x32xf32>
    %34 = arith.maximumf %32, %33 : vector<256x32xf32>
    %35 = vector.shape_cast %34 : vector<256x32xf32> to vector<16x16x32xf32>
    %36 = arith.truncf %35 : vector<16x16x32xf32> to vector<16x16x32xbf16>
    %c1_21 = arith.constant 1 : index
    %c1_22 = arith.constant 1 : index
    %c0_23 = arith.constant 0 : index
    %37 = vector.load %arg8[%c1_21, %c1_22, %c0_23] : memref<18x18x32xbf16, #tpu.memory_space<vmem>>, vector<16x16x32xbf16>
    tpu.vector_store %arg8[%c1_21, %c1_22, %c0_23], %36 {strides = array<i32>} : memref<18x18x32xbf16, #tpu.memory_space<vmem>>, vector<16x16x32xbf16>,
    %c0_24 = arith.constant 0 : index
    %c0_25 = arith.constant 0 : index
    %c0_26 = arith.constant 0 : index
    %38 = vector.load %arg8[%c0_24, %c0_25, %c0_26] : memref<18x18x32xbf16, #tpu.memory_space<vmem>>, vector<18x18x32xbf16>
    %39 = vector.extract_strided_slice %38 {offsets = [0, 0, 0], sizes = [16, 16, 32], strides = [1, 1, 1]} : vector<18x18x32xbf16> to vector<16x16x32xbf16>
    %40 = vector.shape_cast %39 : vector<16x16x32xbf16> to vector<256x32xbf16>
    %41 = vector.extract_strided_slice %38 {offsets = [0, 1, 0], sizes = [16, 16, 32], strides = [1, 1, 1]} : vector<18x18x32xbf16> to vector<16x16x32xbf16>
    %42 = vector.shape_cast %41 : vector<16x16x32xbf16> to vector<256x32xbf16>
    %43 = vector.extract_strided_slice %38 {offsets = [0, 2, 0], sizes = [16, 16, 32], strides = [1, 1, 1]} : vector<18x18x32xbf16> to vector<16x16x32xbf16>
    %44 = vector.shape_cast %43 : vector<16x16x32xbf16> to vector<256x32xbf16>
    %45 = vector.extract_strided_slice %38 {offsets = [1, 0, 0], sizes = [16, 16, 32], strides = [1, 1, 1]} : vector<18x18x32xbf16> to vector<16x16x32xbf16>
    %46 = vector.shape_cast %45 : vector<16x16x32xbf16> to vector<256x32xbf16>
    %47 = vector.extract_strided_slice %38 {offsets = [1, 1, 0], sizes = [16, 16, 32], strides = [1, 1, 1]} : vector<18x18x32xbf16> to vector<16x16x32xbf16>
    %48 = vector.shape_cast %47 : vector<16x16x32xbf16> to vector<256x32xbf16>
    %49 = vector.extract_strided_slice %38 {offsets = [1, 2, 0], sizes = [16, 16, 32], strides = [1, 1, 1]} : vector<18x18x32xbf16> to vector<16x16x32xbf16>
    %50 = vector.shape_cast %49 : vector<16x16x32xbf16> to vector<256x32xbf16>
    %51 = vector.extract_strided_slice %38 {offsets = [2, 0, 0], sizes = [16, 16, 32], strides = [1, 1, 1]} : vector<18x18x32xbf16> to vector<16x16x32xbf16>
    %52 = vector.shape_cast %51 : vector<16x16x32xbf16> to vector<256x32xbf16>
    %53 = vector.extract_strided_slice %38 {offsets = [2, 1, 0], sizes = [16, 16, 32], strides = [1, 1, 1]} : vector<18x18x32xbf16> to vector<16x16x32xbf16>
    %54 = vector.shape_cast %53 : vector<16x16x32xbf16> to vector<256x32xbf16>
    %55 = vector.extract_strided_slice %38 {offsets = [2, 2, 0], sizes = [16, 16, 32], strides = [1, 1, 1]} : vector<18x18x32xbf16> to vector<16x16x32xbf16>
    %56 = vector.shape_cast %55 : vector<16x16x32xbf16> to vector<256x32xbf16>
    %57 = tpu.concatenate %40, %42, %44, %46, %48, %50, %52, %54, %56 in 1 : vector<256x32xbf16>, vector<256x32xbf16>, vector<256x32xbf16>, vector<256x32xbf16>, vector<256x32xbf16>, vector<256x32xbf16>, vector<256x32xbf16>, vector<256x32xbf16>, vector<256x32xbf16> -> vector<256x288xbf16>
    %c0_27 = arith.constant 0 : index
    %c0_28 = arith.constant 0 : index
    %58 = vector.load %arg4[%c0_27, %c0_28] : memref<288x32xbf16, #tpu.memory_space<vmem>>, vector<288x32xbf16>
    %cst_29 = arith.constant dense<0.000000e+00> : vector<256x32xf32>
    %59 = tpu.matmul %57, %58, %cst_29 {dimension_numbers = #tpu.dot_dimension_numbers<[1], [0], [0], [1], [0, 0, 1, 1], [], []>} : vector<256x288xbf16>, vector<288x32xbf16>, vector<256x32xf32> -> vector<256x32xf32>
    %c0_30 = arith.constant 0 : index
    %c0_31 = arith.constant 0 : index
    %60 = vector.load %arg5[%c0_30, %c0_31] : memref<1x32xf32, #tpu.memory_space<vmem>>, vector<1x32xf32>
    %61 = vector.broadcast %60 : vector<1x32xf32> to vector<256x32xf32>
    %62 = arith.addf %59, %61 : vector<256x32xf32>
    %cst_32 = arith.constant 0.000000e+00 : f32
    %63 = vector.broadcast %cst_32 : f32 to vector<256x32xf32>
    %64 = arith.maximumf %62, %63 : vector<256x32xf32>
    %65 = vector.shape_cast %64 : vector<256x32xf32> to vector<1x256x32xf32>
    %c0_33 = arith.constant 0 : index
    %c0_34 = arith.constant 0 : index
    %c0_35 = arith.constant 0 : index
    %66 = vector.load %arg6[%c0_33, %c0_34, %c0_35] : memref<1x256x32xf32, #tpu.memory_space<vmem>>, vector<1x256x32xf32>
    tpu.vector_store %arg6[%c0_33, %c0_34, %c0_35], %65 {strides = array<i32>} : memref<1x256x32xf32, #tpu.memory_space<vmem>>, vector<1x256x32xf32>,
    return
  }
  func.func @transform_0(%arg0: i32) -> (i32, i32, i32, i32) {
    %c0_i32 = arith.constant 0 : i32
    %c0_i32_0 = arith.constant 0 : i32
    %c0_i32_1 = arith.constant 0 : i32
    %c0_i32_2 = arith.constant 0 : i32
    return %arg0, %c0_i32, %c0_i32_0, %c0_i32_1 : i32, i32, i32, i32
  }
  func.func @transform_1(%arg0: i32) -> (i32, i32) {
    %c0_i32 = arith.constant 0 : i32
    %c0_i32_0 = arith.constant 0 : i32
    %c0_i32_1 = arith.constant 0 : i32
    return %c0_i32, %c0_i32_0 : i32, i32
  }
  func.func @transform_2(%arg0: i32) -> (i32, i32) {
    %c0_i32 = arith.constant 0 : i32
    %c0_i32_0 = arith.constant 0 : i32
    %c0_i32_1 = arith.constant 0 : i32
    return %c0_i32, %c0_i32_0 : i32, i32
  }
  func.func @transform_3(%arg0: i32) -> (i32, i32) {
    %c0_i32 = arith.constant 0 : i32
    %c0_i32_0 = arith.constant 0 : i32
    %c0_i32_1 = arith.constant 0 : i32
    return %c0_i32, %c0_i32_0 : i32, i32
  }
  func.func @transform_4(%arg0: i32) -> (i32, i32) {
    %c0_i32 = arith.constant 0 : i32
    %c0_i32_0 = arith.constant 0 : i32
    %c0_i32_1 = arith.constant 0 : i32
    return %c0_i32, %c0_i32_0 : i32, i32
  }
  func.func @transform_5(%arg0: i32) -> (i32, i32, i32) {
    %c0_i32 = arith.constant 0 : i32
    %c0_i32_0 = arith.constant 0 : i32
    %c0_i32_1 = arith.constant 0 : i32
    return %arg0, %c0_i32, %c0_i32_0 : i32, i32, i32
  }
}

</mosaic_0001>

<bundles_post_ra>
// kernel: stageblock_forward.1
= control target key start
LH: loop header
LB: loop body
LE: loop exit
PB: predicated region body
PF: predicated region fallthrough
CT: control target
= control target key end

     0   :  { %10 = vsyncpa [#allocation5], 0  ;;  %s8680_s0 = inlined_call_operand.vmem [shape: f32[2,16,16,4], index: 0, kind: input, shape index: {}]   ;;  %s8681_s1 = inlined_call_operand.vmem [shape: bf16[36,32], index: 1, kind: input, shape index: {}]   ;;  %s8682_s2 = inlined_call_operand.vmem [shape: f32[1,32], index: 2, kind: input, shape index: {}]   ;;  %s8683_s3 = inlined_call_operand.vmem [shape: bf16[288,32], index: 3, kind: input, shape index: {}]   ;;  %s8684_s4 = inlined_call_operand.vmem [shape: f32[1,32], index: 4, kind: input, shape index: {}]   ;;  %s8685_s5 = inlined_call_operand.hbm [shape: f32[2,256,32], index: 5, kind: output, shape index: {}]  }
   0x1   :  { %12 = vsyncpa [#allocation5 + $0x1], 0  ;;  %s5801_s18 = smov 0   ;;  %s5803_s19 = smov 0  }
   0x2   :  { %s5805_s20 = smov 0   ;;  %s5807_s21 = smov 0  }
   0x3 LB: > { %s5822_s22 = sadd.s32 4294967295, %s5756_s21   ;;  %s5004_s23 = sadd.s32 4294967294, %s5756_s21   ;;  %s5756_s21 = sphi %s5807_s21, %s8757_s21   ;;  %s5752_s20 = sphi %s5805_s20, %s8756_s20   ;;  %s5748_s19 = sphi %s5803_s19, %s8755_s19   ;;  %s5744_s18 = sphi %s5801_s18, %s8754_s18  }
   0x4   : > { %s5826_s24 = sadd.s32 1, %s5756_s21   ;;  %s135_s25 = sadd.s32 1, %s5752_s20 }
   0x5   : > { %s132_s26 = ssub.s32 %s5756_s21, %s5826_s24  ;;  %p145_p0 = scmp.ne.s32.totalorder %s5752_s20, %s5748_s19 }
   0x6   : > { %p133_p1 = scmp.eq.s32.totalorder %s132_s26, 0  ;;  %p146_p2 = scmp.eq.s32.totalorder %s5822_s22, 1 }
   0x7   : > { %p151_p3 = scmp.ne.s32.totalorder %s5748_s19, %s5744_s18  ;;  %p152_p4 = scmp.eq.s32.totalorder %s5004_s23, 1 }
   0x8   : > { %s5837_s27 = scalar_select %p133_p1, %s5752_s20, %s135_s25  }
   0x9   : > { %p5839_p5 = por %p146_p2, %p145_p0  ;;  %p5843_p6 = por %p152_p4, %p151_p3 }
   0xa   : > { %p5007_p7 = scmp.ge.s32.totalorder %s5756_s21, 1  ;;  %p190_p8 = scmp.lt.s32.totalorder %s5756_s21, 3 }
   0xc   : > { %p191_p9 = pnand %p5007_p7, %p190_p8 }
   0xe   : > { %194 = sbr.rel (%p191_p9) target bundleno = 1054 (0x41e), region = 40 }
  0x15   : > { %vm224_vm0 = vcmask 27648   ;;  %vm227_vm1 = vcmask 24576   ;;  %v5758_v0 = vmov 0   ;;  %p218_p10 = scmp.lt.s32.totalorder %s5822_s22, 1  ;;  %vm1394_vm2 = vcmask 1042432   ;;  %s5759_s10 = smov 8  }
  0x16   : > { %225 = vst.msk [vmem:[#allocation2] sm:$0xf] %vm224_vm0, %v5758_v0  ;;  %226 = vst.msk [vmem:[#allocation2 + $0x4] sm:$0xf] %vm224_vm0, %v5758_v0  ;;  %vm1395_vm3 = vcmask 1046532   ;;  %s5760_s11 = smov 4  }
  0x17   : > { %228 = vst.msk [vmem:[#allocation2 + $0x8] sm:$0x1] %vm227_vm1, %v5758_v0  ;;  %231 = vst.msk [vmem:[#allocation2 + $0x14] sm:$0x1] %vm227_vm1, %v5758_v0  ;;  %s219_s30 = scalar_select %p218_p10, %s5822_s22, 1  ;;  %vm2335_vm14 = vcmask 1041408  }
  0x18   : > { %229 = vst.msk [vmem:[#allocation2 + $0xc] sm:$0xf] %vm224_vm0, %v5758_v0  ;;  %230 = vst.msk [vmem:[#allocation2 + $0x10] sm:$0xf] %vm224_vm0, %v5758_v0  ;;  %vm959_vm4 = vsmask.f32 3328 }
  0x19   : > { %232 = vst.msk [vmem:[#allocation2 + $0x18] sm:$0xf] %vm224_vm0, %v5758_v0  ;;  %233 = vst.msk [vmem:[#allocation2 + $0x1c] sm:$0xf] %vm224_vm0, %v5758_v0  ;;  %vm960_vm5 = vsmask.f32 7440 }
  0x1a   : > { %234 = vst.msk [vmem:[#allocation2 + $0x20] sm:$0x1] %vm227_vm1, %v5758_v0  ;;  %237 = vst.msk [vmem:[#allocation2 + $0x2c] sm:$0x1] %vm227_vm1, %v5758_v0  ;;  %s5279_s6 = sshll.u32 %s219_s30, 8  ;;  %s5761_s12 = smov 12  }
  0x1b   : > { %235 = vst.msk [vmem:[#allocation2 + $0x24] sm:$0xf] %vm224_vm0, %v5758_v0  ;;  %236 = vst.msk [vmem:[#allocation2 + $0x28] sm:$0xf] %vm224_vm0, %v5758_v0  ;;  %vm464_vm6 = vsmask.f32 256  ;;  %s5966_s9 = scalar_lea.vmem %s8680_s0, %s5279_s6 }
  0x1c   : > { %238 = vst.msk [vmem:[#allocation2 + $0x30] sm:$0xf] %vm224_vm0, %v5758_v0  ;;  %239 = vst.msk [vmem:[#allocation2 + $0x34] sm:$0xf] %vm224_vm0, %v5758_v0  ;;  %vm465_vm8 = vsmask.f32 4368 }
  0x1d   : > { %240 = vst.msk [vmem:[#allocation2 + $0x38] sm:$0x1] %vm227_vm1, %v5758_v0  ;;  %243 = vst.msk [vmem:[#allocation2 + $0x44] sm:$0x1] %vm227_vm1, %v5758_v0  ;;  %v338_v2 = vld [vmem:[%s5966_s9 + $0x10] sm:$0xff]  ;;  %v339_v3 = vld [vmem:[%s5966_s9 + $0x18] sm:$0xff] }
  0x1e   : > { %241 = vst.msk [vmem:[#allocation2 + $0x3c] sm:$0xf] %vm224_vm0, %v5758_v0  ;;  %242 = vst.msk [vmem:[#allocation2 + $0x40] sm:$0xf] %vm224_vm0, %v5758_v0  ;;  %vm789_vm9 = vsmask.f32 7938  ;;  %v5282_v8 = vpack.c.bf16 %v338_v2, %v338_v2  ;;  %v5283_v9 = vpack.c.bf16 %v339_v3, %v339_v3 }
  0x1f   : > { %244 = vst.msk [vmem:[#allocation2 + $0x48] sm:$0xf] %vm224_vm0, %v5758_v0  ;;  %245 = vst.msk [vmem:[#allocation2 + $0x4c] sm:$0xf] %vm224_vm0, %v5758_v0  ;;  %v336_v4 = vld [vmem:[%s5966_s9] sm:$0xff]  ;;  %v337_v27 = vld [vmem:[%s5966_s9 + $0x8] sm:$0xff] }
  0x20   : > { %246 = vst.msk [vmem:[#allocation2 + $0x50] sm:$0x1] %vm227_vm1, %v5758_v0  ;;  %249 = vst.msk [vmem:[#allocation2 + $0x5c] sm:$0x1] %vm227_vm1, %v5758_v0  ;;  %v5971_v5 = vld [vmem:[#allocation2] sm:$0xf]  ;;  %v5280_v10 = vpack.c.bf16 %v336_v4, %v336_v4  ;;  %v5281_v42 = vpack.c.bf16 %v337_v27, %v337_v27 }
  0x21   : > { %247 = vst.msk [vmem:[#allocation2 + $0x54] sm:$0xf] %vm224_vm0, %v5758_v0  ;;  %248 = vst.msk [vmem:[#allocation2 + $0x58] sm:$0xf] %vm224_vm0, %v5758_v0  ;;  %v5973_v6 = vld [vmem:[#allocation2 + $0x4] sm:$0xf] }
  0x22   : > { %250 = vst.msk [vmem:[#allocation2 + $0x60] sm:$0xf] %vm224_vm0, %v5758_v0  ;;  %251 = vst.msk [vmem:[#allocation2 + $0x64] sm:$0xf] %vm224_vm0, %v5758_v0  ;;  %v907_v7 = vld [vmem:[#allocation2 + $0x8] sm:$0x1] }
  0x23   : > { %252 = vst.msk [vmem:[#allocation2 + $0x68] sm:$0x1] %vm227_vm1, %v5758_v0  ;;  %255 = vst.msk [vmem:[#allocation2 + $0x74] sm:$0x1] %vm227_vm1, %v5758_v0  ;;  %v5043_v11 = vrot.slane %v5971_v5, 9  ;;  %v1399_v12 = vrot.slane %v5973_v6, 5 }
  0x24   : > { %253 = vst.msk [vmem:[#allocation2 + $0x6c] sm:$0xf] %vm224_vm0, %v5758_v0  ;;  %254 = vst.msk [vmem:[#allocation2 + $0x70] sm:$0xf] %vm224_vm0, %v5758_v0  ;;  %v1402_v13 = vrot.slane %v907_v7, 5  ;;  %v963_v14 = vshrl.u32 %v5971_v5, 16 }
  0x25   : > { %256 = vst.msk [vmem:[#allocation2 + $0x78] sm:$0xf] %vm224_vm0, %v5758_v0  ;;  %257 = vst.msk [vmem:[#allocation2 + $0x7c] sm:$0xf] %vm224_vm0, %v5758_v0  ;;  %v966_v15 = vshll.u32 %v5971_v5, 16  ;;  %v972_v16 = vshll.u32 %v5973_v6, 16 }
  0x26   : > { %258 = vst.msk [vmem:[#allocation2 + $0x80] sm:$0x1] %vm227_vm1, %v5758_v0  ;;  %261 = vst.msk [vmem:[#allocation2 + $0x8c] sm:$0x1] %vm227_vm1, %v5758_v0  ;;  %v976_v17 = vshrl.u32 %v5973_v6, 16  ;;  %v982_v18 = vshll.u32 %v907_v7, 16 }
  0x27   : > { %259 = vst.msk [vmem:[#allocation2 + $0x84] sm:$0xf] %vm224_vm0, %v5758_v0  ;;  %260 = vst.msk [vmem:[#allocation2 + $0x88] sm:$0xf] %vm224_vm0, %v5758_v0  ;;  %v1401_v20 = vrot.slane %v1399_v12, 4  ;;  %v965_v21 = vrot.slane %v963_v14, 4 }
  0x28   : > { %262 = vst.msk [vmem:[#allocation2 + $0x90] sm:$0xf] %vm224_vm0, %v5758_v0  ;;  %263 = vst.msk [vmem:[#allocation2 + $0x94] sm:$0xf] %vm224_vm0, %v5758_v0  ;;  %v485_v22 = vshrl.u32 %v5282_v8, 16  ;;  %v968_v23 = vrot.slane %v966_v15, 5 }
  0x29   : > { %264 = vst.msk [vmem:[#allocation2 + $0x98] sm:$0x1] %vm227_vm1, %v5758_v0  ;;  %267 = vst.msk [vmem:[#allocation2 + $0xa4] sm:$0x1] %vm227_vm1, %v5758_v0  ;;  %v974_v24 = vrot.slane %v972_v16, 5  ;;  %v978_v25 = vrot.slane %v976_v17, 4 }
  0x2a   : > { %265 = vst.msk [vmem:[#allocation2 + $0x9c] sm:$0xf] %vm224_vm0, %v5758_v0  ;;  %266 = vst.msk [vmem:[#allocation2 + $0xa0] sm:$0xf] %vm224_vm0, %v5758_v0  ;;  %v984_v26 = vrot.slane %v982_v18, 5  ;;  %v487_v29 = vrot.slane %v485_v22, 7  ;;  %v969_v33 = vor.u32 %v968_v23, %v965_v21 }
  0x2b   : > { %268 = vst.msk [vmem:[#allocation2 + $0xa8] sm:$0xf] %vm224_vm0, %v5758_v0  ;;  %269 = vst.msk [vmem:[#allocation2 + $0xac] sm:$0xf] %vm224_vm0, %v5758_v0  ;;  %v488_v30 = vshll.u32 %v5282_v8, 16  ;;  %v493_v31 = vshrl.u32 %v5283_v9, 16  ;;  %v979_v34 = vor.u32 %v978_v25, %v974_v24 }
  0x2c   : > { %270 = vst.msk [vmem:[#allocation2 + $0xb0] sm:$0x1] %vm227_vm1, %v5758_v0  ;;  %273 = vst.msk [vmem:[#allocation2 + $0xbc] sm:$0x1] %vm227_vm1, %v5758_v0  ;;  %v496_v35 = vshll.u32 %v5283_v9, 16  ;;  %v491_v40 = vrot.slane %v487_v29, 4 }
  0x2d   : > { %271 = vst.msk [vmem:[#allocation2 + $0xb4] sm:$0xf] %vm224_vm0, %v5758_v0  ;;  %272 = vst.msk [vmem:[#allocation2 + $0xb8] sm:$0xf] %vm224_vm0, %v5758_v0  ;;  %v800_v37 = vld [vmem:[#allocation2 + $0x18] sm:$0xf]  ;;  %v490_v39 = vor.u32 %v488_v30, %v487_v29 }
  0x2e   : > { %274 = vst.msk [vmem:[#allocation2 + $0xc0] sm:$0xf] %vm224_vm0, %v5758_v0  ;;  %275 = vst.msk [vmem:[#allocation2 + $0xc4] sm:$0xf] %vm224_vm0, %v5758_v0  ;;  %v495_v41 = vrot.slane %v493_v31, 7  ;;  %v340_v43 = vld [vmem:[%s5966_s9 + $0x20] sm:$0xff] }
  0x2f   : > { %276 = vst.msk [vmem:[#allocation2 + $0xc8] sm:$0x1] %vm227_vm1, %v5758_v0  ;;  %279 = vst.msk [vmem:[#allocation2 + $0xd4] sm:$0x1] %vm227_vm1, %v5758_v0  ;;  %v970_v44 = vrot.slane %v969_v33, 4  ;;  %v980_v45 = vrot.slane %v979_v34, 4  ;;  %v5284_v57 = vpack.c.bf16 %v340_v43, %v340_v43 }
  0x30   : > { %277 = vst.msk [vmem:[#allocation2 + $0xcc] sm:$0xf] %vm224_vm0, %v5758_v0  ;;  %278 = vst.msk [vmem:[#allocation2 + $0xd0] sm:$0xf] %vm224_vm0, %v5758_v0  ;;  %v468_v47 = vshrl.u32 %v5280_v10, 16  ;;  %v471_v48 = vshll.u32 %v5280_v10, 16  ;;  %v498_v50 = vor.u32 %v496_v35, %v495_v41 }
  0x31   : > { %vm5959_vm7 = vmor %vm1394_vm2, %vm1395_vm3  ;;  %v341_v49 = vld [vmem:[%s5966_s9 + $0x28] sm:$0xff]  ;;  %v476_v52 = vshrl.u32 %v5281_v42, 16  ;;  %v479_v53 = vshll.u32 %v5281_v42, 16  ;;  %v342_v63 = vld [vmem:[%s5966_s9 + $0x30] sm:$0xff]  ;;  %v502_v4 = vshrl.u32 %v5284_v57, 16  ;;  %v505_v7 = vshll.u32 %v5284_v57, 16 }
  0x32   : > { %v1400_v19 = vsel %vm5959_vm7, %v5043_v11, %v1399_v12  ;;  %v1403_v28 = vsel %vm5959_vm7, %v1401_v20, %v1402_v13  ;;  %vm5988_vm10 = vmand %vm224_vm0, %vm789_vm9  ;;  %v470_v56 = vrot.slane %v468_v47, 7  ;;  %v791_v61 = vld [vmem:[#allocation2 + $0xc] sm:$0xf]  ;;  %v5285_v62 = vpack.c.bf16 %v341_v49, %v341_v49  ;;  %v797_v9 = vld [vmem:[#allocation2 + $0x14] sm:$0x1]  ;;  %s5762_s13 = smov 24  }
  0x33   : > { %v5093_v32 = vcombine.low %v1400_v19, %v1403_v28  ;;  %vm5994_vm11 = vmor %vm959_vm4, %vm960_vm5  ;;  %v801_v51 = vsel %vm5988_vm10, %v490_v39, %v800_v37  ;;  %v478_v60 = vrot.slane %v476_v52, 7  ;;  %v343_v10 = vld [vmem:[%s5966_s9 + $0x38] sm:$0xff]  ;;  %v804_v15 = vld [vmem:[#allocation2 + $0x20] sm:$0x1]  ;;  %v504_v17 = vrot.slane %v502_v4, 7  ;;  %s5763_s16 = smov 20  }
  0x34   : > { %vm6002_vm12 = vmor %vm464_vm6, %vm465_vm8  ;;  %v975_v54 = vsel %vm5994_vm11, %v970_v44, %v974_v24  ;;  %v985_v55 = vsel %vm5994_vm11, %v980_v45, %v984_v26  ;;  %802 = vst [vmem:[#allocation2 + $0x18] sm:$0xf] %v801_v51  ;;  %v473_v2 = vor.u32 %v471_v48, %v470_v56  ;;  %v474_v3 = vrot.slane %v470_v56, 4  ;;  %v807_v22 = vld [vmem:[#allocation2 + $0x24] sm:$0xf]  ;;  %s5764_s25 = smov 32  }
  0x35   : > { %1753 = vrot.lane.b32.xlu1 %v5093_v32, %s5759_s10  ;;  %v5077_v58 = vcombine.low %v975_v54, %v985_v55  ;;  %v499_v59 = vsel %vm6002_vm12, %v491_v40, %v498_v50  ;;  %vm6019_vm13 = vmand %vm227_vm1, %vm464_vm6  ;;  %v481_v11 = vor.u32 %v479_v53, %v478_v60  ;;  %v510_v12 = vshrl.u32 %v5285_v62, 16  ;;  %v811_v28 = vld [vmem:[#allocation2 + $0x2c] sm:$0x1]  ;;  %v814_v45 = vld [vmem:[#allocation2 + $0x30] sm:$0xf]  ;;  %s5765_s26 = smov 16  }
  0x36   : > { %803 = vst.msk [vmem:[#allocation2 + $0x1c] sm:$0xf] %vm224_vm0, %v499_v59  ;;  %v513_v13 = vshll.u32 %v5285_v62, 16  ;;  %v483_v14 = vrot.slane %v478_v60, 4  ;;  %v792_v16 = vsel %vm5988_vm10, %v473_v2, %v791_v61  ;;  %v500_v18 = vrot.slane %v495_v41, 4  ;;  %s5766_s30 = smov 28  }
  0x37   : > { %1673 = vrot.lane.b32.xlu0 %v5077_v58, %s5760_s11  ;;  %v5286_v19 = vpack.c.bf16 %v342_v63, %v342_v63  ;;  %v482_v20 = vsel %vm6002_vm12, %v474_v3, %v481_v11  ;;  %793 = vst [vmem:[#allocation2 + $0xc] sm:$0xf] %v792_v16  ;;  %v512_v21 = vrot.slane %v510_v12, 7  ;;  %v6031_v24 = vpack.c.bf16 %v343_v10, %v343_v10  ;;  %s5767_s8 = smov 64   ;;  %s5768_s7 = smov 96  }
  0x38   : > { %v798_v23 = vsel %vm6019_vm13, %v483_v14, %v797_v9  ;;  %794 = vst.msk [vmem:[#allocation2 + $0x10] sm:$0xf] %vm224_vm0, %v482_v20  ;;  %v507_v25 = vor.u32 %v505_v7, %v504_v17  ;;  %v508_v26 = vrot.slane %v504_v17, 4  ;;  %v805_v27 = vsel %vm6019_vm13, %v500_v18, %v804_v15 }
  0x39   : > { %799 = vst [vmem:[#allocation2 + $0x14] sm:$0x1] %v798_v23  ;;  %v519_v29 = vshrl.u32 %v5286_v19, 16  ;;  %v515_v31 = vor.u32 %v513_v13, %v512_v21  ;;  %806 = vst [vmem:[#allocation2 + $0x20] sm:$0x1] %v805_v27  ;;  %v517_v32 = vrot.slane %v512_v21, 4 }
  0x3a   : > { %v522_v33 = vshll.u32 %v5286_v19, 16  ;;  %v527_v34 = vshrl.u32 %v6031_v24, 16  ;;  %v808_v39 = vsel %vm5988_vm10, %v507_v25, %v807_v22  ;;  %v530_v59 = vshll.u32 %v6031_v24, 16 }
  0x3b   : > { %v911_v30 = vld [vmem:[#allocation2 + $0x18] sm:$0xf]  ;;  %v516_v41 = vsel %vm6002_vm12, %v508_v26, %v515_v31  ;;  %809 = vst [vmem:[#allocation2 + $0x24] sm:$0xf] %v808_v39  ;;  %v812_v43 = vsel %vm6019_vm13, %v517_v32, %v811_v28  ;;  %v6043_v44 = vrot.slane %v519_v29, 7  ;;  %vm1995_vm15 = vcmask 31744  }
  0x3c   : > { %v1011_v35 = vshrl.u32 %v911_v30, 16  ;;  %v1014_v37 = vshll.u32 %v911_v30, 16  ;;  %v5045_v42 = vrot.slane %v911_v30, 9  ;;  %810 = vst.msk [vmem:[#allocation2 + $0x28] sm:$0xf] %vm224_vm0, %v516_v41  ;;  %v6049_v54 = vrot.slane %v527_v34, 7 }
  0x3d   : > { %v912_v40 = vld [vmem:[#allocation2 + $0x1c] sm:$0xf]  ;;  %813 = vst [vmem:[#allocation2 + $0x2c] sm:$0x1] %v812_v43  ;;  %v524_v53 = vor.u32 %v522_v33, %v6043_v44  ;;  %v525_v58 = vrot.slane %v6043_v44, 4  ;;  %v5646_v41 = vld [vmem:[%s8681_s1] sm:$0xff]  }
  0x3e   : > { %v1024_v47 = vshrl.u32 %v912_v40, 16  ;;  %v6045_v48 = vcombine.low %v911_v30, %v912_v40  ;;  %v1413_v49 = vrot.slane %v912_v40, 5  ;;  %v1013_v50 = vrot.slane %v1011_v35, 4  ;;  %v908_v55 = vld [vmem:[#allocation2 + $0xc] sm:$0xf]  ;;  %5494 = vmatprep.subr.bf16.mxu0 %v5646_v41 }
  0x3f   : > { %v1016_v51 = vrot.slane %v1014_v37, 5  ;;  %v1020_v52 = vshll.u32 %v912_v40, 16  ;;  %v6055_v60 = vld [vmem:[#allocation2 + $0x10] sm:$0xf]  ;;  %v987_v61 = vshrl.u32 %v908_v55, 16  ;;  %v990_v62 = vshll.u32 %v908_v55, 16  ;;  %5495 = vmatpush3.bf16.msra.mxu0 %v5646_v41 }
  0x40   : > { %1790 = vrot.lane.b32.xlu1 %v6045_v48, %s5761_s12  ;;  %v1415_v56 = vrot.slane %v1413_v49, 4  ;;  %v1026_v57 = vrot.slane %v1024_v47, 4  ;;  %v6057_v63 = vld [vmem:[#allocation2 + $0x14] sm:$0x1]  ;;  %v815_v3 = vsel %vm5988_vm10, %v524_v53, %v814_v45  ;;  %v1000_v4 = vshrl.u32 %v6055_v60, 16 }
  0x41   : > { %v1017_v2 = vor.u32 %v1016_v51, %v1013_v50  ;;  %v6063_v7 = vcombine.low %v908_v55, %v6055_v60  ;;  %v5044_v9 = vrot.slane %v908_v55, 9  ;;  %v1406_v10 = vrot.slane %v6055_v60, 5  ;;  %v913_v11 = vld [vmem:[#allocation2 + $0x20] sm:$0x1]  ;;  %816 = vst [vmem:[#allocation2 + $0x30] sm:$0xf] %v815_v3 }
  0x42   : > { %v1409_v12 = vrot.slane %v6057_v63, 5  ;;  %v1416_v13 = vrot.slane %v913_v11, 5  ;;  %v1022_v15 = vrot.slane %v1020_v52, 5  ;;  %v914_v16 = vld [vmem:[#allocation2 + $0x24] sm:$0xf]  ;;  %v1030_v19 = vshll.u32 %v913_v11, 16 }
  0x43   : > { %v1018_v14 = vrot.slane %v1017_v2, 4  ;;  %1788 = vrot.lane.b32.xlu0 %v6063_v7, %s5761_s12  ;;  %v1407_v17 = vsel %vm5959_vm7, %v5044_v9, %v1406_v10  ;;  %v1408_v18 = vrot.slane %v1406_v10, 4  ;;  %v989_v20 = vrot.slane %v987_v61, 4  ;;  %v915_v21 = vld [vmem:[#allocation2 + $0x28] sm:$0xf] }
  0x44   : > { %v1035_v22 = vshrl.u32 %v914_v16, 16  ;;  %v1038_v23 = vshll.u32 %v914_v16, 16  ;;  %v1414_v25 = vsel %vm5959_vm7, %v5045_v42, %v1413_v49  ;;  %v916_v26 = vld [vmem:[#allocation2 + $0x2c] sm:$0x1]  ;;  %v1048_v27 = vshrl.u32 %v915_v21, 16 }
  0x45   : > { %v6073_v28 = vcombine.low %v914_v16, %v915_v21  ;;  %v1410_v29 = vsel %vm5959_vm7, %v1408_v18, %v1409_v12  ;;  %v1417_v30 = vsel %vm5959_vm7, %v1415_v56, %v1416_v13  ;;  %v5046_v32 = vrot.slane %v914_v16, 9  ;;  %v818_v12 = vld [vmem:[#allocation2 + $0x38] sm:$0x1] }
  0x46   : > { %v5094_v31 = vcombine.low %v1407_v17, %v1410_v29  ;;  %v1420_v33 = vrot.slane %v915_v21, 5  ;;  %v1423_v34 = vrot.slane %v916_v26, 5  ;;  %v1027_v35 = vor.u32 %v1026_v57, %v1022_v15 }
  0x47   : > { %1895 = vrot.lane.b32.xlu1 %v6073_v28, %s5762_s13  ;;  %1893 = vrot.lane.b32.xlu0 %v6045_v48, %s5762_s13  ;;  %v1032_v37 = vrot.slane %v1030_v19, 5  ;;  %v1037_v39 = vrot.slane %v1035_v22, 4  ;;  %v1040_v40 = vrot.slane %v1038_v23, 5  ;;  %v1044_v45 = vshll.u32 %v915_v21, 16  ;;  %v345_v23 = vld [vmem:[%s5966_s9 + $0x48] sm:$0xff] }
  0x48   : > { %v1421_v42 = vsel %vm5959_vm7, %v5046_v32, %v1420_v33  ;;  %v1422_v43 = vrot.slane %v1420_v33, 4  ;;  %v1050_v47 = vrot.slane %v1048_v27, 4  ;;  %v1028_v49 = vrot.slane %v1027_v35, 4  ;;  %v6110_v21 = vld [vmem:[#allocation2 + $0x30] sm:$0xf] }
  0x49   : > { %v1041_v50 = vor.u32 %v1040_v40, %v1037_v39  ;;  %v1054_v51 = vshll.u32 %v916_v26, 16  ;;  %v992_v52 = vrot.slane %v990_v62, 5  ;;  %v1046_v55 = vrot.slane %v1044_v45, 5 }
  0x4a   : > { %v1424_v53 = vsel %vm5959_vm7, %v1422_v43, %v1423_v34  ;;  %v996_v56 = vshll.u32 %v6055_v60, 16  ;;  %v1002_v57 = vrot.slane %v1000_v4, 4  ;;  %v6093_v61 = vcombine.low %v1414_v25, %v1417_v30  ;;  %v5647_v60 = vld [vmem:[%s8681_s1 + $0x8] sm:$0xff]   ;;  %v346_v25 = vld [vmem:[%s5966_s9 + $0x50] sm:$0xff]  ;;  %v347_v30 = vld [vmem:[%s5966_s9 + $0x58] sm:$0xff] }
  0x4b   : > { %1858 = vrot.lane.b32.xlu0 %v5094_v31, %s5763_s16  ;;  %1755 = vrot.lane.b32.xlu1 %v5094_v31, %s5759_s10  ;;  %v1023_v2 = vsel %vm5994_vm11, %v1018_v14, %v1022_v15  ;;  %v1033_v62 = vsel %vm5994_vm11, %v1028_v49, %v1032_v37  ;;  %v1042_v3 = vrot.slane %v1041_v50, 4  ;;  %v1051_v4 = vor.u32 %v1050_v47, %v1046_v55  ;;  %v821_v43 = vld [vmem:[#allocation2 + $0x3c] sm:$0xf] }
  0x4c   : > { %v1056_v9 = vrot.slane %v1054_v51, 5  ;;  %v993_v10 = vor.u32 %v992_v52, %v989_v20  ;;  %v998_v11 = vrot.slane %v996_v56, 5  ;;  %v6102_v13 = vcombine.low %v1421_v42, %v1424_v53  ;;  %5496 = vmatprep.subr.bf16.mxu0 %v5647_v60  ;;  %v344_v20 = vld [vmem:[%s5966_s9 + $0x40] sm:$0xff] }
  0x4d   : > { %v1006_v16 = vshll.u32 %v6057_v63, 16  ;;  %v532_v14 = vor.u32 %v530_v59, %v6049_v54  ;;  %v6108_v15 = vcombine.low %v1023_v2, %v1033_v62  ;;  %v1052_v17 = vrot.slane %v1051_v4, 4  ;;  %5497 = vmatpush3.bf16.msra.mxu0 %v5647_v60  ;;  %v825_v56 = vld [vmem:[#allocation2 + $0x44] sm:$0x1] }
  0x4e   : > { %v994_v18 = vrot.slane %v993_v10, 4  ;;  %v1003_v19 = vor.u32 %v1002_v57, %v998_v11  ;;  %v1047_v24 = vsel %vm5994_vm11, %v1042_v3, %v1046_v55  ;;  %v534_v22 = vrot.slane %v6049_v54, 4  ;;  %v348_v60 = vld [vmem:[%s5966_s9 + $0x60] sm:$0xff] }
  0x4f   : > { %1963 = vrot.lane.b32.xlu0 %v6093_v61, %s5764_s25  ;;  %1860 = vrot.lane.b32.xlu1 %v6093_v61, %s5763_s16  ;;  %v1008_v59 = vrot.slane %v1006_v16, 5  ;;  %v533_v63 = vsel %vm6002_vm12, %v525_v58, %v532_v14  ;;  %v1057_v26 = vsel %vm5994_vm11, %v1052_v17, %v1056_v9  ;;  %v1059_v31 = vshrl.u32 %v6110_v21, 16 }
  0x50   : > { %v999_v27 = vsel %vm5994_vm11, %v994_v18, %v998_v11  ;;  %v1004_v29 = vrot.slane %v1003_v19, 4  ;;  %817 = vst.msk [vmem:[#allocation2 + $0x34] sm:$0xf] %vm224_vm0, %v533_v63  ;;  %v1062_v44 = vshll.u32 %v6110_v21, 16  ;;  %v819_v58 = vsel %vm6019_vm13, %v534_v22, %v818_v12  ;;  %v349_v19 = vld [vmem:[%s5966_s9 + $0x68] sm:$0xff] }
  0x51   : > { %v5288_v54 = vpack.c.bf16 %v344_v20, %v344_v20  ;;  %v6136_v32 = vcombine.low %v1047_v24, %v1057_v26  ;;  %820 = vst [vmem:[#allocation2 + $0x38] sm:$0x1] %v819_v58  ;;  %v5289_v34 = vpack.c.bf16 %v345_v23, %v345_v23  ;;  %v5290_v35 = vpack.c.bf16 %v346_v25, %v346_v25  ;;  %v828_v22 = vld [vmem:[#allocation2 + $0x48] sm:$0xf]  ;;  %v832_v26 = vld [vmem:[#allocation2 + $0x50] sm:$0x1] }
  0x52   : > { %v1009_v33 = vsel %vm5994_vm11, %v1004_v29, %v1008_v59  ;;  %v5291_v41 = vpack.c.bf16 %v347_v30, %v347_v30  ;;  %v1061_v52 = vrot.slane %v1059_v31, 4  ;;  %v1064_v53 = vrot.slane %v1062_v44, 5 }
  0x53   : > { %1965 = vrot.lane.b32.xlu0 %v6102_v13, %s5764_s25  ;;  %1825 = vrot.lane.b32.xlu1 %v6108_v15, %s5765_s26  ;;  %v5078_v37 = vcombine.low %v999_v27, %v1009_v33  ;;  %v536_v39 = vshrl.u32 %v5288_v54, 16  ;;  %v539_v40 = vshll.u32 %v5288_v54, 16  ;;  %v544_v42 = vshrl.u32 %v5289_v34, 16 }
  0x54   : > { %v553_v45 = vshrl.u32 %v5290_v35, 16  ;;  %v547_v49 = vshll.u32 %v5289_v34, 16  ;;  %v556_v50 = vshll.u32 %v5290_v35, 16  ;;  %v561_v51 = vshrl.u32 %v5291_v41, 16 }
  0x55   : > { %v538_v47 = vrot.slane %v536_v39, 7  ;;  %v546_v55 = vrot.slane %v544_v42, 7  ;;  %v564_v11 = vshll.u32 %v5291_v41, 16  ;;  %v1065_v20 = vor.u32 %v1064_v53, %v1061_v52 }
  0x56   : > { %v555_v57 = vrot.slane %v553_v45, 7  ;;  %v563_v10 = vrot.slane %v561_v51, 7  ;;  %v5292_v27 = vpack.c.bf16 %v348_v60, %v348_v60  ;;  %v5293_v31 = vpack.c.bf16 %v349_v19, %v349_v19 }
  0x57   : > { %1930 = vrot.lane.b32.xlu1 %v6136_v32, %s5766_s30  ;;  %1675 = vrot.lane.b32.xlu0 %v5078_v37, %s5760_s11  ;;  %v6147_v2 = vld [vmem:[#allocation2 + $0x34] sm:$0xf]  ;;  %v541_v62 = vor.u32 %v539_v40, %v538_v47  ;;  %v542_v3 = vrot.slane %v538_v47, 4  ;;  %v549_v16 = vor.u32 %v547_v49, %v546_v55  ;;  %v551_v17 = vrot.slane %v546_v55, 4 }
  0x58   : > { %v1072_v4 = vshrl.u32 %v6147_v2, 16  ;;  %v1068_v9 = vshll.u32 %v6147_v2, 16  ;;  %v6152_v12 = vld [vmem:[#allocation2 + $0x38] sm:$0x1]  ;;  %v558_v18 = vor.u32 %v556_v50, %v555_v57  ;;  %v559_v30 = vrot.slane %v555_v57, 4 }
  0x59   : > { %v822_v14 = vsel %vm5988_vm10, %v541_v62, %v821_v43  ;;  %v1078_v63 = vshll.u32 %v6152_v12, 16  ;;  %v550_v23 = vsel %vm6002_vm12, %v542_v3, %v549_v16  ;;  %v826_v25 = vsel %vm6019_vm13, %v551_v17, %v825_v56 }
  0x5a   : > { %v1070_v24 = vrot.slane %v1068_v9, 5  ;;  %v1074_v59 = vrot.slane %v1072_v4, 4  ;;  %823 = vst [vmem:[#allocation2 + $0x3c] sm:$0xf] %v822_v14  ;;  %824 = vst.msk [vmem:[#allocation2 + $0x40] sm:$0xf] %vm224_vm0, %v550_v23  ;;  %v566_v44 = vor.u32 %v564_v11, %v563_v10  ;;  %v829_v58 = vsel %vm5988_vm10, %v558_v18, %v828_v22 }
  0x5b   : > { %1677 = vrot.lane.b32.xlu1 %v6108_v15, %s5760_s11  ;;  %1823 = vrot.lane.b32.xlu0 %v5078_v37, %s5765_s26  ;;  %827 = vst [vmem:[#allocation2 + $0x44] sm:$0x1] %v826_v25  ;;  %v568_v54 = vrot.slane %v563_v10, 4  ;;  %v1066_v33 = vrot.slane %v1065_v20, 4  ;;  %v1080_v34 = vrot.slane %v1078_v63, 5  ;;  %v1427_v35 = vrot.slane %v6147_v2, 5 }
  0x5c   : > { %v1075_v29 = vor.u32 %v1074_v59, %v1070_v24  ;;  %830 = vst [vmem:[#allocation2 + $0x48] sm:$0xf] %v829_v58  ;;  %v567_v39 = vsel %vm6002_vm12, %v559_v30, %v566_v44  ;;  %v570_v41 = vshrl.u32 %v5292_v27, 16  ;;  %v578_v42 = vshrl.u32 %v5293_v31, 16  ;;  %v351_v63 = vld [vmem:[%s5966_s9 + $0x78] sm:$0xff]  ;;  %v352_v58 = vld [vmem:[%s5966_s9 + $0x80] sm:$0xff] }
  0x5d   : > { %v833_v40 = vsel %vm6019_vm13, %v568_v54, %v832_v26  ;;  %831 = vst.msk [vmem:[#allocation2 + $0x4c] sm:$0xf] %vm224_vm0, %v567_v39  ;;  %v6180_v43 = vcombine.low %v6110_v21, %v6147_v2  ;;  %v5047_v45 = vrot.slane %v6110_v21, 9  ;;  %v5061_v47 = vcombine.low %v5971_v5, %v5973_v6  ;;  %v350_v2 = vld [vmem:[%s5966_s9 + $0x70] sm:$0xff]  ;;  %v839_v30 = vld [vmem:[#allocation2 + $0x5c] sm:$0x1] }
  0x5e   : > { %v1076_v37 = vrot.slane %v1075_v29, 4  ;;  %834 = vst [vmem:[#allocation2 + $0x50] sm:$0x1] %v833_v40  ;;  %v1429_v49 = vrot.slane %v1427_v35, 4  ;;  %v1430_v50 = vrot.slane %v6152_v12, 5  ;;  %v1071_v21 = vsel %vm5994_vm11, %v1066_v33, %v1070_v24  ;;  %v353_v39 = vld [vmem:[%s5966_s9 + $0x88] sm:$0xff] }
  0x5f   : > { %1679 = vrot.lane.b32.xlu1 %v6136_v32, %s5760_s11  ;;  %1928 = vrot.lane.b32.xlu0 %v6108_v15, %s5766_s30  ;;  %v572_v56 = vrot.slane %v570_v41, 7  ;;  %v581_v57 = vshll.u32 %v5293_v31, 16  ;;  %v580_v4 = vrot.slane %v578_v42, 7  ;;  %v573_v10 = vshll.u32 %v5292_v27, 16  ;;  %v835_v25 = vld [vmem:[#allocation2 + $0x54] sm:$0xf] }
  0x60   : > { %v1081_v53 = vsel %vm5994_vm11, %v1076_v37, %v1080_v34  ;;  %v5294_v12 = vpack.c.bf16 %v350_v2, %v350_v2  ;;  %v1428_v14 = vsel %vm5959_vm7, %v5047_v45, %v1427_v35  ;;  %v1431_v17 = vsel %vm5959_vm7, %v1429_v49, %v1430_v50 }
  0x61   : > { %v6183_v15 = vld [vmem:[#allocation2 + $0x3c] sm:$0xf]  ;;  %v6198_v55 = vld [vmem:[#allocation2 + $0x40] sm:$0xf]  ;;  %v6209_v16 = vcombine.low %v1071_v21, %v1081_v53  ;;  %v576_v24 = vrot.slane %v572_v56, 4  ;;  %v583_v59 = vor.u32 %v581_v57, %v580_v4  ;;  %v575_v23 = vor.u32 %v573_v10, %v572_v56 }
  0x62   : > { %v1083_v51 = vshrl.u32 %v6183_v15, 16  ;;  %v1086_v52 = vshll.u32 %v6183_v15, 16  ;;  %v1096_v62 = vshrl.u32 %v6198_v55, 16  ;;  %v6202_v9 = vld [vmem:[#allocation2 + $0x44] sm:$0x1]  ;;  %v585_v26 = vrot.slane %v580_v4, 4 }
  0x63   : > { %1759 = vrot.lane.b32.xlu1 %v6102_v13, %s5759_s10  ;;  %1757 = vrot.lane.b32.xlu0 %v6093_v61, %s5759_s10  ;;  %v1092_v61 = vshll.u32 %v6198_v55, 16  ;;  %v1102_v20 = vshll.u32 %v6202_v9, 16  ;;  %v6221_v27 = vcombine.low %v1428_v14, %v1431_v17  ;;  %v1434_v29 = vrot.slane %v6198_v55, 5  ;;  %v6243_v50 = vld [vmem:[#allocation2 + $0x48] sm:$0xf] }
  0x64   : > { %v1085_v3 = vrot.slane %v1083_v51, 4  ;;  %v1088_v60 = vrot.slane %v1086_v52, 5  ;;  %v1098_v11 = vrot.slane %v1096_v62, 4  ;;  %v5295_v31 = vpack.c.bf16 %v351_v63, %v351_v63  ;;  %v842_v57 = vld [vmem:[#allocation2 + $0x60] sm:$0xf] }
  0x65   : > { %v1094_v18 = vrot.slane %v1092_v61, 5  ;;  %v587_v44 = vshrl.u32 %v5294_v12, 16  ;;  %v1104_v34 = vrot.slane %v1102_v20, 5  ;;  %v584_v35 = vsel %vm6002_vm12, %v576_v24, %v583_v59  ;;  %v6249_v2 = vld [vmem:[#allocation2 + $0x4c] sm:$0xf] }
  0x66   : > { %v1089_v19 = vor.u32 %v1088_v60, %v1085_v3  ;;  %v836_v37 = vsel %vm5988_vm10, %v575_v23, %v835_v25  ;;  %838 = vst.msk [vmem:[#allocation2 + $0x58] sm:$0xf] %vm224_vm0, %v584_v35  ;;  %v5048_v40 = vrot.slane %v6183_v15, 9  ;;  %v840_v41 = vsel %vm6019_vm13, %v585_v26, %v839_v30  ;;  %v846_v24 = vld [vmem:[#allocation2 + $0x68] sm:$0x1] }
  0x67   : > { %1794 = vrot.lane.b32.xlu1 %v6180_v43, %s5761_s12  ;;  %1792 = vrot.lane.b32.xlu0 %v6073_v28, %s5761_s12  ;;  %v1099_v22 = vor.u32 %v1098_v11, %v1094_v18  ;;  %837 = vst [vmem:[#allocation2 + $0x54] sm:$0xf] %v836_v37  ;;  %v5296_v42 = vpack.c.bf16 %v352_v58, %v352_v58  ;;  %v1437_v49 = vrot.slane %v6202_v9, 5  ;;  %841 = vst [vmem:[#allocation2 + $0x5c] sm:$0x1] %v840_v41  ;;  %v354_v41 = vld [vmem:[%s5966_s9 + $0x90] sm:$0xff] }
  0x68   : > { %v1090_v54 = vrot.slane %v1089_v19, 4  ;;  %v6240_v45 = vcombine.low %v6183_v15, %v6198_v55  ;;  %v589_v51 = vrot.slane %v587_v44, 7  ;;  %v595_v52 = vshrl.u32 %v5295_v31, 16  ;;  %v6273_v23 = vld [vmem:[#allocation2 + $0x50] sm:$0x1] }
  0x69   : > { %v1100_v33 = vrot.slane %v1099_v22, 4  ;;  %v1436_v56 = vrot.slane %v1434_v29, 4  ;;  %v598_v55 = vshll.u32 %v5295_v31, 16  ;;  %v1107_v62 = vshrl.u32 %v6243_v50, 16  ;;  %v849_v37 = vld [vmem:[#allocation2 + $0x6c] sm:$0xf] }
  0x6a   : > { %v1095_v21 = vsel %vm5994_vm11, %v1090_v54, %v1094_v18  ;;  %v597_v3 = vrot.slane %v595_v52, 7  ;;  %v604_v60 = vshrl.u32 %v5296_v42, 16  ;;  %v1110_v9 = vshll.u32 %v6243_v50, 16 }
  0x6b   : > { %1829 = vrot.lane.b32.xlu1 %v6209_v16, %s5765_s26  ;;  %1827 = vrot.lane.b32.xlu0 %v6136_v32, %s5765_s26  ;;  %v590_v32 = vshll.u32 %v5294_v12, 16  ;;  %v1105_v53 = vsel %vm5994_vm11, %v1100_v33, %v1104_v34  ;;  %v1435_v11 = vsel %vm5959_vm7, %v5048_v40, %v1434_v29  ;;  %v1438_v12 = vsel %vm5959_vm7, %v1436_v56, %v1437_v49 }
  0x6c   : > { %v6256_v4 = vcombine.low %v1095_v21, %v1105_v53  ;;  %v1120_v14 = vshrl.u32 %v6249_v2, 16  ;;  %v1116_v17 = vshll.u32 %v6249_v2, 16  ;;  %v593_v18 = vrot.slane %v589_v51, 4 }
  0x6d   : > { %v592_v15 = vor.u32 %v590_v32, %v589_v51  ;;  %v600_v19 = vor.u32 %v598_v55, %v597_v3  ;;  %v602_v20 = vrot.slane %v597_v3, 4  ;;  %v606_v59 = vrot.slane %v604_v60, 7  ;;  %v853_v32 = vld [vmem:[#allocation2 + $0x74] sm:$0x1]  ;;  %v6291_v52 = vld [vmem:[#allocation2 + $0x58] sm:$0xf] }
  0x6e   : > { %v607_v63 = vshll.u32 %v5296_v42, 16  ;;  %v6271_v22 = vcombine.low %v1435_v11, %v1438_v12  ;;  %v1109_v29 = vrot.slane %v1107_v62, 4  ;;  %v1112_v30 = vrot.slane %v1110_v9, 5  ;;  %v6289_v51 = vld [vmem:[#allocation2 + $0x54] sm:$0xf] }
  0x6f   : > { %1864 = vrot.lane.b32.xlu1 %v6221_v27, %s5763_s16  ;;  %1862 = vrot.lane.b32.xlu0 %v6102_v13, %s5763_s16  ;;  %v5297_v13 = vpack.c.bf16 %v353_v39, %v353_v39  ;;  %v843_v61 = vsel %vm5988_vm10, %v592_v15, %v842_v57  ;;  %v6275_v31 = vrot.slane %v1116_v17, 5  ;;  %v1122_v44 = vrot.slane %v1120_v14, 4  ;;  %v355_v57 = vld [vmem:[%s5966_s9 + $0x98] sm:$0xff] }
  0x70   : > { %844 = vst [vmem:[#allocation2 + $0x60] sm:$0xf] %v843_v61  ;;  %v601_v58 = vsel %vm6002_vm12, %v593_v18, %v600_v19  ;;  %v847_v54 = vsel %vm6019_vm13, %v602_v20, %v846_v24  ;;  %v1126_v33 = vshll.u32 %v6273_v23, 16  ;;  %v609_v34 = vor.u32 %v607_v63, %v606_v59  ;;  %v6327_v20 = vld [vmem:[#allocation2 + $0x5c] sm:$0x1] }
  0x71   : > { %v612_v10 = vshrl.u32 %v5297_v13, 16  ;;  %v615_v26 = vshll.u32 %v5297_v13, 16  ;;  %845 = vst.msk [vmem:[#allocation2 + $0x64] sm:$0xf] %vm224_vm0, %v601_v58  ;;  %848 = vst [vmem:[#allocation2 + $0x68] sm:$0x1] %v847_v54  ;;  %v1113_v42 = vor.u32 %v1112_v30, %v1109_v29  ;;  %v1123_v49 = vor.u32 %v1122_v44, %v6275_v31 }
  0x72   : > { %v610_v35 = vrot.slane %v606_v59, 4  ;;  %v850_v53 = vsel %vm5988_vm10, %v609_v34, %v849_v37  ;;  %v6303_v13 = vld [vmem:[%s8681_s1 + $0x10] ss:$0 sps:$4 sm:$0x33]   ;;  %v1128_v15 = vrot.slane %v1126_v33, 5  ;;  %v1441_v55 = vrot.slane %v6249_v2, 5 }
  0x73   : > { %1899 = vrot.lane.b32.xlu1 %v6240_v45, %s5762_s13  ;;  %1897 = vrot.lane.b32.xlu0 %v6180_v43, %s5762_s13  ;;  %v614_v25 = vrot.slane %v612_v10, 7  ;;  %851 = vst [vmem:[#allocation2 + $0x6c] sm:$0xf] %v850_v53  ;;  %v5298_v62 = vpack.c.bf16 %v354_v41, %v354_v41  ;;  %v1131_v3 = vshrl.u32 %v6289_v51, 16  ;;  %v1134_v60 = vshll.u32 %v6289_v51, 16 }
  0x74   : > { %v1144_v9 = vshrl.u32 %v6291_v52, 16  ;;  %v1140_v61 = vshll.u32 %v6291_v52, 16  ;;  %v1114_v10 = vrot.slane %v1113_v42, 4  ;;  %v1124_v11 = vrot.slane %v1123_v49, 4  ;;  %5584 = vmatprep.subr.msk.bf16.mxu0 %vm2335_vm14, %v6303_v13  ;;  %v856_v42 = vld [vmem:[#allocation2 + $0x78] sm:$0xf] }
  0x75   : > { %v617_v39 = vor.u32 %v615_v26, %v614_v25  ;;  %v619_v40 = vrot.slane %v614_v25, 4  ;;  %v5299_v12 = vpack.c.bf16 %v355_v57, %v355_v57  ;;  %v621_v14 = vshrl.u32 %v5298_v62, 16 }
  0x76   : > { %v6319_v17 = vcombine.low %v6243_v50, %v6249_v2  ;;  %v1443_v18 = vrot.slane %v1441_v55, 4  ;;  %v1444_v19 = vrot.slane %v6273_v23, 5  ;;  %v1133_v24 = vrot.slane %v1131_v3, 4 }
  0x77   : > { %1934 = vrot.lane.b32.xlu1 %v6256_v4, %s5766_s30  ;;  %1932 = vrot.lane.b32.xlu0 %v6209_v16, %s5766_s30  ;;  %v618_v21 = vsel %vm6002_vm12, %v610_v35, %v617_v39  ;;  %v854_v56 = vsel %vm6019_vm13, %v619_v40, %v853_v32  ;;  %v1136_v59 = vrot.slane %v1134_v60, 5  ;;  %v6329_v63 = vrot.slane %v1140_v61, 5  ;;  %v356_v35 = vld [vmem:[%s5966_s9 + $0xa0] sm:$0xff]  ;;  %v357_v32 = vld [vmem:[%s5966_s9 + $0xa8] sm:$0xff] }
  0x78   : > { %852 = vst.msk [vmem:[#allocation2 + $0x70] sm:$0xf] %vm224_vm0, %v618_v21  ;;  %855 = vst [vmem:[#allocation2 + $0x74] sm:$0x1] %v854_v56  ;;  %v1146_v25 = vrot.slane %v1144_v9, 4  ;;  %v1129_v2 = vsel %vm5994_vm11, %v1124_v11, %v1128_v15  ;;  %v629_v23 = vshrl.u32 %v5299_v12, 16  ;;  %v1445_v30 = vsel %vm5959_vm7, %v1443_v18, %v1444_v19 }
  0x79   : > { %v623_v26 = vrot.slane %v621_v14, 7  ;;  %v624_v29 = vshll.u32 %v5298_v62, 16  ;;  %v1150_v44 = vshll.u32 %v6327_v20, 16  ;;  %v1137_v58 = vor.u32 %v1136_v59, %v1133_v24  ;;  %v860_v15 = vld [vmem:[#allocation2 + $0x80] sm:$0x1]  ;;  %v359_v24 = vld [vmem:[%s5966_s9 + $0xb8] sm:$0xff] }
  0x7a   : > { %v1147_v54 = vor.u32 %v1146_v25, %v6329_v63  ;;  %v631_v33 = vrot.slane %v629_v23, 7  ;;  %v632_v34 = vshll.u32 %v5299_v12, 16  ;;  %v1448_v41 = vrot.slane %v6291_v52, 5  ;;  %v358_v12 = vld [vmem:[%s5966_s9 + $0xb0] sm:$0xff]  ;;  %v6385_v59 = vld [vmem:[#allocation2 + $0x64] sm:$0xf] }
  0x7b   : > { %1969 = vrot.lane.b32.xlu1 %v6271_v22, %s5764_s25  ;;  %1967 = vrot.lane.b32.xlu0 %v6221_v27, %s5764_s25  ;;  %v626_v37 = vor.u32 %v624_v29, %v623_v26  ;;  %v1152_v40 = vrot.slane %v1150_v44, 5  ;;  %v1138_v49 = vrot.slane %v1137_v58, 4  ;;  %v627_v53 = vrot.slane %v623_v26, 4  ;;  %v863_v29 = vld [vmem:[#allocation2 + $0x84] sm:$0xf] }
  0x7c   : > { %v1148_v21 = vrot.slane %v1147_v54, 4  ;;  %v5300_v56 = vpack.c.bf16 %v356_v35, %v356_v35  ;;  %v634_v57 = vor.u32 %v632_v34, %v631_v33  ;;  %v6359_v62 = vcombine.low %v6289_v51, %v6291_v52 }
  0x7d   : > { %v857_v3 = vsel %vm5988_vm10, %v626_v37, %v856_v42  ;;  %v636_v60 = vrot.slane %v631_v33, 4  ;;  %v5050_v9 = vrot.slane %v6289_v51, 9  ;;  %v1450_v61 = vrot.slane %v1448_v41, 4 }
  0x7e   : > { %858 = vst [vmem:[#allocation2 + $0x78] sm:$0xf] %v857_v3  ;;  %v2337_v11 = vsel %vm2335_vm14, %v6303_v13, 0  ;;  %v1143_v51 = vsel %vm5994_vm11, %v1138_v49, %v6329_v63  ;;  %v1153_v52 = vsel %vm5994_vm11, %v1148_v21, %v1152_v40  ;;  %v638_v13 = vshrl.u32 %v5300_v56, 16 }
  0x7f   : > { %1683 = vrot.lane.b32.xlu1 %v6256_v4, %s5760_s11  ;;  %1681 = vrot.lane.b32.xlu0 %v6209_v16, %s5760_s11  ;;  %v5049_v16 = vrot.slane %v6243_v50, 9  ;;  %v1119_v50 = vsel %vm5994_vm11, %v1114_v10, %v6275_v31  ;;  %v635_v10 = vsel %vm6002_vm12, %v627_v53, %v634_v57  ;;  %v861_v14 = vsel %vm6019_vm13, %v636_v60, %v860_v15  ;;  %v867_v15 = vld [vmem:[#allocation2 + $0x8c] sm:$0x1] }
  0x80   : > { %v6345_v31 = vcombine.low %v1119_v50, %v1129_v2  ;;  %859 = vst.msk [vmem:[#allocation2 + $0x7c] sm:$0xf] %vm224_vm0, %v635_v10  ;;  %862 = vst [vmem:[#allocation2 + $0x80] sm:$0x1] %v861_v14  ;;  %5499 = vmatpush3.bf16.msra.mxu0 %v2337_v11  ;;  %v641_v18 = vshll.u32 %v5300_v56, 16  ;;  %v640_v50 = vrot.slane %v638_v13, 7  ;;  %v5302_v2 = vpack.c.bf16 %v358_v12, %v358_v12 }
  0x81   : > { %v6389_v23 = vcombine.low %v1143_v51, %v1153_v52  ;;  %v5303_v58 = vpack.c.bf16 %v359_v24, %v359_v24  ;;  %v1168_v34 = vshrl.u32 %v6385_v59, 16  ;;  %v1164_v35 = vshll.u32 %v6385_v59, 16  ;;  %v870_v10 = vld [vmem:[#allocation2 + $0x90] sm:$0xf]  ;;  %v361_v11 = vld [vmem:[%s5966_s9 + $0xc8] sm:$0xff] }
  0x82   : > { %v644_v44 = vrot.slane %v640_v50, 4  ;;  %v655_v54 = vshrl.u32 %v5302_v2, 16  ;;  %v658_v56 = vshll.u32 %v5302_v2, 16  ;;  %vm2077_vm1 = vcmask 97280  }
  0x83   : > { %1763 = vrot.lane.b32.xlu1 %v6271_v22, %s5759_s10  ;;  %1761 = vrot.lane.b32.xlu0 %v6221_v27, %s5759_s10  ;;  %v1442_v27 = vsel %vm5959_vm7, %v5049_v16, %v1441_v55  ;;  %v5301_v55 = vpack.c.bf16 %v357_v32, %v357_v32  ;;  %v1451_v16 = vrot.slane %v6327_v20, 5  ;;  %v1449_v20 = vsel %vm5959_vm7, %v5050_v9, %v1448_v41  ;;  %v6415_v9 = vld [vmem:[#allocation2 + $0x68] sm:$0x1] }
  0x84   : > { %v6350_v39 = vcombine.low %v1442_v27, %v1445_v30  ;;  %v360_v27 = vld [vmem:[%s5966_s9 + $0xc0] sm:$0xff]  ;;  %v643_v30 = vor.u32 %v641_v18, %v640_v50  ;;  %v657_v53 = vrot.slane %v655_v54, 7  ;;  %v6413_v3 = vrot.slane %v1164_v35, 5 }
  0x85   : > { %v649_v19 = vshll.u32 %v5301_v55, 16  ;;  %v1452_v33 = vsel %vm5959_vm7, %v1450_v61, %v1451_v16  ;;  %v5304_v42 = vpack.c.bf16 %v360_v27, %v360_v27  ;;  %v1170_v60 = vrot.slane %v1168_v34, 4 }
  0x86   : > { %v864_v41 = vsel %vm5988_vm10, %v643_v30, %v863_v29  ;;  %v6410_v57 = vcombine.low %v1449_v20, %v1452_v33  ;;  %v666_v61 = vshll.u32 %v5303_v58, 16  ;;  %v660_v52 = vor.u32 %v658_v56, %v657_v53  ;;  %v874_v29 = vld [vmem:[#allocation2 + $0x98] sm:$0x1] }
  0x87   : > { %1798 = vrot.lane.b32.xlu1 %v6319_v17, %s5761_s12  ;;  %1796 = vrot.lane.b32.xlu0 %v6240_v45, %s5761_s12  ;;  %865 = vst [vmem:[#allocation2 + $0x84] sm:$0xf] %v864_v41  ;;  %v672_v14 = vshrl.u32 %v5304_v42, 16  ;;  %v1171_v16 = vor.u32 %v1170_v60, %v6413_v3  ;;  %v1174_v18 = vshll.u32 %v6415_v9, 16  ;;  %v675_v30 = vshll.u32 %v5304_v42, 16 }
  0x88   : > { %v871_v24 = vsel %vm5988_vm10, %v660_v52, %v870_v10  ;;  %v877_v42 = vld [vmem:[#allocation2 + $0x9c] sm:$0xf]  ;;  %v934_v10 = vld [vmem:[#allocation2 + $0x74] sm:$0x1]  ;;  %vm2110_vm2 = vcmask 130048   ;;  %vm2143_vm3 = vcmask 162816  }
  0x89   : > { %872 = vst [vmem:[#allocation2 + $0x90] sm:$0xf] %v871_v24  ;;  %v674_v27 = vrot.slane %v672_v14, 7  ;;  %v1172_v34 = vrot.slane %v1171_v16, 4  ;;  %v1176_v35 = vrot.slane %v1174_v18, 5  ;;  %vm2176_vm4 = vcmask 195584  }
  0x8a   : > { %vm2209_vm5 = vcmask 228352   ;;  %vm2242_vm8 = vcmask 261120   ;;  %vm283_vm14 = vcmask 253952  }
  0x8b   : > { %1833 = vrot.lane.b32.xlu1 %v6345_v31, %s5765_s26  ;;  %1831 = vrot.lane.b32.xlu0 %v6256_v4, %s5765_s26  ;;  %v6364_v4 = vld [vmem:[#allocation2 + $0x60] sm:$0xf]  ;;  %290 = vst.msk [vmem:[#allocation3 + $0x20] sm:$0x1] %vm283_vm14, %v5758_v0  ;;  %284 = vst.msk [vmem:[#allocation3 + $0x8] sm:$0x1] %vm283_vm14, %v5758_v0 }
  0x8c   : > { %v1155_v63 = vshrl.u32 %v6364_v4, 16  ;;  %v1158_v25 = vshll.u32 %v6364_v4, 16  ;;  %287 = vst.msk [vmem:[#allocation3 + $0x14] sm:$0x1] %vm283_vm14, %v5758_v0  ;;  %293 = vst.msk [vmem:[#allocation3 + $0x2c] sm:$0x1] %vm283_vm14, %v5758_v0 }
  0x8d   : > { %296 = vst.msk [vmem:[#allocation3 + $0x38] sm:$0x1] %vm283_vm14, %v5758_v0  ;;  %299 = vst.msk [vmem:[#allocation3 + $0x44] sm:$0x1] %vm283_vm14, %v5758_v0 }
  0x8e   : > { %v1157_v32 = vrot.slane %v1155_v63, 4  ;;  %v1160_v40 = vrot.slane %v1158_v25, 5  ;;  %v5305_v63 = vpack.c.bf16 %v361_v11, %v361_v11  ;;  %v661_v25 = vrot.slane %v657_v53, 4  ;;  %302 = vst.msk [vmem:[#allocation3 + $0x50] sm:$0x1] %vm283_vm14, %v5758_v0 }
  0x8f   : > { %1868 = vrot.lane.b32.xlu1 %v6350_v39, %s5763_s16  ;;  %1866 = vrot.lane.b32.xlu0 %v6271_v22, %s5763_s16  ;;  %v646_v22 = vshrl.u32 %v5301_v55, 16  ;;  %v663_v55 = vshrl.u32 %v5303_v58, 16  ;;  %v1458_v53 = vrot.slane %v6415_v9, 5  ;;  %v678_v11 = vrot.slane %v674_v27, 4  ;;  %305 = vst.msk [vmem:[#allocation3 + $0x5c] sm:$0x1] %vm283_vm14, %v5758_v0 }
  0x90   : > { %v1161_v12 = vor.u32 %v1160_v40, %v1157_v32  ;;  %v6443_v32 = vcombine.low %v6364_v4, %v6385_v59  ;;  %v5051_v40 = vrot.slane %v6364_v4, 9  ;;  %v683_v9 = vshll.u32 %v5305_v63, 16  ;;  %308 = vst.msk [vmem:[#allocation3 + $0x68] sm:$0x1] %vm283_vm14, %v5758_v0  ;;  %311 = vst.msk [vmem:[#allocation3 + $0x74] sm:$0x1] %vm283_vm14, %v5758_v0 }
  0x91   : > { %v648_v26 = vrot.slane %v646_v22, 7  ;;  %v665_v13 = vrot.slane %v663_v55, 7  ;;  %v6426_v22 = vld [vmem:[#allocation2 + $0x6c] sm:$0xf]  ;;  %314 = vst.msk [vmem:[#allocation3 + $0x80] sm:$0x1] %vm283_vm14, %v5758_v0 }
  0x92   : > { %v1162_v20 = vrot.slane %v1161_v12, 4  ;;  %v1182_v58 = vshll.u32 %v6426_v22, 16  ;;  %v362_v12 = vld [vmem:[%s5966_s9 + $0xd0] sm:$0xff]  ;;  %317 = vst.msk [vmem:[#allocation3 + $0x8c] sm:$0x1] %vm283_vm14, %v5758_v0 }
  0x93   : > { %1903 = vrot.lane.b32.xlu1 %v6359_v62, %s5762_s13  ;;  %1901 = vrot.lane.b32.xlu0 %v6319_v17, %s5762_s13  ;;  %v651_v37 = vor.u32 %v649_v19, %v648_v26  ;;  %v653_v21 = vrot.slane %v648_v26, 4  ;;  %v6428_v19 = vld [vmem:[#allocation2 + $0x70] sm:$0xf]  ;;  %v668_v50 = vor.u32 %v666_v61, %v665_v13  ;;  %v670_v2 = vrot.slane %v665_v13, 4  ;;  %320 = vst.msk [vmem:[#allocation3 + $0x98] sm:$0x1] %vm283_vm14, %v5758_v0 }
  0x94   : > { %v1455_v26 = vrot.slane %v6385_v59, 5  ;;  %v1192_v54 = vshrl.u32 %v6428_v19, 16  ;;  %v1188_v33 = vshll.u32 %v6428_v19, 16  ;;  %v677_v59 = vor.u32 %v675_v30, %v674_v27  ;;  %323 = vst.msk [vmem:[#allocation3 + $0xa4] sm:$0x1] %vm283_vm14, %v5758_v0 }
  0x95   : > { %v652_v49 = vsel %vm6002_vm12, %v644_v44, %v651_v37  ;;  %v868_v51 = vsel %vm6019_vm13, %v653_v21, %v867_v15  ;;  %v1179_v44 = vshrl.u32 %v6426_v22, 16  ;;  %v680_v37 = vshrl.u32 %v5305_v63, 16  ;;  %326 = vst.msk [vmem:[#allocation3 + $0xb0] sm:$0x1] %vm283_vm14, %v5758_v0  ;;  %329 = vst.msk [vmem:[#allocation3 + $0xbc] sm:$0x1] %vm283_vm14, %v5758_v0 }
  0x96   : > { %866 = vst.msk [vmem:[#allocation2 + $0x88] sm:$0xf] %vm224_vm0, %v652_v49  ;;  %869 = vst [vmem:[#allocation2 + $0x8c] sm:$0x1] %v868_v51  ;;  %v875_v41 = vsel %vm6019_vm13, %v670_v2, %v874_v29  ;;  %v1167_v49 = vsel %vm5994_vm11, %v1162_v20, %v6413_v3  ;;  %v1457_v21 = vrot.slane %v1455_v26, 4  ;;  %v1184_v56 = vrot.slane %v1182_v58, 5 }
  0x97   : > { %1938 = vrot.lane.b32.xlu1 %v6389_v23, %s5766_s30  ;;  %1936 = vrot.lane.b32.xlu0 %v6345_v31, %s5766_s30  ;;  %876 = vst [vmem:[#allocation2 + $0x98] sm:$0x1] %v875_v41  ;;  %v1181_v4 = vrot.slane %v1179_v44, 4  ;;  %v1190_v15 = vrot.slane %v1188_v33, 5  ;;  %v1194_v55 = vrot.slane %v1192_v54, 4  ;;  %v1177_v3 = vsel %vm5994_vm11, %v1172_v34, %v1176_v35  ;;  %v363_v20 = vld [vmem:[%s5966_s9 + $0xd8] sm:$0xff] }
  0x98   : > { %v682_v60 = vrot.slane %v680_v37, 7  ;;  %v878_v61 = vsel %vm5988_vm10, %v677_v59, %v877_v42  ;;  %v1456_v51 = vsel %vm5959_vm7, %v5051_v40, %v1455_v26  ;;  %v6470_v52 = vcombine.low %v1167_v49, %v1177_v3  ;;  %v6489_v33 = vld [vmem:[#allocation2 + $0x78] sm:$0xf]  ;;  %v6496_v37 = vld [vmem:[#allocation2 + $0x7c] sm:$0xf]  ;;  %v364_v59 = vld [vmem:[%s5966_s9 + $0xe0] sm:$0xff] }
  0x99   : > { %879 = vst [vmem:[#allocation2 + $0x9c] sm:$0xf] %v878_v61  ;;  %v1459_v14 = vsel %vm5959_vm7, %v1457_v21, %v1458_v53  ;;  %v1185_v18 = vor.u32 %v1184_v56, %v1181_v4  ;;  %v1195_v24 = vor.u32 %v1194_v55, %v1190_v15  ;;  %v1198_v63 = vshll.u32 %v934_v10, 16  ;;  %v365_v55 = vld [vmem:[%s5966_s9 + $0xe8] sm:$0xff]  ;;  %v366_v61 = vld [vmem:[%s5966_s9 + $0xf0] sm:$0xff] }
  0x9a   : > { %v685_v13 = vor.u32 %v683_v9, %v682_v60  ;;  %v687_v16 = vrot.slane %v682_v60, 4  ;;  %v6484_v26 = vcombine.low %v1456_v51, %v1459_v14  ;;  %v1462_v29 = vrot.slane %v6428_v19, 5  ;;  %332 = vst.msk [vmem:[#allocation3 + $0xc8] sm:$0x1] %vm283_vm14, %v5758_v0  ;;  %335 = vst.msk [vmem:[#allocation3 + $0xd4] sm:$0x1] %vm283_vm14, %v5758_v0 }
  0x9b   : > { %1973 = vrot.lane.b32.xlu1 %v6410_v57, %s5764_s25  ;;  %1971 = vrot.lane.b32.xlu0 %v6350_v39, %s5764_s25  ;;  %v1186_v27 = vrot.slane %v1185_v18, 4  ;;  %v1196_v30 = vrot.slane %v1195_v24, 4  ;;  %v1200_v44 = vrot.slane %v1198_v63, 5  ;;  %v5307_v34 = vpack.c.bf16 %v363_v20, %v363_v20 }
  0x9c   : > { %v6493_v35 = vcombine.low %v6426_v22, %v6428_v19  ;;  %v1465_v41 = vrot.slane %v934_v10, 5  ;;  %v1203_v21 = vshrl.u32 %v6489_v33, 16  ;;  %v1206_v53 = vshll.u32 %v6489_v33, 16 }
  0x9d   : > { %v1191_v19 = vsel %vm5994_vm11, %v1186_v27, %v1190_v15  ;;  %v697_v4 = vshrl.u32 %v5307_v34, 16  ;;  %v1216_v56 = vshrl.u32 %v6496_v37, 16  ;;  %v5308_v9 = vpack.c.bf16 %v364_v59, %v364_v59 }
  0x9e   : > { %v1208_v51 = vrot.slane %v1206_v53, 5  ;;  %v5309_v24 = vpack.c.bf16 %v365_v55, %v365_v55  ;;  %v5310_v20 = vpack.c.bf16 %v366_v61, %v366_v61 }
  0x9f   : > { %1687 = vrot.lane.b32.xlu1 %v6389_v23, %s5760_s11  ;;  %1685 = vrot.lane.b32.xlu0 %v6345_v31, %s5760_s11  ;;  %v669_v31 = vsel %vm6002_vm12, %v661_v25, %v668_v50  ;;  %v5306_v25 = vpack.c.bf16 %v362_v12, %v362_v12  ;;  %v686_v50 = vsel %vm6002_vm12, %v678_v11, %v685_v13  ;;  %v1205_v12 = vrot.slane %v1203_v21, 4  ;;  %v6529_v13 = vld [vmem:[#allocation2 + $0x80] sm:$0x1] }
  0xa0   : > { %873 = vst.msk [vmem:[#allocation2 + $0x94] sm:$0xf] %vm224_vm0, %v669_v31  ;;  %880 = vst.msk [vmem:[#allocation2 + $0xa0] sm:$0xf] %vm224_vm0, %v686_v50  ;;  %v1464_v31 = vrot.slane %v1462_v29, 4  ;;  %v699_v18 = vrot.slane %v697_v4, 7 }
  0xa1   : > { %v689_v58 = vshrl.u32 %v5306_v25, 16  ;;  %v692_v49 = vshll.u32 %v5306_v25, 16  ;;  %v1218_v63 = vrot.slane %v1216_v56, 4  ;;  %v700_v50 = vshll.u32 %v5307_v34, 16  ;;  %v891_v4 = vld [vmem:[#allocation2 + $0xb4] sm:$0xf] }
  0xa2   : > { %v1466_v11 = vsel %vm5959_vm7, %v1464_v31, %v1465_v41  ;;  %v1222_v31 = vshll.u32 %v6529_v13, 16  ;;  %v709_v41 = vshll.u32 %v5308_v9, 16  ;;  %v714_v21 = vshrl.u32 %v5309_v24, 16 }
  0xa3   : > { %1767 = vrot.lane.b32.xlu1 %v6410_v57, %s5759_s10  ;;  %1765 = vrot.lane.b32.xlu0 %v6350_v39, %s5759_s10  ;;  %v881_v39 = vld [vmem:[#allocation2 + $0xa4] sm:$0x1]  ;;  %v691_v42 = vrot.slane %v689_v58, 7  ;;  %v367_v58 = vld [vmem:[%s5966_s9 + $0xf8] sm:$0xff]  ;;  %v702_v34 = vor.u32 %v700_v50, %v699_v18  ;;  %v717_v53 = vshll.u32 %v5309_v24, 16  ;;  %v723_v55 = vshrl.u32 %v5310_v20, 16 }
  0xa4   : > { %v882_v2 = vsel %vm6019_vm13, %v687_v16, %v881_v39  ;;  %v884_v39 = vld [vmem:[#allocation2 + $0xa8] sm:$0xf]  ;;  %v5311_v56 = vpack.c.bf16 %v367_v58, %v367_v58  ;;  %v1224_v50 = vrot.slane %v1222_v31, 5  ;;  %s5769_s9 = smov [#allocation4]  }
  0xa5   : > { %883 = vst [vmem:[#allocation2 + $0xa4] sm:$0x1] %v882_v2  ;;  %v694_v60 = vor.u32 %v692_v49, %v691_v42  ;;  %v695_v25 = vrot.slane %v691_v42, 4  ;;  %v888_v2 = vld [vmem:[#allocation2 + $0xb0] sm:$0x1] }
  0xa6   : > { %v734_v24 = vshll.u32 %v5311_v56, 16 }
  0xa7   : > { %1802 = vrot.lane.b32.xlu1 %v6443_v32, %s5761_s12  ;;  %1800 = vrot.lane.b32.xlu0 %v6359_v62, %s5761_s12  ;;  %v6487_v54 = vpop.permute.xlu1 %1753  ;;  %v885_v27 = vsel %vm5988_vm10, %v694_v60, %v884_v39  ;;  %v1469_v60 = vrot.slane %v6496_v37, 5  ;;  %v726_v39 = vshll.u32 %v5310_v20, 16  ;;  %v898_v20 = vld [vmem:[#allocation2 + $0xc0] sm:$0xf] }
  0xa8   : > { %886 = vst [vmem:[#allocation2 + $0xa8] sm:$0xf] %v885_v27 }
  0xa9   : > { %v6502_v40 = vpop.permute.xlu0 %1673 }
  0xab   : > { %1837 = vrot.lane.b32.xlu1 %v6470_v52, %s5765_s26  ;;  %1835 = vrot.lane.b32.xlu0 %v6389_v23, %s5765_s26  ;;  %v5052_v23 = vrot.slane %v6426_v22, 9  ;;  %v1201_v22 = vsel %vm5994_vm11, %v1196_v30, %v1200_v44  ;;  %v704_v30 = vrot.slane %v699_v18, 4  ;;  %v706_v44 = vshrl.u32 %v5308_v9, 16 }
  0xac   : > { %v6520_v3 = vcombine.low %v1191_v19, %v1201_v22  ;;  %v731_v18 = vshrl.u32 %v5311_v56, 16 }
  0xad   : > { %v1463_v10 = vsel %vm5959_vm7, %v5052_v23, %v1462_v29  ;;  %v1209_v23 = vor.u32 %v1208_v51, %v1205_v12  ;;  %v889_v19 = vsel %vm6019_vm13, %v704_v30, %v888_v2  ;;  %v708_v22 = vrot.slane %v706_v44, 7  ;;  %v6558_v12 = vld [vmem:[#allocation2 + $0x84] sm:$0xf]  ;;  %v6564_v2 = vld [vmem:[#allocation2 + $0x88] sm:$0xf] }
  0xae   : > { %v6537_v29 = vcombine.low %v1463_v10, %v1466_v11  ;;  %890 = vst [vmem:[#allocation2 + $0xb0] sm:$0x1] %v889_v19  ;;  %v716_v10 = vrot.slane %v714_v21, 7  ;;  %v895_v11 = vld [vmem:[#allocation2 + $0xbc] sm:$0x1]  ;;  %v725_v51 = vrot.slane %v723_v55, 7 }
  0xaf   : > { %1872 = vrot.lane.b32.xlu1 %v6484_v26, %s5763_s16  ;;  %1870 = vrot.lane.b32.xlu0 %v6410_v57, %s5763_s16  ;;  %v1212_v57 = vshll.u32 %v6496_v37, 16  ;;  %v711_v9 = vor.u32 %v709_v41, %v708_v22  ;;  %v712_v61 = vrot.slane %v708_v22, 4  ;;  %v1210_v58 = vrot.slane %v1209_v23, 4 }
  0xb0   : > { %v719_v27 = vor.u32 %v717_v53, %v716_v10  ;;  %v721_v44 = vrot.slane %v716_v10, 4  ;;  %v728_v41 = vor.u32 %v726_v39, %v725_v51  ;;  %v733_v19 = vrot.slane %v731_v18, 7 }
  0xb1   : > { %v6531_v16 = vrot.slane %v1212_v57, 5  ;;  %v703_v57 = vsel %vm6002_vm12, %v695_v25, %v702_v34  ;;  %v892_v30 = vsel %vm5988_vm10, %v711_v9, %v891_v4  ;;  %v1227_v31 = vshrl.u32 %v6558_v12, 16 }
  0xb2   : > { %v6518_v15 = vpop.permute.xlu1 %1790  ;;  %887 = vst.msk [vmem:[#allocation2 + $0xac] sm:$0xf] %vm224_vm0, %v703_v57  ;;  %893 = vst [vmem:[#allocation2 + $0xb4] sm:$0xf] %v892_v30  ;;  %v1230_v22 = vshll.u32 %v6558_v12, 16  ;;  %v720_v21 = vsel %vm6002_vm12, %v712_v61, %v719_v27  ;;  %v896_v23 = vsel %vm6019_vm13, %v721_v44, %v895_v11  ;;  %v1240_v53 = vshrl.u32 %v6564_v2, 16 }
  0xb3   : > { %1907 = vrot.lane.b32.xlu1 %v6493_v35, %s5762_s13  ;;  %1905 = vrot.lane.b32.xlu0 %v6443_v32, %s5762_s13  ;;  %v1219_v59 = vor.u32 %v1218_v63, %v6531_v16  ;;  %894 = vst.msk [vmem:[#allocation2 + $0xb8] sm:$0xf] %vm224_vm0, %v720_v21  ;;  %897 = vst [vmem:[#allocation2 + $0xbc] sm:$0x1] %v896_v23  ;;  %v729_v57 = vrot.slane %v725_v51, 4  ;;  %v736_v4 = vor.u32 %v734_v24, %v733_v19 }
  0xb4   : > { %v899_v55 = vsel %vm5988_vm10, %v728_v41, %v898_v20  ;;  %v738_v9 = vrot.slane %v733_v19, 4  ;;  %v902_v61 = vld [vmem:[#allocation2 + $0xc8] sm:$0x1]  ;;  %v6587_v10 = vcombine.low %v6489_v33, %v6496_v37  ;;  %v5053_v11 = vrot.slane %v6489_v33, 9  ;;  %v6610_v19 = vld [vmem:[#allocation2 + $0x8c] sm:$0x1] }
  0xb5   : > { %v6527_v14 = vpop.permute.xlu0 %1788  ;;  %v1220_v34 = vrot.slane %v1219_v59, 4  ;;  %v1236_v59 = vshll.u32 %v6564_v2, 16  ;;  %v1471_v39 = vrot.slane %v1469_v60, 4  ;;  %v1472_v51 = vrot.slane %v6529_v13, 5  ;;  %900 = vst [vmem:[#allocation2 + $0xc0] sm:$0xf] %v899_v55 }
  0xb6   : > { %v1215_v36 = vsel %vm5994_vm11, %v1210_v58, %v6531_v16  ;;  %v1229_v33 = vrot.slane %v1227_v31, 4  ;;  %v1232_v24 = vrot.slane %v1230_v22, 5  ;;  %v1242_v30 = vrot.slane %v1240_v53, 4 }
  0xb7   : > { %1942 = vrot.lane.b32.xlu1 %v6520_v3, %s5766_s30  ;;  %1940 = vrot.lane.b32.xlu0 %v6470_v52, %s5766_s30  ;;  %v1225_v18 = vsel %vm5994_vm11, %v1220_v34, %v1224_v50  ;;  %v6602_v27 = vrot.slane %v1236_v59, 5  ;;  %v737_v13 = vsel %vm6002_vm12, %v729_v57, %v736_v4  ;;  %v903_v44 = vsel %vm6019_vm13, %v738_v9, %v902_v61 }
  0xb8   : > { %901 = vst.msk [vmem:[#allocation2 + $0xc4] sm:$0xf] %vm224_vm0, %v737_v13  ;;  %904 = vst [vmem:[#allocation2 + $0xc8] sm:$0x1] %v903_v44  ;;  %v6617_v16 = vcombine.low %v1215_v36, %v1225_v18  ;;  %v1233_v50 = vor.u32 %v1232_v24, %v1229_v33  ;;  %v1470_v8 = vsel %vm5959_vm7, %v5053_v11, %v1469_v60  ;;  %v1246_v20 = vshll.u32 %v6610_v19, 16 }
  0xb9   : > { %v6543_v42 = vpop.permute.xlu1 %1895  ;;  %v6545_v49 = vpop.permute.xlu0 %1893  ;;  %v1473_v58 = vsel %vm5959_vm7, %v1471_v39, %v1472_v51  ;;  %v1243_v34 = vor.u32 %v1242_v30, %v6602_v27  ;;  %v1998_v31 = vsel %vm1995_vm15, %v5061_v47, %v6502_v40  ;;  %vm2044_vm0 = vcmask 64512   ;;  %v6675_v39 = vld [vmem:[#allocation2 + $0x90] sm:$0xf]  ;;  %v6680_v51 = vld [vmem:[#allocation2 + $0x94] sm:$0xf] }
  0xba   : > { %v6640_v5 = vcombine.low %v1470_v8, %v1473_v58  ;;  %v1234_v6 = vrot.slane %v1233_v50, 4  ;;  %v1476_v47 = vrot.slane %v6564_v2, 5  ;;  %v2046_v40 = vsel %vm2044_vm0, %v1998_v31, %v6487_v54 }
  0xbb   : > { %1977 = vrot.lane.b32.xlu1 %v6537_v29, %s5764_s25  ;;  %1975 = vrot.lane.b32.xlu0 %v6484_v26, %s5764_s25  ;;  %v1244_v23 = vrot.slane %v1243_v34, 4  ;;  %v1248_v53 = vrot.slane %v1246_v20, 5  ;;  %v5054_v54 = vrot.slane %v6558_v12, 9  ;;  %vm2302_vm10 = vcmask 293888  }
  0xbc   : > { %v1478_v61 = vrot.slane %v1476_v47, 4  ;;  %v1251_v24 = vshrl.u32 %v6675_v39, 16  ;;  %v1264_v44 = vshrl.u32 %v6680_v51, 16  ;;  %vm280_vm13 = vcmask 257024  }
  0xbd   : > { %v6560_v63 = vpop.permute.xlu0 %1858  ;;  %v6562_v25 = vpop.permute.xlu1 %1755  ;;  %v1249_v11 = vsel %vm5994_vm11, %v1244_v23, %v1248_v53  ;;  %v1477_v36 = vsel %vm5959_vm7, %v5054_v54, %v1476_v47  ;;  %v1483_v23 = vrot.slane %v6680_v51, 5  ;;  %288 = vst.msk [vmem:[#allocation3 + $0x18] sm:$0xf] %vm280_vm13, %v5758_v0  ;;  %281 = vst.msk [vmem:[#allocation3] sm:$0xf] %vm280_vm13, %v5758_v0 }
  0xbe   : > { %v1266_v34 = vrot.slane %v1264_v44, 4  ;;  %282 = vst.msk [vmem:[#allocation3 + $0x4] sm:$0xf] %vm280_vm13, %v5758_v0  ;;  %285 = vst.msk [vmem:[#allocation3 + $0xc] sm:$0xf] %vm280_vm13, %v5758_v0 }
  0xbf   : > { %1691 = vrot.lane.b32.xlu1 %v6520_v3, %s5760_s11  ;;  %1689 = vrot.lane.b32.xlu0 %v6470_v52, %s5760_s11  ;;  %286 = vst.msk [vmem:[#allocation3 + $0x10] sm:$0xf] %vm280_vm13, %v5758_v0  ;;  %289 = vst.msk [vmem:[#allocation3 + $0x1c] sm:$0xf] %vm280_vm13, %v5758_v0 }
  0xc0   : > { %291 = vst.msk [vmem:[#allocation3 + $0x24] sm:$0xf] %vm280_vm13, %v5758_v0  ;;  %292 = vst.msk [vmem:[#allocation3 + $0x28] sm:$0xf] %vm280_vm13, %v5758_v0 }
  0xc1   : > { %v6581_v52 = vpop.permute.xlu0 %1963  ;;  %v1861_v56 = vpop.permute.xlu1 %1860  ;;  %294 = vst.msk [vmem:[#allocation3 + $0x30] sm:$0xf] %vm280_vm13, %v5758_v0  ;;  %295 = vst.msk [vmem:[#allocation3 + $0x34] sm:$0xf] %vm280_vm13, %v5758_v0 }
  0xc2   : > { %297 = vst.msk [vmem:[#allocation3 + $0x3c] sm:$0xf] %vm280_vm13, %v5758_v0  ;;  %298 = vst.msk [vmem:[#allocation3 + $0x40] sm:$0xf] %vm280_vm13, %v5758_v0 }
  0xc3   : > { %1771 = vrot.lane.b32.xlu1 %v6537_v29, %s5759_s10  ;;  %1769 = vrot.lane.b32.xlu0 %v6484_v26, %s5759_s10  ;;  %300 = vst.msk [vmem:[#allocation3 + $0x48] sm:$0xf] %vm280_vm13, %v5758_v0  ;;  %301 = vst.msk [vmem:[#allocation3 + $0x4c] sm:$0xf] %vm280_vm13, %v5758_v0 }
  0xc4   : > { %303 = vst.msk [vmem:[#allocation3 + $0x54] sm:$0xf] %vm280_vm13, %v5758_v0  ;;  %304 = vst.msk [vmem:[#allocation3 + $0x58] sm:$0xf] %vm280_vm13, %v5758_v0 }
  0xc5   : > { %v6608_v41 = vpop.permute.xlu0 %1965  ;;  %v1826_v26 = vpop.permute.xlu1 %1825  ;;  %306 = vst.msk [vmem:[#allocation3 + $0x60] sm:$0xf] %vm280_vm13, %v5758_v0  ;;  %307 = vst.msk [vmem:[#allocation3 + $0x64] sm:$0xf] %vm280_vm13, %v5758_v0 }
  0xc6   : > { %309 = vst.msk [vmem:[#allocation3 + $0x6c] sm:$0xf] %vm280_vm13, %v5758_v0  ;;  %310 = vst.msk [vmem:[#allocation3 + $0x70] sm:$0xf] %vm280_vm13, %v5758_v0 }
  0xc7   : > { %1806 = vrot.lane.b32.xlu1 %v6587_v10, %s5761_s12  ;;  %1804 = vrot.lane.b32.xlu0 %v6493_v35, %s5761_s12  ;;  %312 = vst.msk [vmem:[#allocation3 + $0x78] sm:$0xf] %vm280_vm13, %v5758_v0  ;;  %313 = vst.msk [vmem:[#allocation3 + $0x7c] sm:$0xf] %vm280_vm13, %v5758_v0 }
  0xc8   : > { %315 = vst.msk [vmem:[#allocation3 + $0x84] sm:$0xf] %vm280_vm13, %v5758_v0  ;;  %316 = vst.msk [vmem:[#allocation3 + $0x88] sm:$0xf] %vm280_vm13, %v5758_v0 }
  0xc9   : > { %v1931_v22 = vpop.permute.xlu1 %1930  ;;  %v1676_v37 = vpop.permute.xlu0 %1675  ;;  %318 = vst.msk [vmem:[#allocation3 + $0x90] sm:$0xf] %vm280_vm13, %v5758_v0  ;;  %319 = vst.msk [vmem:[#allocation3 + $0x94] sm:$0xf] %vm280_vm13, %v5758_v0 }
  0xca   : > { %v2001_v60 = vsel %vm1995_vm15, %v6063_v7, %v1676_v37  ;;  %321 = vst.msk [vmem:[#allocation3 + $0x9c] sm:$0xf] %vm280_vm13, %v5758_v0  ;;  %322 = vst.msk [vmem:[#allocation3 + $0xa0] sm:$0xf] %vm280_vm13, %v5758_v0 }
  0xcb   : > { %v2048_v21 = vsel %vm2044_vm0, %v2001_v60, %v6562_v25  ;;  %1841 = vrot.lane.b32.xlu1 %v6617_v16, %s5765_s26  ;;  %1839 = vrot.lane.b32.xlu0 %v6520_v3, %s5765_s26  ;;  %v2079_v25 = vsel %vm2077_vm1, %v2046_v40, %v6527_v14  ;;  %v6663_v14 = vcombine.low %v6558_v12, %v6564_v2  ;;  %v6713_v60 = vld [vmem:[#allocation2 + $0x9c] sm:$0xf] }
  0xcc   : > { %v2081_v7 = vsel %vm2077_vm1, %v2048_v21, %v6518_v15  ;;  %v1275_v53 = vshrl.u32 %v6713_v60, 16  ;;  %324 = vst.msk [vmem:[#allocation3 + $0xa8] sm:$0xf] %vm280_vm13, %v5758_v0  ;;  %325 = vst.msk [vmem:[#allocation3 + $0xac] sm:$0xf] %vm280_vm13, %v5758_v0 }
  0xcd   : > { %v2114_v59 = vsel %vm2110_vm2, %v2081_v7, %v1826_v26  ;;  %v6650_v57 = vpop.permute.xlu1 %1677  ;;  %v1824_v3 = vpop.permute.xlu0 %1823  ;;  %v1260_v26 = vshll.u32 %v6680_v51, 16  ;;  %v6715_v7 = vld [vmem:[#allocation2 + $0xa0] sm:$0xf]  ;;  %327 = vst.msk [vmem:[#allocation3 + $0xb4] sm:$0xf] %vm280_vm13, %v5758_v0 }
  0xce   : > { %v2112_v4 = vsel %vm2110_vm2, %v2079_v25, %v1824_v3  ;;  %v2147_v55 = vsel %vm2143_vm3, %v2114_v59, %v1861_v56  ;;  %v1278_v25 = vshll.u32 %v6713_v60, 16  ;;  %v1284_v54 = vshll.u32 %v6715_v7, 16  ;;  %328 = vst.msk [vmem:[#allocation3 + $0xb8] sm:$0xf] %vm280_vm13, %v5758_v0  ;;  %330 = vst.msk [vmem:[#allocation3 + $0xc0] sm:$0xf] %vm280_vm13, %v5758_v0 }
  0xcf   : > { %v2145_v15 = vsel %vm2143_vm3, %v2112_v4, %v6560_v63  ;;  %1876 = vrot.lane.b32.xlu1 %v6640_v5, %s5763_s16  ;;  %1874 = vrot.lane.b32.xlu0 %v6537_v29, %s5763_s16  ;;  %v2180_v9 = vsel %vm2176_vm4, %v2147_v55, %v6543_v42  ;;  %v1239_v63 = vsel %vm5994_vm11, %v1234_v6, %v6602_v27  ;;  %v1479_v29 = vrot.slane %v6610_v19, 5 }
  0xd0   : > { %v2178_v56 = vsel %vm2176_vm4, %v2145_v15, %v6545_v49  ;;  %v2213_v42 = vsel %vm2209_vm5, %v2180_v9, %v1931_v22  ;;  %v6691_v33 = vcombine.low %v1239_v63, %v1249_v11  ;;  %v1254_v27 = vshll.u32 %v6675_v39, 16  ;;  %v943_v22 = vld [vmem:[#allocation2 + $0x98] sm:$0x1]  ;;  %331 = vst.msk [vmem:[#allocation3 + $0xc4] sm:$0xf] %vm280_vm13, %v5758_v0 }
  0xd1   : > { %v6677_v12 = vpop.permute.xlu1 %1679  ;;  %v1929_v2 = vpop.permute.xlu0 %1928  ;;  %v2246_v30 = vsel %vm2242_vm8, %v2213_v42, %v6608_v41  ;;  %v1480_v13 = vsel %vm5959_vm7, %v1478_v61, %v1479_v29  ;;  %v1253_v41 = vrot.slane %v1251_v24, 4  ;;  %v1262_v58 = vrot.slane %v1260_v26, 5  ;;  %333 = vst.msk [vmem:[#allocation3 + $0xcc] sm:$0xf] %vm280_vm13, %v5758_v0  ;;  %334 = vst.msk [vmem:[#allocation3 + $0xd0] sm:$0xf] %vm280_vm13, %v5758_v0 }
  0xd2   : > { %v2211_v49 = vsel %vm2209_vm5, %v2178_v56, %v1929_v2  ;;  %v6707_v50 = vcombine.low %v1477_v36, %v1480_v13  ;;  %v1256_v8 = vrot.slane %v1254_v27, 5  ;;  %v1270_v6 = vshll.u32 %v943_v22, 16  ;;  %v946_v27 = vld [vmem:[#allocation2 + $0xa4] sm:$0x1] }
  0xd3   : > { %1911 = vrot.lane.b32.xlu1 %v6663_v14, %s5762_s13  ;;  %1909 = vrot.lane.b32.xlu0 %v6587_v10, %s5762_s13  ;;  %v2244_v18 = vsel %vm2242_vm8, %v2211_v49, %v6581_v52  ;;  %v1267_v21 = vor.u32 %v1266_v34, %v1262_v58  ;;  %v1288_v55 = vshrl.u32 %v6715_v7, 16  ;;  %v5055_v61 = vrot.slane %v6675_v39, 9 }
  0xd4   : > { %5500 = vmatprep.mubr.msk.bf16.mxu0 %vm2302_vm10, %v2244_v18  ;;  %v1257_v37 = vor.u32 %v1256_v8, %v1253_v41  ;;  %v1272_v4 = vrot.slane %v1270_v6, 5  ;;  %v1485_v56 = vrot.slane %v1483_v23, 4  ;;  %v1486_v63 = vrot.slane %v943_v22, 5 }
  0xd5   : > { %v1760_v19 = vpop.permute.xlu1 %1759  ;;  %5501 = vmatmul.mubr.msk.bf16.vlgmr.msra.gmra.mrb[0].mxu0 %vm2302_vm10, %v2246_v30  ;;  %v1758_v52 = vpop.permute.xlu0 %1757  ;;  %v1268_v3 = vrot.slane %v1267_v21, 4  ;;  %v1277_v11 = vrot.slane %v1275_v53, 4  ;;  %v1280_v29 = vrot.slane %v1278_v25, 5  ;;  %v1286_v49 = vrot.slane %v1284_v54, 5 }
  0xd6   : > { %v1258_v59 = vrot.slane %v1257_v37, 4  ;;  %v1290_v36 = vrot.slane %v1288_v55, 4  ;;  %v1484_v30 = vsel %vm5959_vm7, %v5055_v61, %v1483_v23  ;;  %v5056_v55 = vrot.slane %v6713_v60, 9 }
  0xd7   : > { %1946 = vrot.lane.b32.xlu1 %v6691_v33, %s5766_s30  ;;  %1944 = vrot.lane.b32.xlu0 %v6617_v16, %s5766_s30  ;;  %v1273_v42 = vsel %vm5994_vm11, %v1268_v3, %v1272_v4  ;;  %v1281_v13 = vor.u32 %v1280_v29, %v1277_v11  ;;  %v1493_v61 = vrot.slane %v946_v27, 5 }
  0xd8   : > { %v1263_v2 = vsel %vm5994_vm11, %v1258_v59, %v1262_v58  ;;  %v1291_v8 = vor.u32 %v1290_v36, %v1286_v49  ;;  %v1294_v58 = vshll.u32 %v946_v27, 16  ;;  %v8235_v46 = vld [vmem:[#allocation3 + $0xcc] sm:$0xf] }
  0xd9   : > { %v1795_v20 = vpop.permute.xlu1 %1794  ;;  %v1793_v31 = vpop.permute.xlu0 %1792  ;;  %v6753_v44 = vcombine.low %v1263_v2, %v1273_v42 }
  0xdb   : > { %1981 = vrot.lane.b32.xlu1 %v6707_v50, %s5764_s25  ;;  %1979 = vrot.lane.b32.xlu0 %v6640_v5, %s5764_s25 }
  0xdd   : > { %v1830_v47 = vpop.permute.xlu1 %1829  ;;  %v1828_v40 = vpop.permute.xlu0 %1827 }
  0xdf   : > { %1695 = vrot.lane.b32.xlu1 %v6691_v33, %s5760_s11  ;;  %1693 = vrot.lane.b32.xlu0 %v6617_v16, %s5760_s11  ;;  %v6733_v16 = vcombine.low %v6675_v39, %v6680_v51  ;;  %v2004_v39 = vsel %vm1995_vm15, %v6045_v48, %v6650_v57  ;;  %v2007_v51 = vsel %vm1995_vm15, %v6073_v28, %v6677_v12 }
  0xe0   : > { %v2052_v26 = vsel %vm2044_vm0, %v2007_v51, %v1760_v19  ;;  %v2050_v41 = vsel %vm2044_vm0, %v2004_v39, %v1758_v52  ;;  %v1282_v52 = vrot.slane %v1281_v13, 4  ;;  %v949_v13 = vld [vmem:[#allocation2 + $0xb0] sm:$0x1] }
  0xe1   : > { %v1865_v15 = vpop.permute.xlu1 %1864  ;;  %v1863_v9 = vpop.permute.xlu0 %1862  ;;  %v2085_v48 = vsel %vm2077_vm1, %v2052_v26, %v1795_v20  ;;  %v2083_v57 = vsel %vm2077_vm1, %v2050_v41, %v1793_v31  ;;  %v1490_v20 = vrot.slane %v6715_v7, 5 }
  0xe2   : > { %v2118_v12 = vsel %vm2110_vm2, %v2085_v48, %v1830_v47  ;;  %v2116_v22 = vsel %vm2110_vm2, %v2083_v57, %v1828_v40  ;;  %v1292_v47 = vrot.slane %v1291_v8, 4  ;;  %v1296_v40 = vrot.slane %v1294_v58, 5  ;;  %v6819_v57 = vld [vmem:[#allocation2 + $0xb4] sm:$0xf] }
  0xe3   : > { %1775 = vrot.lane.b32.xlu1 %v6707_v50, %s5759_s10  ;;  %1773 = vrot.lane.b32.xlu0 %v6640_v5, %s5759_s10  ;;  %v1487_v5 = vsel %vm5959_vm7, %v1485_v56, %v1486_v63  ;;  %v2151_v21 = vsel %vm2143_vm3, %v2118_v12, %v1865_v15  ;;  %v2149_v19 = vsel %vm2143_vm3, %v2116_v22, %v1863_v9  ;;  %v1492_v9 = vrot.slane %v1490_v20, 4  ;;  %v6790_v56 = vld [vmem:[#allocation2 + $0xa8] sm:$0xf]  ;;  %v948_v63 = vld [vmem:[#allocation2 + $0xac] sm:$0xf] }
  0xe4   : > { %v6761_v37 = vcombine.low %v1484_v30, %v1487_v5  ;;  %v1287_v54 = vsel %vm5994_vm11, %v1282_v52, %v1286_v49  ;;  %v1297_v15 = vsel %vm5994_vm11, %v1292_v47, %v1296_v40  ;;  %v1299_v11 = vshrl.u32 %v6790_v56, 16  ;;  %v6821_v12 = vld [vmem:[#allocation2 + $0xb8] sm:$0xf] }
  0xe5   : > { %v1900_v18 = vpop.permute.xlu1 %1899  ;;  %v1898_v24 = vpop.permute.xlu0 %1897  ;;  %v1302_v29 = vshll.u32 %v6790_v56, 16  ;;  %v1491_v2 = vsel %vm5959_vm7, %v5056_v55, %v1490_v20  ;;  %v1494_v42 = vsel %vm5959_vm7, %v1492_v9, %v1493_v61  ;;  %v1312_v49 = vshrl.u32 %v948_v63, 16 }
  0xe6   : > { %v2184_v31 = vsel %vm2176_vm4, %v2151_v21, %v1900_v18  ;;  %v2182_v6 = vsel %vm2176_vm4, %v2149_v19, %v1898_v24  ;;  %v1308_v36 = vshll.u32 %v948_v63, 16  ;;  %v6813_v27 = vcombine.low %v1491_v2, %v1494_v42 }
  0xe7   : > { %1810 = vrot.lane.b32.xlu1 %v6733_v16, %s5761_s12  ;;  %1808 = vrot.lane.b32.xlu0 %v6663_v14, %s5761_s12  ;;  %v1301_v30 = vrot.slane %v1299_v11, 4  ;;  %v1304_v5 = vrot.slane %v1302_v29, 5  ;;  %v1314_v51 = vrot.slane %v1312_v49, 4  ;;  %v1318_v58 = vshll.u32 %v949_v13, 16 }
  0xe8   : > { %v1310_v39 = vrot.slane %v1308_v36, 5  ;;  %v1497_v22 = vrot.slane %v948_v63, 5  ;;  %v1323_v52 = vshrl.u32 %v6819_v57, 16  ;;  %v1332_v47 = vshll.u32 %v6821_v12, 16 }
  0xe9   : > { %v1935_v34 = vpop.permute.xlu1 %1934  ;;  %v1933_v28 = vpop.permute.xlu0 %1932  ;;  %v1305_v8 = vor.u32 %v1304_v5, %v1301_v30  ;;  %v1320_v19 = vrot.slane %v1318_v58, 5 }
  0xea   : > { %v2217_v23 = vsel %vm2209_vm5, %v2184_v31, %v1935_v34  ;;  %v2215_v53 = vsel %vm2209_vm5, %v2182_v6, %v1933_v28  ;;  %v1315_v48 = vor.u32 %v1314_v51, %v1310_v39  ;;  %v1326_v31 = vshll.u32 %v6819_v57, 16 }
  0xeb   : > { %1845 = vrot.lane.b32.xlu1 %v6753_v44, %s5765_s26  ;;  %1843 = vrot.lane.b32.xlu0 %v6691_v33, %s5765_s26  ;;  %v6782_v33 = vcombine.low %v6713_v60, %v6715_v7  ;;  %v6801_v60 = vcombine.low %v1287_v54, %v1297_v15  ;;  %v1306_v21 = vrot.slane %v1305_v8, 4  ;;  %v1336_v6 = vshrl.u32 %v6821_v12, 16  ;;  %v952_v54 = vld [vmem:[#allocation2 + $0xbc] sm:$0x1] }
  0xec   : > { %v1316_v20 = vrot.slane %v1315_v48, 4  ;;  %v1328_v15 = vrot.slane %v1326_v31, 5  ;;  %v1334_v9 = vrot.slane %v1332_v47, 5  ;;  %v1342_v49 = vshll.u32 %v952_v54, 16 }
  0xed   : > { %v1970_v25 = vpop.permute.xlu1 %1969  ;;  %v1968_v59 = vpop.permute.xlu0 %1967  ;;  %v1338_v61 = vrot.slane %v1336_v6, 4  ;;  %v5058_v6 = vrot.slane %v6819_v57, 9 }
  0xee   : > { %v2250_v3 = vsel %vm2242_vm8, %v2217_v23, %v1970_v25  ;;  %v2248_v4 = vsel %vm2242_vm8, %v2215_v53, %v1968_v59  ;;  %v5057_v53 = vrot.slane %v6790_v56, 9  ;;  %v1499_v25 = vrot.slane %v1497_v22, 4 }
  0xef   : > { %1880 = vrot.lane.b32.xlu1 %v6761_v37, %s5763_s16  ;;  %1878 = vrot.lane.b32.xlu0 %v6707_v50, %s5763_s16  ;;  %v1500_v59 = vrot.slane %v949_v13, 5  ;;  %v1321_v55 = vsel %vm5994_vm11, %v1316_v20, %v1320_v19  ;;  %v1339_v13 = vor.u32 %v1338_v61, %v1334_v9 }
  0xf0   : > { %5504 = vmatprep.mubr.msk.bf16.mxu0 %vm2302_vm10, %v2248_v4  ;;  %v1325_v4 = vrot.slane %v1323_v52, 4  ;;  %v1498_v2 = vsel %vm5959_vm7, %v5057_v53, %v1497_v22 }
  0xf1   : > { %5505 = vmatmul.mubr.msk.bf16.gmra.mrb[4].mxu0 %vm2302_vm10, %v2250_v3  ;;  %v6793_v50 = vpop.permute.xlu1 %1683  ;;  %v6795_v7 = vpop.permute.xlu0 %1681  ;;  %v1311_v3 = vsel %vm5994_vm11, %v1306_v21, %v1310_v39 }
  0xf2   : > { %v6857_v42 = vcombine.low %v1311_v3, %v1321_v55  ;;  %v1329_v5 = vor.u32 %v1328_v15, %v1325_v4 }
  0xf3   : > { %1915 = vrot.lane.b32.xlu1 %v6782_v33, %s5762_s13  ;;  %1913 = vrot.lane.b32.xlu0 %v6733_v16, %s5762_s13 }
  0xf5   : > { %v1764_v18 = vpop.permute.xlu1 %1763  ;;  %v1762_v24 = vpop.permute.xlu0 %1761 }
  0xf7   : > { %1950 = vrot.lane.b32.xlu1 %v6801_v60, %s5766_s30  ;;  %1948 = vrot.lane.b32.xlu0 %v6753_v44, %s5766_s30 }
  0xf9   : > { %v1799_v26 = vpop.permute.xlu1 %1798  ;;  %v1797_v41 = vpop.permute.xlu0 %1796 }
  0xfb   : > { %1985 = vrot.lane.b32.xlu1 %v6813_v27, %s5764_s25  ;;  %1983 = vrot.lane.b32.xlu0 %v6761_v37, %s5764_s25 }
  0xfd   : > { %v1834_v34 = vpop.permute.xlu1 %1833  ;;  %v1832_v28 = vpop.permute.xlu0 %1831 }
  0xff   : > { %1699 = vrot.lane.b32.xlu1 %v6801_v60, %s5760_s11  ;;  %1697 = vrot.lane.b32.xlu0 %v6753_v44, %s5760_s11  ;;  %v6837_v44 = vcombine.low %v6790_v56, %v948_v63  ;;  %v2013_v56 = vsel %vm1995_vm15, %v6240_v45, %v6793_v50  ;;  %v2010_v63 = vsel %vm1995_vm15, %v6180_v43, %v6795_v7 }
 0x100   : > { %v2056_v36 = vsel %vm2044_vm0, %v2013_v56, %v1764_v18  ;;  %v2054_v30 = vsel %vm2044_vm0, %v2010_v63, %v1762_v24  ;;  %v1344_v24 = vrot.slane %v1342_v49, 5 }
 0x101   : > { %v1869_v40 = vpop.permute.xlu1 %1868  ;;  %v1867_v23 = vpop.permute.xlu0 %1866  ;;  %v2089_v45 = vsel %vm2077_vm1, %v2056_v36, %v1799_v26  ;;  %v2087_v50 = vsel %vm2077_vm1, %v2054_v30, %v1797_v41  ;;  %v1504_v26 = vrot.slane %v6821_v12, 5  ;;  %v955_v30 = vld [vmem:[#allocation2 + $0xc8] sm:$0x1] }
 0x102   : > { %v2122_v39 = vsel %vm2110_vm2, %v2089_v45, %v1834_v34  ;;  %v2120_v51 = vsel %vm2110_vm2, %v2087_v50, %v1832_v28  ;;  %v1330_v34 = vrot.slane %v1329_v5, 4  ;;  %v1340_v28 = vrot.slane %v1339_v13, 4  ;;  %v6923_v5 = vld [vmem:[#allocation2 + $0xcc] sm:$0xf]  ;;  %v6929_v13 = vld [vmem:[#allocation2 + $0xd0] sm:$0xf] }
 0x103   : > { %1779 = vrot.lane.b32.xlu1 %v6813_v27, %s5759_s10  ;;  %1777 = vrot.lane.b32.xlu0 %v6761_v37, %s5759_s10  ;;  %v1501_v37 = vsel %vm5959_vm7, %v1499_v25, %v1500_v59  ;;  %v2155_v58 = vsel %vm2143_vm3, %v2122_v39, %v1869_v40  ;;  %v2153_v18 = vsel %vm2143_vm3, %v2120_v51, %v1867_v23  ;;  %v1506_v47 = vrot.slane %v1504_v26, 4  ;;  %v954_v59 = vld [vmem:[#allocation2 + $0xc4] sm:$0xf] }
 0x104   : > { %v6865_v8 = vcombine.low %v1498_v2, %v1501_v37  ;;  %v1507_v40 = vrot.slane %v952_v54, 5  ;;  %v1335_v23 = vsel %vm5994_vm11, %v1330_v34, %v1334_v9  ;;  %v1345_v53 = vsel %vm5994_vm11, %v1340_v28, %v1344_v24 }
 0x105   : > { %v1904_v11 = vpop.permute.xlu1 %1903  ;;  %v1902_v29 = vpop.permute.xlu0 %1901  ;;  %v1505_v3 = vsel %vm5959_vm7, %v5058_v6, %v1504_v26  ;;  %v1523_v15 = vshrl.u32 %v954_v59, 16  ;;  %v1519_v9 = vshll.u32 %v954_v59, 16  ;;  %v1544_v51 = vshrl.u32 %v6923_v5, 16 }
 0x106   : > { %v2188_v41 = vsel %vm2176_vm4, %v2155_v58, %v1904_v11  ;;  %v2186_v48 = vsel %vm2176_vm4, %v2153_v18, %v1902_v29  ;;  %v1508_v4 = vsel %vm5959_vm7, %v1506_v47, %v1507_v40  ;;  %v1547_v58 = vshll.u32 %v6923_v5, 16  ;;  %v6961_v40 = vld [vmem:[#allocation2 + $0xd4] sm:$0x1] }
 0x107   : > { %1814 = vrot.lane.b32.xlu1 %v6837_v44, %s5761_s12  ;;  %1812 = vrot.lane.b32.xlu0 %v6782_v33, %s5761_s12  ;;  %v6917_v29 = vcombine.low %v1505_v3, %v1508_v4  ;;  %v1521_v56 = vrot.slane %v1519_v9, 5  ;;  %v1525_v63 = vrot.slane %v1523_v15, 4  ;;  %v1538_v18 = vrot.slane %v954_v59, 5 }
 0x108   : > { %v1557_v24 = vshrl.u32 %v6929_v13, 16  ;;  %v1553_v26 = vshll.u32 %v6929_v13, 16 }
 0x109   : > { %v1939_v43 = vpop.permute.xlu1 %1938  ;;  %v1937_v7 = vpop.permute.xlu0 %1936  ;;  %v1526_v50 = vor.u32 %v1525_v63, %v1521_v56 }
 0x10a   : > { %v2221_v22 = vsel %vm2209_vm5, %v2188_v41, %v1939_v43  ;;  %v2219_v21 = vsel %vm2209_vm5, %v2186_v48, %v1937_v7  ;;  %v1529_v43 = vshll.u32 %v955_v30, 16  ;;  %v6951_v6 = vrot.slane %v1553_v26, 5 }
 0x10b   : > { %1849 = vrot.lane.b32.xlu1 %v6857_v42, %s5765_s26  ;;  %1847 = vrot.lane.b32.xlu0 %v6801_v60, %s5765_s26  ;;  %v6886_v60 = vcombine.low %v6819_v57, %v6821_v12  ;;  %v953_v12 = vld [vmem:[#allocation2 + $0xc0] sm:$0xf]  ;;  %v6903_v57 = vcombine.low %v1335_v23, %v1345_v53  ;;  %v1527_v48 = vrot.slane %v1526_v50, 4  ;;  %v6953_v47 = vrot.slane %v1557_v24, 4 }
 0x10c   : > { %v1510_v55 = vshrl.u32 %v953_v12, 16  ;;  %v1513_v54 = vshll.u32 %v953_v12, 16  ;;  %v1531_v34 = vrot.slane %v1529_v43, 5 }
 0x10d   : > { %v1974_v19 = vpop.permute.xlu1 %1973  ;;  %v1972_v52 = vpop.permute.xlu0 %1971 }
 0x10e   : > { %v2254_v20 = vsel %vm2242_vm8, %v2221_v22, %v1974_v19  ;;  %v2252_v31 = vsel %vm2242_vm8, %v2219_v21, %v1972_v52  ;;  %v1512_v2 = vrot.slane %v1510_v55, 4  ;;  %v1515_v37 = vrot.slane %v1513_v54, 5 }
 0x10f   : > { %1884 = vrot.lane.b32.xlu1 %v6865_v8, %s5763_s16  ;;  %1882 = vrot.lane.b32.xlu0 %v6813_v27, %s5763_s16  ;;  %v5059_v21 = vrot.slane %v953_v12, 9  ;;  %v6947_v19 = vrot.slane %v1544_v51, 4  ;;  %v6949_v52 = vrot.slane %v1547_v58, 5  ;;  %v1532_v53 = vsel %vm5994_vm11, %v1527_v48, %v1531_v34 }
 0x110   : > { %5508 = vmatprep.mubr.msk.bf16.mxu0 %vm2302_vm10, %v2252_v31  ;;  %v1516_v45 = vor.u32 %v1515_v37, %v1512_v2  ;;  %v1541_v31 = vrot.slane %v955_v30, 5  ;;  %v1563_v54 = vshll.u32 %v6961_v40, 16  ;;  %v1572_v30 = vrot.slane %v6929_v13, 5 }
 0x111   : > { %5509 = vmatmul.mubr.msk.bf16.gmra.mrb[8].mxu0 %vm2302_vm10, %v2254_v20  ;;  %v6895_v25 = vpop.permute.xlu1 %1687  ;;  %v6897_v27 = vpop.permute.xlu0 %1685  ;;  %v1540_v20 = vrot.slane %v1538_v18, 4  ;;  %v1539_v55 = vsel %vm5959_vm7, %v5059_v21, %v1538_v18  ;;  %v5060_v48 = vrot.slane %v6923_v5, 9  ;;  %v3065_v21 = vld [vmem:[#allocation3] sm:$0xf] }
 0x112   : > { %v1517_v41 = vrot.slane %v1516_v45, 4  ;;  %v2019_v15 = vsel %vm1995_vm15, %v6359_v62, %v6895_v25  ;;  %v2016_v9 = vsel %vm1995_vm15, %v6319_v17, %v6897_v27 }
 0x113   : > { %1919 = vrot.lane.b32.xlu1 %v6886_v60, %s5762_s13  ;;  %1917 = vrot.lane.b32.xlu0 %v6837_v44, %s5762_s13 }
 0x114   : > { %v1522_v23 = vsel %vm5994_vm11, %v1517_v41, %v1521_v56  ;;  %v5112_v41 = vcombine.low %v6923_v5, %v6929_v13  ;;  %v3066_v5 = vld [vmem:[#allocation3 + $0x4] sm:$0xf] }
 0x115   : > { %v6909_v61 = vpop.permute.xlu1 %1767  ;;  %v6911_v11 = vpop.permute.xlu0 %1765  ;;  %v6990_v2 = vcombine.low %v1522_v23, %v1532_v53  ;;  %v3067_v53 = vld [vmem:[#allocation3 + $0x8] sm:$0x1] }
 0x116   : > { %v2060_v17 = vsel %vm2044_vm0, %v2019_v15, %v6909_v61  ;;  %v2058_v62 = vsel %vm2044_vm0, %v2016_v9, %v6911_v11  ;;  %v1565_v11 = vrot.slane %v1563_v54, 5 }
 0x117   : > { %1954 = vrot.lane.b32.xlu1 %v6903_v57, %s5766_s30  ;;  %1952 = vrot.lane.b32.xlu0 %v6857_v42, %s5766_s30 }
 0x119   : > { %v6919_v49 = vpop.permute.xlu1 %1802  ;;  %v6921_v36 = vpop.permute.xlu0 %1800 }
 0x11a   : > { %v2093_v25 = vsel %vm2077_vm1, %v2060_v17, %v6919_v49  ;;  %v2091_v27 = vsel %vm2077_vm1, %v2058_v62, %v6921_v36 }
 0x11b   : > { %1989 = vrot.lane.b32.xlu1 %v6917_v29, %s5764_s25  ;;  %1987 = vrot.lane.b32.xlu0 %v6865_v8, %s5764_s25 }
 0x11d   : > { %v6931_v7 = vpop.permute.xlu1 %1837  ;;  %v6933_v39 = vpop.permute.xlu0 %1835 }
 0x11e   : > { %v2126_v45 = vsel %vm2110_vm2, %v2093_v25, %v6931_v7  ;;  %v2124_v61 = vsel %vm2110_vm2, %v2091_v27, %v6933_v39  ;;  %v3553_v27 = vrot.slane %v3066_v5, 5 }
 0x11f   : > { %1703 = vrot.lane.b32.xlu1 %v6903_v57, %s5760_s11  ;;  %1701 = vrot.lane.b32.xlu0 %v6857_v42, %s5760_s11  ;;  %v6959_v42 = vcombine.low %v953_v12, %v954_v59  ;;  %v1542_v12 = vsel %vm5959_vm7, %v1540_v20, %v1541_v31  ;;  %v1560_v59 = vor.u32 %v6953_v47, %v6951_v6  ;;  %v3129_v20 = vshll.u32 %v3066_v5, 16  ;;  %s5698_s11 = sshll.u32 %s5769_s9, 4  ;;  %s5699_s11 = int_to_ptr.vmem [resolvable:$false] %s5698_s11 }
 0x120   : > { %v7077_v50 = vcombine.low %v1539_v55, %v1542_v12  ;;  %v1573_v55 = vsel %vm5959_vm7, %v5060_v48, %v1572_v30 }
 0x121   : > { %v6943_v28 = vpop.permute.xlu1 %1872  ;;  %v6945_v22 = vpop.permute.xlu0 %1870  ;;  %v1561_v43 = vrot.slane %v1560_v59, 4  ;;  %v3139_v59 = vshll.u32 %v3067_v53, 16 }
 0x122   : > { %v2159_v49 = vsel %vm2143_vm3, %v2126_v45, %v6943_v28  ;;  %v2157_v36 = vsel %vm2143_vm3, %v2124_v61, %v6945_v22  ;;  %v1574_v28 = vrot.slane %v1572_v30, 4  ;;  %v1575_v22 = vrot.slane %v6961_v40, 5 }
 0x123   : > { %1783 = vrot.lane.b32.xlu1 %v6917_v29, %s5759_s10  ;;  %1781 = vrot.lane.b32.xlu0 %v6865_v8, %s5759_s10  ;;  %v1550_v8 = vor.u32 %v6949_v52, %v6947_v19  ;;  %v1566_v34 = vsel %vm5994_vm11, %v1561_v43, %v1565_v11  ;;  %v3120_v19 = vshrl.u32 %v3065_v21, 16  ;;  %v3123_v52 = vshll.u32 %v3065_v21, 16 }
 0x124   : > { %v3141_v62 = vrot.slane %v3139_v59, 5  ;;  %v5167_v30 = vrot.slane %v3065_v21, 9  ;;  %v3556_v45 = vrot.slane %v3067_v53, 5  ;;  %v3555_v61 = vrot.slane %v3553_v27, 4 }
 0x125   : > { %v6967_v3 = vpop.permute.xlu1 %1907  ;;  %v6969_v4 = vpop.permute.xlu0 %1905  ;;  %v1551_v63 = vrot.slane %v1550_v8, 4  ;;  %v3122_v47 = vrot.slane %v3120_v19, 4  ;;  %v3125_v23 = vrot.slane %v3123_v52, 5  ;;  %v1576_v8 = vsel %vm5959_vm7, %v1574_v28, %v1575_v22 }
 0x126   : > { %v2192_v7 = vsel %vm2176_vm4, %v2159_v49, %v6967_v3  ;;  %v2190_v39 = vsel %vm2176_vm4, %v2157_v36, %v6969_v4  ;;  %v3131_v3 = vrot.slane %v3129_v20, 5  ;;  %v3554_v11 = vsel %vm5959_vm7, %v5167_v30, %v3553_v27 }
 0x127   : > { %1818 = vrot.lane.b32.xlu1 %v6959_v42, %s5761_s12  ;;  %1816 = vrot.lane.b32.xlu0 %v6886_v60, %s5761_s12  ;;  %v1556_v0 = vsel %vm5994_vm11, %v1551_v63, %v6951_v6  ;;  %v3126_v12 = vor.u32 %v3125_v23, %v3122_v47  ;;  %v3557_v49 = vsel %vm5959_vm7, %v3555_v61, %v3556_v45  ;;  %s5700_s12 = scalar_lea.vmem %s5699_s11, 8192 }
 0x128   : > { %v5113_v40 = vcombine.low %v1556_v0, %v1566_v34 }
 0x129   : > { %v1943_v37 = vpop.permute.xlu1 %1942  ;;  %v1941_v56 = vpop.permute.xlu0 %1940  ;;  %v3127_v17 = vrot.slane %v3126_v12, 4 }
 0x12a   : > { %v2223_v51 = vsel %vm2209_vm5, %v2190_v39, %v1941_v56 }
 0x12b   : > { %1853 = vrot.lane.b32.xlu1 %v6990_v2, %s5765_s26  ;;  %1851 = vrot.lane.b32.xlu0 %v6903_v57, %s5765_s26  ;;  %v2225_v57 = vsel %vm2209_vm5, %v2192_v7, %v1943_v37  ;;  %v3132_v25 = vsel %vm5994_vm11, %v3127_v17, %v3131_v3  ;;  %v5217_v7 = vcombine.low %v3554_v11, %v3557_v49 }
 0x12d   : > { %v1978_v58 = vpop.permute.xlu1 %1977  ;;  %v1976_v18 = vpop.permute.xlu0 %1975 }
 0x12e   : > { %v2258_v24 = vsel %vm2242_vm8, %v2225_v57, %v1978_v58  ;;  %v2256_v26 = vsel %vm2242_vm8, %v2223_v51, %v1976_v18 }
 0x12f   : > { %1888 = vrot.lane.b32.xlu1 %v7077_v50, %s5763_s16  ;;  %1886 = vrot.lane.b32.xlu0 %v6917_v29, %s5763_s16  ;;  %v3133_v29 = vshrl.u32 %v3066_v5, 16  ;;  %s5344_s16 = sshll.u32 %s5822_s22, 12 }
 0x130   : > { %5512 = vmatprep.mubr.msk.bf16.mxu0 %vm2302_vm10, %v2256_v26 }
 0x131   : > { %5513 = vmatmul.mubr.msk.bf16.gmra.mrb[12].mxu0 %vm2302_vm10, %v2258_v24  ;;  %v1692_v31 = vpop.permute.xlu1 %1691  ;;  %v1690_v6 = vpop.permute.xlu0 %1689  ;;  %v3135_v4 = vrot.slane %v3133_v29, 4 }
 0x132   : > { %v2022_v18 = vsel %vm1995_vm15, %v6443_v32, %v1690_v6 }
 0x133   : > { %1923 = vrot.lane.b32.xlu1 %v5112_v41, %s5762_s13  ;;  %1921 = vrot.lane.b32.xlu0 %v6959_v42, %s5762_s13  ;;  %v3136_v9 = vor.u32 %v3135_v4, %v3131_v3  ;;  %v5114_v42 = vcombine.low %v1573_v55, %v1576_v8 }
 0x135   : > { %v1772_v54 = vpop.permute.xlu1 %1771  ;;  %v1770_v15 = vpop.permute.xlu0 %1769  ;;  %v3137_v13 = vrot.slane %v3136_v9, 4 }
 0x136   : > { %v2062_v26 = vsel %vm2044_vm0, %v2022_v18, %v1770_v15 }
 0x137   : > { %1958 = vrot.lane.b32.xlu1 %v5113_v40, %s5766_s30  ;;  %1956 = vrot.lane.b32.xlu0 %v6990_v2, %s5766_s30  ;;  %v3142_v63 = vsel %vm5994_vm11, %v3137_v13, %v3141_v62  ;;  %s8628_s30 = scalar_lea.hbm %s8685_s5, %s5344_s16 }
 0x138   : > { %v5201_v2 = vcombine.low %v3132_v25, %v3142_v63 }
 0x139   : > { %v1807_v37 = vpop.permute.xlu1 %1806  ;;  %v1805_v56 = vpop.permute.xlu0 %1804 }
 0x13a   : > { %v2095_v48 = vsel %vm2077_vm1, %v2062_v26, %v1805_v56 }
 0x13b   : > { %1993 = vrot.lane.b32.xlu1 %v5114_v42, %s5764_s25  ;;  %1991 = vrot.lane.b32.xlu0 %v7077_v50, %s5764_s25  ;;  %v2025_v50 = vsel %vm1995_vm15, %v6493_v35, %v1692_v31 }
 0x13c   : > { %v2064_v24 = vsel %vm2044_vm0, %v2025_v50, %v1772_v54 }
 0x13d   : > { %v1842_v36 = vpop.permute.xlu1 %1841  ;;  %v1840_v43 = vpop.permute.xlu0 %1839  ;;  %v2097_v41 = vsel %vm2077_vm1, %v2064_v24, %v1807_v37 }
 0x13e   : > { %v2130_v28 = vsel %vm2110_vm2, %v2097_v41, %v1842_v36  ;;  %v2128_v22 = vsel %vm2110_vm2, %v2095_v48, %v1840_v43 }
 0x13f   : > { %3827 = vrot.lane.b32.xlu1 %v5201_v2, %s5764_s25 }
 0x141   : > { %v1877_v39 = vpop.permute.xlu1 %1876  ;;  %v1875_v57 = vpop.permute.xlu0 %1874 }
 0x142   : > { %v2163_v21 = vsel %vm2143_vm3, %v2130_v28, %v1877_v39  ;;  %v2161_v35 = vsel %vm2143_vm3, %v2128_v22, %v1875_v57 }
 0x143   : > { %3907 = vrot.lane.b32.xlu1 %v5217_v7, %s5767_s8 }
 0x145   : > { %v1912_v51 = vpop.permute.xlu1 %1911  ;;  %v1910_v58 = vpop.permute.xlu0 %1909 }
 0x146   : > { %v2196_v32 = vsel %vm2176_vm4, %v2163_v21, %v1912_v51  ;;  %v2194_v5 = vsel %vm2176_vm4, %v2161_v35, %v1910_v58 }
 0x149   : > { %v1947_v0 = vpop.permute.xlu1 %1946  ;;  %v1945_v34 = vpop.permute.xlu0 %1944 }
 0x14a   : > { %v2229_v19 = vsel %vm2209_vm5, %v2196_v32, %v1947_v0  ;;  %v2227_v52 = vsel %vm2209_vm5, %v2194_v5, %v1945_v34 }
 0x14d   : > { %v1982_v20 = vpop.permute.xlu1 %1981  ;;  %v1980_v29 = vpop.permute.xlu0 %1979 }
 0x14e   : > { %v2262_v31 = vsel %vm2242_vm8, %v2229_v19, %v1982_v20  ;;  %v2260_v6 = vsel %vm2242_vm8, %v2227_v52, %v1980_v29 }
 0x14f   : > { %5516 = vmatprep.mubr.msk.bf16.mxu0 %vm2302_vm10, %v2260_v6 }
 0x150   : > { %5517 = vmatmul.mubr.msk.bf16.gmra.mrb[16].mxu0 %vm2302_vm10, %v2262_v31 }
 0x151   : > { %v1696_v47 = vpop.permute.xlu1 %1695  ;;  %v1694_v23 = vpop.permute.xlu0 %1693 }
 0x152   : > { %v2031_v9 = vsel %vm1995_vm15, %v6663_v14, %v1696_v47  ;;  %v2028_v17 = vsel %vm1995_vm15, %v6587_v10, %v1694_v23 }
 0x155   : > { %v1776_v40 = vpop.permute.xlu1 %1775  ;;  %v1774_v53 = vpop.permute.xlu0 %1773 }
 0x156   : > { %v2068_v62 = vsel %vm2044_vm0, %v2031_v9, %v1776_v40  ;;  %v2066_v42 = vsel %vm2044_vm0, %v2028_v17, %v1774_v53 }
 0x159   : > { %v1811_v3 = vpop.permute.xlu1 %1810  ;;  %v1809_v4 = vpop.permute.xlu0 %1808 }
 0x15a   : > { %v2101_v13 = vsel %vm2077_vm1, %v2068_v62, %v1811_v3  ;;  %v2099_v25 = vsel %vm2077_vm1, %v2066_v42, %v1809_v4 }
 0x15d   : > { %v1846_v55 = vpop.permute.xlu1 %1845  ;;  %v1844_v8 = vpop.permute.xlu0 %1843 }
 0x15e   : > { %v2134_v56 = vsel %vm2110_vm2, %v2101_v13, %v1846_v55  ;;  %v2132_v63 = vsel %vm2110_vm2, %v2099_v25, %v1844_v8  ;;  %v7236_v25 = vld [vmem:[%s8682_s2] ss:$0 sm:$0xff] }
 0x161   : > { %v1881_v12 = vpop.permute.xlu1 %1880  ;;  %v1879_v59 = vpop.permute.xlu0 %1878 }
 0x162   : > { %v2167_v30 = vsel %vm2143_vm3, %v2134_v56, %v1881_v12  ;;  %v2165_v14 = vsel %vm2143_vm3, %v2132_v63, %v1879_v59 }
 0x165   : > { %v1916_v54 = vpop.permute.xlu1 %1915  ;;  %v1914_v15 = vpop.permute.xlu0 %1913 }
 0x166   : > { %v2200_v10 = vsel %vm2176_vm4, %v2167_v30, %v1916_v54  ;;  %v2198_v45 = vsel %vm2176_vm4, %v2165_v14, %v1914_v15 }
 0x169   : > { %v1951_v27 = vpop.permute.xlu1 %1950  ;;  %v1949_v37 = vpop.permute.xlu0 %1948 }
 0x16a   : > { %v2233_v61 = vsel %vm2209_vm5, %v2200_v10, %v1951_v27  ;;  %v2231_v2 = vsel %vm2209_vm5, %v2198_v45, %v1949_v37 }
 0x16d   : > { %v1986_v11 = vpop.permute.xlu1 %1985  ;;  %v1984_v49 = vpop.permute.xlu0 %1983 }
 0x16e   : > { %v2266_v36 = vsel %vm2242_vm8, %v2233_v61, %v1986_v11  ;;  %v2264_v43 = vsel %vm2242_vm8, %v2231_v2, %v1984_v49 }
 0x16f   : > { %5520 = vmatprep.mubr.msk.bf16.mxu0 %vm2302_vm10, %v2264_v43 }
 0x170   : > { %5521 = vmatmul.mubr.msk.bf16.gmra.mrb[20].mxu0 %vm2302_vm10, %v2266_v36 }
 0x171   : > { %v1700_v7 = vpop.permute.xlu1 %1699  ;;  %v1698_v39 = vpop.permute.xlu0 %1697 }
 0x172   : > { %v2037_v34 = vsel %vm1995_vm15, %v6782_v33, %v1700_v7  ;;  %v2034_v28 = vsel %vm1995_vm15, %v6733_v16, %v1698_v39 }
 0x175   : > { %v1780_v57 = vpop.permute.xlu1 %1779  ;;  %v1778_v51 = vpop.permute.xlu0 %1777 }
 0x176   : > { %v2072_v22 = vsel %vm2044_vm0, %v2037_v34, %v1780_v57  ;;  %v2070_v21 = vsel %vm2044_vm0, %v2034_v28, %v1778_v51 }
 0x179   : > { %v1815_v58 = vpop.permute.xlu1 %1814  ;;  %v1813_v50 = vpop.permute.xlu0 %1812 }
 0x17a   : > { %v2105_v35 = vsel %vm2077_vm1, %v2072_v22, %v1815_v58  ;;  %v2103_v32 = vsel %vm2077_vm1, %v2070_v21, %v1813_v50 }
 0x17d   : > { %v1850_v18 = vpop.permute.xlu1 %1849  ;;  %v1848_v24 = vpop.permute.xlu0 %1847 }
 0x17e   : > { %v2138_v52 = vsel %vm2110_vm2, %v2105_v35, %v1850_v18  ;;  %v2136_v20 = vsel %vm2110_vm2, %v2103_v32, %v1848_v24 }
 0x181   : > { %v1885_v26 = vpop.permute.xlu1 %1884  ;;  %v1883_v41 = vpop.permute.xlu0 %1882 }
 0x182   : > { %v2171_v29 = vsel %vm2143_vm3, %v2138_v52, %v1885_v26  ;;  %v2169_v33 = vsel %vm2143_vm3, %v2136_v20, %v1883_v41 }
 0x185   : > { %v1920_v48 = vpop.permute.xlu1 %1919  ;;  %v1918_v0 = vpop.permute.xlu0 %1917 }
 0x186   : > { %v2204_v16 = vsel %vm2176_vm4, %v2171_v29, %v1920_v48  ;;  %v2202_v31 = vsel %vm2176_vm4, %v2169_v33, %v1918_v0 }
 0x189   : > { %v1955_v5 = vpop.permute.xlu1 %1954  ;;  %v1953_v19 = vpop.permute.xlu0 %1952 }
 0x18a   : > { %v2237_v6 = vsel %vm2209_vm5, %v2204_v16, %v1955_v5  ;;  %v2235_v47 = vsel %vm2209_vm5, %v2202_v31, %v1953_v19 }
 0x18d   : > { %v1990_v23 = vpop.permute.xlu1 %1989  ;;  %v1988_v40 = vpop.permute.xlu0 %1987 }
 0x18e   : > { %v2270_v53 = vsel %vm2242_vm8, %v2237_v6, %v1990_v23  ;;  %v2268_v3 = vsel %vm2242_vm8, %v2235_v47, %v1988_v40  ;;  %v2960_v6 = vld [vmem:[#allocation3 + $0x18] sm:$0xf] }
 0x18f   : > { %5524 = vmatprep.mubr.msk.bf16.mxu0 %vm2302_vm10, %v2268_v3  ;;  %v2951_v3 = vld [vmem:[#allocation3 + $0xc] sm:$0xf] }
 0x190   : > { %5525 = vmatmul.mubr.msk.bf16.gmra.mrb[24].mxu0 %vm2302_vm10, %v2270_v53 }
 0x191   : > { %v1704_v4 = vpop.permute.xlu1 %1703  ;;  %v1702_v55 = vpop.permute.xlu0 %1701 }
 0x192   : > { %v2043_v27 = vsel %vm1995_vm15, %v6886_v60, %v1704_v4  ;;  %v2040_v37 = vsel %vm1995_vm15, %v6837_v44, %v1702_v55  ;;  %vm7264_vm15 = vmand %vm280_vm13, %vm789_vm9  ;;  %vm4166_vm9 = vcmask 785408  }
 0x195   : > { %v1784_v8 = vpop.permute.xlu1 %1783  ;;  %v1782_v12 = vpop.permute.xlu0 %1781 }
 0x196   : > { %v2076_v56 = vsel %vm2044_vm0, %v2043_v27, %v1784_v8  ;;  %v2074_v30 = vsel %vm2044_vm0, %v2040_v37, %v1782_v12  ;;  %vm7270_vm0 = vmand %vm283_vm14, %vm464_vm6  ;;  %vm4133_vm6 = vcmask 523264  }
 0x199   : > { %v1819_v59 = vpop.permute.xlu1 %1818  ;;  %v1817_v54 = vpop.permute.xlu0 %1816 }
 0x19a   : > { %v2109_v14 = vsel %vm2077_vm1, %v2076_v56, %v1819_v59  ;;  %v2107_v2 = vsel %vm2077_vm1, %v2074_v30, %v1817_v54  ;;  %v2964_v59 = vld [vmem:[#allocation3 + $0x20] sm:$0x1] }
 0x19d   : > { %v1854_v15 = vpop.permute.xlu1 %1853  ;;  %v1852_v9 = vpop.permute.xlu0 %1851 }
 0x19e   : > { %v2142_v11 = vsel %vm2110_vm2, %v2109_v14, %v1854_v15  ;;  %v2140_v44 = vsel %vm2110_vm2, %v2107_v2, %v1852_v9  ;;  %v5665_v2 = vld [vmem:[%s8683_s3] sm:$0xff]  }
 0x1a1   : > { %v1889_v17 = vpop.permute.xlu1 %1888  ;;  %v1887_v62 = vpop.permute.xlu0 %1886 }
 0x1a2   : > { %v2175_v43 = vsel %vm2143_vm3, %v2142_v11, %v1889_v17  ;;  %v2173_v51 = vsel %vm2143_vm3, %v2140_v44, %v1887_v62  ;;  %v5667_v11 = vld [vmem:[%s8683_s3 + $0x48] sm:$0xff]  }
 0x1a5   : > { %v1924_v42 = vpop.permute.xlu1 %1923  ;;  %v1922_v13 = vpop.permute.xlu0 %1921 }
 0x1a6   : > { %v2208_v58 = vsel %vm2176_vm4, %v2175_v43, %v1924_v42  ;;  %v2206_v24 = vsel %vm2176_vm4, %v2173_v51, %v1922_v13  ;;  %v2957_v13 = vld [vmem:[#allocation3 + $0x14] sm:$0x1] }
 0x1a8   : > { %v5502_v63 = vpop.f32.mrb[0].mxu0 }
 0x1a9   : > { %v2382_v10 = vadd.f32 %v5502_v63, %v7236_v25  ;;  %v1959_v45 = vpop.permute.xlu1 %1958  ;;  %v2373_v61 = vpop.f32.mrb[1].mxu0 }
 0x1aa   : > { %v2374_v60 = vadd.f32 %v7236_v25, %v2373_v61  ;;  %v1957_v49 = vpop.permute.xlu0 %1956  ;;  %v5503_v36 = vpop.f32.mrb[2].mxu0  ;;  %v2241_v41 = vsel %vm2209_vm5, %v2208_v58, %v1959_v45  ;;  %v5664_v61 = vld [vmem:[%s8683_s3 + $0x40] sm:$0xff]   ;;  %v5669_v58 = vld [vmem:[%s8683_s3 + $0x50] sm:$0xff]  }
 0x1ab   : > { %v2502_v7 = vmax.f32 %v2382_v10, 0.0  ;;  %v2385_v39 = vadd.f32 %v5503_v36, %v7236_v25  ;;  %v2376_v57 = vpop.f32.mrb[3].mxu0  ;;  %v2239_v28 = vsel %vm2209_vm5, %v2206_v24, %v1957_v49  ;;  %5364 = vmatprep.subr.bf16.mxu0 %v5664_v61  ;;  %5568 = vmatprep.subr.bf16.mxu1 %v5664_v61 }
 0x1ac   : > { %v2500_v50 = vmax.f32 %v2374_v60, 0.0  ;;  %v2377_v18 = vadd.f32 %v7236_v25, %v2376_v57  ;;  %5365 = vmatpush3.bf16.msra.mxu0 %v5665_v2  ;;  %5576 = vmatpush3.bf16.msra.mxu1 %v5665_v2  ;;  %v2967_v2 = vld [vmem:[#allocation3 + $0x24] sm:$0xf] }
 0x1ad   : > { %v5314_v26 = vpack.c.bf16 %v2502_v7, %v2502_v7  ;;  %v2503_v48 = vmax.f32 %v2385_v39, 0.0  ;;  %v1994_v0 = vpop.permute.xlu1 %1993  ;;  %5366 = vmatprep.subr.bf16.mxu0 %v5667_v11  ;;  %v5668_v39 = vld [vmem:[%s8683_s3 + $0x8] sm:$0xff]   ;;  %5569 = vmatprep.subr.bf16.mxu1 %v5667_v11 }
 0x1ae   : > { %v5312_v34 = vpack.c.bf16 %v2500_v50, %v2500_v50  ;;  %v2501_v22 = vmax.f32 %v2377_v18, 0.0  ;;  %v2274_v21 = vsel %vm2242_vm8, %v2241_v41, %v1994_v0  ;;  %v1992_v35 = vpop.permute.xlu0 %1991 }
 0x1af   : > { %v2646_v32 = vshrl.u32 %v5314_v26, 16  ;;  %v5315_v5 = vpack.c.bf16 %v2503_v48, %v2503_v48  ;;  %v2272_v19 = vsel %vm2242_vm8, %v2239_v28, %v1992_v35  ;;  %v2649_v33 = vshll.u32 %v5314_v26, 16 }
 0x1b0   : > { %v2629_v52 = vshrl.u32 %v5312_v34, 16  ;;  %v5313_v20 = vpack.c.bf16 %v2501_v22, %v2501_v22  ;;  %5528 = vmatprep.mubr.msk.bf16.mxu0 %vm2302_vm10, %v2272_v19  ;;  %v2632_v23 = vshll.u32 %v5312_v34, 16  ;;  %5367 = vmatpush3.bf16.msra.mxu0 %v5668_v39 }
 0x1b1   : > { %v2648_v29 = vrot.slane %v2646_v32, 7  ;;  %v2654_v16 = vshrl.u32 %v5315_v5, 16  ;;  %5529 = vmatmul.mubr.msk.bf16.gmra.mrb[28].mxu0 %vm2302_vm10, %v2274_v21  ;;  %v2657_v55 = vshll.u32 %v5315_v5, 16  ;;  %5577 = vmatpush3.bf16.msra.mxu1 %v5668_v39 }
 0x1b2   : > { %v2631_v47 = vrot.slane %v2629_v52, 7  ;;  %v2637_v40 = vshrl.u32 %v5313_v20, 16  ;;  %v2640_v15 = vshll.u32 %v5313_v20, 16  ;;  %5368 = vmatprep.subr.bf16.mxu0 %v5669_v58  ;;  %5570 = vmatprep.subr.bf16.mxu1 %v5669_v58 }
 0x1b3   : > { %v2651_v53 = vor.u32 %v2649_v33, %v2648_v29  ;;  %v2656_v4 = vrot.slane %v2654_v16, 7  ;;  %v2652_v9 = vrot.slane %v2648_v29, 4 }
 0x1b4   : > { %v2634_v8 = vor.u32 %v2632_v23, %v2631_v47  ;;  %v2639_v54 = vrot.slane %v2637_v40, 7  ;;  %v2635_v27 = vrot.slane %v2631_v47, 4 }
 0x1b5   : > { %v2961_v17 = vsel %vm7264_vm15, %v2651_v53, %v2960_v6  ;;  %v2659_v62 = vor.u32 %v2657_v55, %v2656_v4  ;;  %v2661_v42 = vrot.slane %v2656_v4, 4 }
 0x1b6   : > { %2962 = vst [vmem:[#allocation3 + $0x18] sm:$0xf] %v2961_v17  ;;  %v2952_v37 = vsel %vm7264_vm15, %v2634_v8, %v2951_v3  ;;  %v2642_v56 = vor.u32 %v2640_v15, %v2639_v54  ;;  %v2644_v63 = vrot.slane %v2639_v54, 4 }
 0x1b7   : > { %2953 = vst [vmem:[#allocation3 + $0xc] sm:$0xf] %v2952_v37  ;;  %v2660_v30 = vsel %vm6002_vm12, %v2652_v9, %v2659_v62  ;;  %v2965_v14 = vsel %vm7270_vm0, %v2661_v42, %v2964_v59 }
 0x1b8   : > { %2963 = vst.msk [vmem:[#allocation3 + $0x1c] sm:$0xf] %vm280_vm13, %v2660_v30  ;;  %2966 = vst [vmem:[#allocation3 + $0x20] sm:$0x1] %v2965_v14  ;;  %v2643_v10 = vsel %vm6002_vm12, %v2635_v27, %v2642_v56  ;;  %v2958_v45 = vsel %vm7270_vm0, %v2644_v63, %v2957_v13  ;;  %v2974_v63 = vld [vmem:[#allocation3 + $0x30] sm:$0xf] }
 0x1b9   : > { %2954 = vst.msk [vmem:[#allocation3 + $0x10] sm:$0xf] %vm280_vm13, %v2643_v10  ;;  %2959 = vst [vmem:[#allocation3 + $0x14] sm:$0x1] %v2958_v45 }
 0x1bd   : > { %v7297_v60 = vld [vmem:[#allocation3 + $0x18] sm:$0xf] }
 0x1be   : > { %v5169_v50 = vrot.slane %v7297_v60, 9  ;;  %v7325_v26 = vld [vmem:[#allocation3 + $0xc] sm:$0xf]  ;;  %v3168_v4 = vshrl.u32 %v7297_v60, 16  ;;  %v3171_v9 = vshll.u32 %v7297_v60, 16 }
 0x1bf   : > { %v7299_v49 = vld [vmem:[#allocation3 + $0x1c] sm:$0xf]  ;;  %v7301_v36 = vld [vmem:[#allocation3 + $0x20] sm:$0x1]  ;;  %v5168_v52 = vrot.slane %v7325_v26, 9 }
 0x1c0   : > { %v7305_v44 = vcombine.low %v7297_v60, %v7299_v49  ;;  %v7307_v43 = vld [vmem:[#allocation3 + $0x10] sm:$0xf]  ;;  %v3567_v7 = vrot.slane %v7299_v49, 5  ;;  %v7313_v57 = vld [vmem:[#allocation3 + $0x14] sm:$0x1]  ;;  %v3570_v24 = vrot.slane %v7301_v36, 5 }
 0x1c1   : > { %v3560_v51 = vrot.slane %v7307_v43, 5  ;;  %v7329_v0 = vcombine.low %v7325_v26, %v7307_v43  ;;  %v3563_v22 = vrot.slane %v7313_v57, 5  ;;  %v3181_v59 = vshrl.u32 %v7299_v49, 16 }
 0x1c2   : > { %3944 = vrot.lane.b32.xlu1 %v7305_v44, %s5768_s7  ;;  %4015 = vrot.lane.b32.xlu0 %v7305_v44, %s5767_s8  ;;  %v3569_v18 = vrot.slane %v3567_v7, 4  ;;  %v3568_v34 = vsel %vm5959_vm7, %v5169_v50, %v3567_v7  ;;  %v3177_v42 = vshll.u32 %v7299_v49, 16  ;;  %v3157_v56 = vshrl.u32 %v7307_v43, 16 }
 0x1c3   : > { %v3562_v41 = vrot.slane %v3560_v51, 4  ;;  %v3561_v23 = vsel %vm5959_vm7, %v5168_v52, %v3560_v51  ;;  %v3170_v45 = vrot.slane %v3168_v4, 4  ;;  %v3183_v7 = vrot.slane %v3181_v59, 4  ;;  %v2978_v51 = vld [vmem:[#allocation3 + $0x38] sm:$0x1]  ;;  %v5676_v59 = vld [vmem:[%s8683_s3 + $0x68] sm:$0xff]  }
 0x1c4   : > { %v5506_v48 = vpop.f32.mrb[4].mxu0  ;;  %v3571_v28 = vsel %vm5959_vm7, %v3569_v18, %v3570_v24  ;;  %v7360_v50 = vrot.slane %v3177_v42, 5  ;;  %v5670_v18 = vld [vmem:[%s8683_s3 + $0x10] sm:$0xff]  }
 0x1c5   : > { %v2398_v21 = vadd.f32 %v5506_v48, %v7236_v25  ;;  %v2389_v35 = vpop.f32.mrb[5].mxu0  ;;  %v7337_v32 = vcombine.low %v3568_v34, %v3571_v28  ;;  %v3564_v20 = vsel %vm5959_vm7, %v3562_v41, %v3563_v22  ;;  %v2971_v28 = vld [vmem:[#allocation3 + $0x2c] sm:$0x1]  ;;  %5369 = vmatpush3.bf16.msra.mxu0 %v5670_v18  ;;  %5578 = vmatpush3.bf16.msra.mxu1 %v5670_v18 }
 0x1c6   : > { %v2390_v5 = vadd.f32 %v7236_v25, %v2389_v35  ;;  %v5507_v19 = vpop.f32.mrb[6].mxu0  ;;  %3942 = vrot.lane.b32.xlu1 %v7329_v0, %s5768_s7  ;;  %v5218_v3 = vcombine.low %v3561_v23, %v3564_v20  ;;  %v3173_v20 = vrot.slane %v3171_v9, 5 }
 0x1c7   : > { %v2506_v29 = vmax.f32 %v2398_v21, 0.0  ;;  %v2401_v33 = vadd.f32 %v5507_v19, %v7236_v25  ;;  %v2392_v16 = vpop.f32.mrb[7].mxu0  ;;  %3982 = vrot.lane.b32.xlu0 %v7337_v32, %s5764_s25 }
 0x1c8   : > { %v2504_v6 = vmax.f32 %v2390_v5, 0.0  ;;  %v2393_v47 = vadd.f32 %v7236_v25, %v2392_v16  ;;  %v3144_v16 = vshrl.u32 %v7325_v26, 16  ;;  %v3174_v4 = vor.u32 %v3173_v20, %v3170_v45 }
 0x1c9   : > { %v5318_v40 = vpack.c.bf16 %v2506_v29, %v2506_v29  ;;  %v2507_v53 = vmax.f32 %v2401_v33, 0.0  ;;  %v3153_v29 = vshll.u32 %v7307_v43, 16  ;;  %v5672_v33 = vld [vmem:[%s8683_s3 + $0x58] sm:$0xff]  }
 0x1ca   : > { %v5316_v55 = vpack.c.bf16 %v2504_v6, %v2504_v6  ;;  %v2505_v8 = vmax.f32 %v2393_v47, 0.0  ;;  %3911 = vrot.lane.b32.xlu1 %v7337_v32, %s5767_s8  ;;  %v3147_v6 = vshll.u32 %v7325_v26, 16  ;;  %v5673_v43 = vld [vmem:[%s8683_s3 + $0x18] sm:$0xff]   ;;  %5370 = vmatprep.subr.bf16.mxu0 %v5672_v33  ;;  %v3187_v26 = vshll.u32 %v7301_v36, 16 }
 0x1cb   : > { %v2680_v54 = vshrl.u32 %v5318_v40, 16  ;;  %v5319_v15 = vpack.c.bf16 %v2507_v53, %v2507_v53  ;;  %3980 = vrot.lane.b32.xlu0 %v5218_v3, %s5764_s25  ;;  %v2683_v27 = vshll.u32 %v5318_v40, 16  ;;  %v5674_v40 = vld [vmem:[%s8683_s3 + $0x60] sm:$0xff]   ;;  %v3184_v53 = vor.u32 %v3183_v7, %v7360_v50  ;;  %5571 = vmatprep.subr.bf16.mxu1 %v5672_v33 }
 0x1cc   : > { %v2663_v17 = vshrl.u32 %v5316_v55, 16  ;;  %v5317_v62 = vpack.c.bf16 %v2505_v8, %v2505_v8  ;;  %v2666_v14 = vshll.u32 %v5316_v55, 16  ;;  %5371 = vmatpush3.bf16.msra.mxu0 %v5673_v43  ;;  %5579 = vmatpush3.bf16.msra.mxu1 %v5673_v43  ;;  %v7396_v55 = vrot.slane %v3153_v29, 5 }
 0x1cd   : > { %v2682_v13 = vrot.slane %v2680_v54, 7  ;;  %v2688_v37 = vshrl.u32 %v5319_v15, 16  ;;  %v2691_v60 = vshll.u32 %v5319_v15, 16  ;;  %v3159_v8 = vrot.slane %v3157_v56, 4  ;;  %5372 = vmatprep.subr.bf16.mxu0 %v5674_v40  ;;  %5572 = vmatprep.subr.bf16.mxu1 %v5674_v40 }
 0x1ce   : > { %v2665_v30 = vrot.slane %v2663_v17, 7  ;;  %v2671_v10 = vshrl.u32 %v5317_v62, 16  ;;  %3909 = vrot.lane.b32.xlu1 %v5218_v3, %s5767_s8  ;;  %v2674_v58 = vshll.u32 %v5317_v62, 16  ;;  %v5675_v3 = vld [vmem:[%s8683_s3 + $0x20] sm:$0xff]   ;;  %v3146_v54 = vrot.slane %v3144_v16, 4 }
 0x1cf   : > { %v2685_v61 = vor.u32 %v2683_v27, %v2682_v13  ;;  %v2690_v11 = vrot.slane %v2688_v37, 7  ;;  %v2686_v24 = vrot.slane %v2682_v13, 4  ;;  %v3149_v15 = vrot.slane %v3147_v6, 5  ;;  %v5677_v27 = vld [vmem:[%s8683_s3 + $0x28] sm:$0xff]  }
 0x1d0   : > { %v2668_v39 = vor.u32 %v2666_v14, %v2665_v30  ;;  %v2673_v49 = vrot.slane %v2671_v10, 7  ;;  %v2669_v22 = vrot.slane %v2665_v30, 4  ;;  %v3185_v9 = vrot.slane %v3184_v53, 4  ;;  %5373 = vmatpush3.bf16.msra.mxu0 %v5675_v3  ;;  %5580 = vmatpush3.bf16.msra.mxu1 %v5675_v3 }
 0x1d1   : > { %v2975_v41 = vsel %vm7264_vm15, %v2685_v61, %v2974_v63  ;;  %v2693_v48 = vor.u32 %v2691_v60, %v2690_v11  ;;  %v2695_v34 = vrot.slane %v2690_v11, 4  ;;  %v3189_v36 = vrot.slane %v3187_v26, 5  ;;  %5374 = vmatprep.subr.bf16.mxu0 %v5676_v59  ;;  %5573 = vmatprep.subr.bf16.mxu1 %v5676_v59  ;;  %v5678_v63 = vld [vmem:[%s8683_s3 + $0x70] sm:$0xff]  }
 0x1d2   : > { %2976 = vst [vmem:[#allocation3 + $0x30] sm:$0xf] %v2975_v41  ;;  %v2968_v21 = vsel %vm7264_vm15, %v2668_v39, %v2967_v2  ;;  %v2676_v35 = vor.u32 %v2674_v58, %v2673_v49  ;;  %v2678_v5 = vrot.slane %v2673_v49, 4  ;;  %v3175_v42 = vrot.slane %v3174_v4, 4  ;;  %v5680_v49 = vld [vmem:[%s8683_s3 + $0x78] sm:$0xff]  }
 0x1d3   : > { %2969 = vst [vmem:[#allocation3 + $0x24] sm:$0xf] %v2968_v21  ;;  %v2694_v19 = vsel %vm6002_vm12, %v2686_v24, %v2693_v48  ;;  %v2979_v52 = vsel %vm7270_vm0, %v2695_v34, %v2978_v51  ;;  %v3160_v13 = vor.u32 %v3159_v8, %v7396_v55  ;;  %v3150_v56 = vor.u32 %v3149_v15, %v3146_v54  ;;  %v5681_v48 = vld [vmem:[%s8683_s3 + $0x38] sm:$0xff]   ;;  %v7464_v21 = vld [vmem:[%s8683_s3 + $0x80] sm:$0xff]  }
 0x1d4   : > { %2977 = vst.msk [vmem:[#allocation3 + $0x34] sm:$0xf] %vm280_vm13, %v2694_v19  ;;  %2980 = vst [vmem:[#allocation3 + $0x38] sm:$0x1] %v2979_v52  ;;  %v2677_v47 = vsel %vm6002_vm12, %v2669_v22, %v2676_v35  ;;  %v2972_v23 = vsel %vm7270_vm0, %v2678_v5, %v2971_v28  ;;  %v3190_v30 = vsel %vm5994_vm11, %v3185_v9, %v3189_v36  ;;  %v3163_v10 = vshll.u32 %v7313_v57, 16  ;;  %v5679_v57 = vld [vmem:[%s8683_s3 + $0x30] sm:$0xff]  }
 0x1d5   : > { %2970 = vst.msk [vmem:[#allocation3 + $0x28] sm:$0xf] %vm280_vm13, %v2677_v47  ;;  %2973 = vst [vmem:[#allocation3 + $0x2c] sm:$0x1] %v2972_v23  ;;  %v3180_v61 = vsel %vm5994_vm11, %v3175_v42, %v7360_v50  ;;  %v3161_v11 = vrot.slane %v3160_v13, 4  ;;  %5375 = vmatpush3.bf16.msra.mxu0 %v5677_v27  ;;  %5581 = vmatpush3.bf16.msra.mxu1 %v5677_v27  ;;  %v3151_v39 = vrot.slane %v3150_v56, 4 }
 0x1d6   : > { %v7434_v60 = vcombine.low %v3180_v61, %v3190_v30  ;;  %5376 = vmatprep.subr.bf16.mxu0 %v5678_v63  ;;  %5574 = vmatprep.subr.bf16.mxu1 %v5678_v63  ;;  %v3165_v58 = vrot.slane %v3163_v10, 5 }
 0x1d7   : > { %v3156_v28 = vsel %vm5994_vm11, %v3151_v39, %v7396_v55 }
 0x1d8   : > { %v3166_v24 = vsel %vm5994_vm11, %v3161_v11, %v3165_v58 }
 0x1d9   : > { %v7401_v17 = vld [vmem:[#allocation3 + $0x30] sm:$0xf]  ;;  %5377 = vmatpush3.bf16.msra.mxu0 %v5679_v57  ;;  %5582 = vmatpush3.bf16.msra.mxu1 %v5679_v57  ;;  %v7476_v6 = vcombine.low %v3156_v28, %v3166_v24 }
 0x1da   : > { %v7429_v2 = vld [vmem:[#allocation3 + $0x24] sm:$0xf]  ;;  %5378 = vmatprep.subr.bf16.mxu0 %v5680_v49  ;;  %5575 = vmatprep.subr.bf16.mxu1 %v5680_v49  ;;  %v5171_v19 = vrot.slane %v7401_v17, 9  ;;  %v3216_v29 = vshrl.u32 %v7401_v17, 16  ;;  %v3219_v26 = vshll.u32 %v7401_v17, 16 }
 0x1db   : > { %v7403_v62 = vld [vmem:[#allocation3 + $0x34] sm:$0xf]  ;;  %v7440_v51 = vld [vmem:[#allocation3 + $0x38] sm:$0x1]  ;;  %v5170_v54 = vrot.slane %v7429_v2, 9  ;;  %v3192_v36 = vshrl.u32 %v7429_v2, 16 }
 0x1dc   : > { %v7411_v37 = vcombine.low %v7401_v17, %v7403_v62  ;;  %v7418_v14 = vld [vmem:[#allocation3 + $0x28] sm:$0xf]  ;;  %v3581_v45 = vrot.slane %v7403_v62, 5  ;;  %v3584_v41 = vrot.slane %v7440_v51, 5  ;;  %v7459_v22 = vld [vmem:[#allocation3 + $0x2c] sm:$0x1] }
 0x1dd   : > { %v7438_v7 = vcombine.low %v7429_v2, %v7418_v14  ;;  %v3574_v18 = vrot.slane %v7418_v14, 5  ;;  %v3577_v53 = vrot.slane %v7459_v22, 5  ;;  %5379 = vmatpush3.bf16.msra.mxu0 %v5681_v48  ;;  %5583 = vmatpush3.bf16.msra.mxu1 %v5681_v48  ;;  %v3229_v9 = vshrl.u32 %v7403_v62, 16 }
 0x1de   : > { %8717 = vst [vmem:[#allocation7_spill] sm:$0xff] %v7411_v37  ;;  %3948 = vrot.lane.b32.xlu1 %v7411_v37, %s5768_s7  ;;  %4019 = vrot.lane.b32.xlu0 %v7411_v37, %s5767_s8  ;;  %v3583_v50 = vrot.slane %v3581_v45, 4  ;;  %v3582_v40 = vsel %vm5959_vm7, %v5171_v19, %v3581_v45  ;;  %v3225_v30 = vshll.u32 %v7403_v62, 16  ;;  %v3195_v10 = vshll.u32 %v7429_v2, 16  ;;  %v2992_v19 = vld [vmem:[#allocation3 + $0x50] sm:$0x1] }
 0x1df   : > { %8718 = vst [vmem:[#allocation8_spill] sm:$0xff] %v7438_v7  ;;  %v3576_v20 = vrot.slane %v3574_v18, 4  ;;  %5532 = vmatprep.subr.bf16.mxu0 %v7464_v21  ;;  %v3575_v63 = vsel %vm5959_vm7, %v5170_v54, %v3574_v18  ;;  %v3205_v57 = vshrl.u32 %v7418_v14, 16  ;;  %v3231_v62 = vrot.slane %v3229_v9, 4  ;;  %v2981_v18 = vld [vmem:[#allocation3 + $0x3c] sm:$0xf] }
 0x1e0   : > { %v3585_v52 = vsel %vm5959_vm7, %v3583_v50, %v3584_v41  ;;  %v2988_v50 = vld [vmem:[#allocation3 + $0x48] sm:$0xf]  ;;  %v3218_v54 = vrot.slane %v3216_v29, 4  ;;  %v3194_v29 = vrot.slane %v3192_v36, 4 }
 0x1e1   : > { %v7484_v55 = vcombine.low %v3582_v40, %v3585_v52  ;;  %v3578_v15 = vsel %vm5959_vm7, %v3576_v20, %v3577_v53  ;;  %v2985_v40 = vld [vmem:[#allocation3 + $0x44] sm:$0x1] }
 0x1e2   : > { %3831 = vrot.lane.b32.xlu1 %v7434_v60, %s5764_s25  ;;  %4017 = vrot.lane.b32.xlu0 %v7438_v7, %s5767_s8  ;;  %v7500_v11 = vcombine.low %v3575_v63, %v3578_v15  ;;  %v3221_v15 = vrot.slane %v3219_v26, 5  ;;  %v3235_v63 = vshll.u32 %v7440_v51, 16  ;;  %v3197_v26 = vrot.slane %v3195_v10, 5 }
 0x1e4   : > { %v5510_v34 = vpop.f32.mrb[8].mxu0  ;;  %v3222_v17 = vor.u32 %v3221_v15, %v3218_v54 }
 0x1e5   : > { %v2414_v35 = vadd.f32 %v5510_v34, %v7236_v25  ;;  %v2405_v5 = vpop.f32.mrb[9].mxu0 }
 0x1e6   : > { %v2406_v33 = vadd.f32 %v7236_v25, %v2405_v5  ;;  %3946 = vrot.lane.b32.xlu1 %v7438_v7, %s5768_s7  ;;  %4050 = vrot.lane.b32.xlu0 %v7434_v60, %s5768_s7  ;;  %v5511_v16 = vpop.f32.mrb[10].mxu0 }
 0x1e7   : > { %v2510_v47 = vmax.f32 %v2414_v35, 0.0  ;;  %v2417_v23 = vadd.f32 %v5511_v16, %v7236_v25  ;;  %v2408_v43 = vpop.f32.mrb[11].mxu0  ;;  %v3227_v35 = vrot.slane %v3225_v30, 5 }
 0x1e8   : > { %v2508_v3 = vmax.f32 %v2406_v33, 0.0  ;;  %v2409_v4 = vadd.f32 %v7236_v25, %v2408_v43  ;;  %v3201_v33 = vshll.u32 %v7418_v14, 16 }
 0x1e9   : > { %v5322_v8 = vpack.c.bf16 %v2510_v47, %v2510_v47  ;;  %v2511_v59 = vmax.f32 %v2417_v23, 0.0 }
 0x1ea   : > { %v5320_v42 = vpack.c.bf16 %v2508_v3, %v2508_v3  ;;  %v2509_v13 = vmax.f32 %v2409_v4, 0.0  ;;  %3829 = vrot.lane.b32.xlu1 %v7476_v6, %s5764_s25  ;;  %3986 = vrot.lane.b32.xlu0 %v7484_v55, %s5764_s25 }
 0x1eb   : > { %v2714_v27 = vshrl.u32 %v5322_v8, 16  ;;  %v5323_v56 = vpack.c.bf16 %v2511_v59, %v2511_v59  ;;  %v2717_v49 = vshll.u32 %v5322_v8, 16 }
 0x1ec   : > { %v2697_v45 = vshrl.u32 %v5320_v42, 16  ;;  %v5321_v61 = vpack.c.bf16 %v2509_v13, %v2509_v13  ;;  %v2700_v41 = vshll.u32 %v5320_v42, 16  ;;  %v3232_v13 = vor.u32 %v3231_v62, %v3227_v35 }
 0x1ed   : > { %v2716_v39 = vrot.slane %v2714_v27, 7  ;;  %v2722_v58 = vshrl.u32 %v5323_v56, 16  ;;  %v2725_v28 = vshll.u32 %v5323_v56, 16  ;;  %v3203_v27 = vrot.slane %v3201_v33, 5 }
 0x1ee   : > { %v2699_v24 = vrot.slane %v2697_v45, 7  ;;  %v2705_v48 = vshrl.u32 %v5321_v61, 16  ;;  %3915 = vrot.lane.b32.xlu1 %v7484_v55, %s5767_s8  ;;  %3984 = vrot.lane.b32.xlu0 %v7500_v11, %s5764_s25  ;;  %v2708_v20 = vshll.u32 %v5321_v61, 16  ;;  %v3207_v56 = vrot.slane %v3205_v57, 4 }
 0x1ef   : > { %v2719_v2 = vor.u32 %v2717_v49, %v2716_v39  ;;  %v2724_v34 = vrot.slane %v2722_v58, 7  ;;  %v2720_v16 = vrot.slane %v2716_v39, 4  ;;  %v3233_v30 = vrot.slane %v3232_v13, 4 }
 0x1f0   : > { %v2702_v5 = vor.u32 %v2700_v41, %v2699_v24  ;;  %v2707_v52 = vrot.slane %v2705_v48, 7  ;;  %v2703_v53 = vrot.slane %v2699_v24, 4  ;;  %v3208_v45 = vor.u32 %v3207_v56, %v3203_v27 }
 0x1f1   : > { %v2989_v47 = vsel %vm7264_vm15, %v2719_v2, %v2988_v50  ;;  %v2727_v23 = vor.u32 %v2725_v28, %v2724_v34  ;;  %v2729_v43 = vrot.slane %v2724_v34, 4  ;;  %v3237_v61 = vrot.slane %v3235_v63, 5 }
 0x1f2   : > { %2990 = vst [vmem:[#allocation3 + $0x48] sm:$0xf] %v2989_v47  ;;  %v2982_v3 = vsel %vm7264_vm15, %v2702_v5, %v2981_v18  ;;  %v2710_v4 = vor.u32 %v2708_v20, %v2707_v52  ;;  %v2712_v8 = vrot.slane %v2707_v52, 4  ;;  %3913 = vrot.lane.b32.xlu1 %v7500_v11, %s5767_s8  ;;  %v3223_v58 = vrot.slane %v3222_v17, 4 }
 0x1f3   : > { %2983 = vst [vmem:[#allocation3 + $0x3c] sm:$0xf] %v2982_v3  ;;  %v2728_v14 = vsel %vm6002_vm12, %v2720_v16, %v2727_v23  ;;  %v2993_v59 = vsel %vm7270_vm0, %v2729_v43, %v2992_v19  ;;  %v3198_v50 = vor.u32 %v3197_v26, %v3194_v29  ;;  %v3211_v24 = vshll.u32 %v7459_v22, 16 }
 0x1f4   : > { %2991 = vst.msk [vmem:[#allocation3 + $0x4c] sm:$0xf] %vm280_vm13, %v2728_v14  ;;  %2994 = vst [vmem:[#allocation3 + $0x50] sm:$0x1] %v2993_v59  ;;  %v2711_v9 = vsel %vm6002_vm12, %v2703_v53, %v2710_v4  ;;  %v2986_v42 = vsel %vm7270_vm0, %v2712_v8, %v2985_v40  ;;  %v3238_v51 = vsel %vm5994_vm11, %v3233_v30, %v3237_v61  ;;  %v3209_v36 = vrot.slane %v3208_v45, 4 }
 0x1f5   : > { %2984 = vst.msk [vmem:[#allocation3 + $0x40] sm:$0xf] %vm280_vm13, %v2711_v9  ;;  %2987 = vst [vmem:[#allocation3 + $0x44] sm:$0x1] %v2986_v42  ;;  %v3228_v10 = vsel %vm5994_vm11, %v3223_v58, %v3227_v35  ;;  %v3199_v57 = vrot.slane %v3198_v50, 4  ;;  %v3213_v48 = vrot.slane %v3211_v24, 5 }
 0x1f6   : > { %v7544_v22 = vcombine.low %v3228_v10, %v3238_v51 }
 0x1f7   : > { %v3214_v2 = vsel %vm5994_vm11, %v3209_v36, %v3213_v48  ;;  %v3204_v28 = vsel %vm5994_vm11, %v3199_v57, %v3203_v27 }
 0x1f8   : > { %8720 = vst [vmem:[#allocation10_spill] sm:$0xff] %v7544_v22  ;;  %v7563_v19 = vcombine.low %v3204_v28, %v3214_v2 }
 0x1f9   : > { %v7527_v39 = vld [vmem:[#allocation3 + $0x48] sm:$0xf] }
 0x1fa   : > { %v7555_v34 = vld [vmem:[#allocation3 + $0x3c] sm:$0xf]  ;;  %v3264_v33 = vshrl.u32 %v7527_v39, 16  ;;  %v3267_v16 = vshll.u32 %v7527_v39, 16  ;;  %v5173_v8 = vrot.slane %v7527_v39, 9 }
 0x1fb   : > { %v7529_v49 = vld [vmem:[#allocation3 + $0x4c] sm:$0xf]  ;;  %v7565_v52 = vld [vmem:[#allocation3 + $0x50] sm:$0x1]  ;;  %v3240_v53 = vshrl.u32 %v7555_v34, 16  ;;  %v3243_v3 = vshll.u32 %v7555_v34, 16 }
 0x1fc   : > { %v7534_v41 = vcombine.low %v7527_v39, %v7529_v49  ;;  %v7546_v62 = vld [vmem:[#allocation3 + $0x40] sm:$0xf]  ;;  %v3595_v18 = vrot.slane %v7529_v49, 5  ;;  %v3277_v14 = vshrl.u32 %v7529_v49, 16  ;;  %v3598_v9 = vrot.slane %v7565_v52, 5 }
 0x1fd   : > { %v7561_v5 = vcombine.low %v7555_v34, %v7546_v62  ;;  %v3588_v20 = vrot.slane %v7546_v62, 5  ;;  %v7582_v42 = vld [vmem:[#allocation3 + $0x44] sm:$0x1]  ;;  %v3253_v27 = vshrl.u32 %v7546_v62, 16  ;;  %v5172_v30 = vrot.slane %v7555_v34, 9 }
 0x1fe   : > { %8719 = vst [vmem:[#allocation9_spill] sm:$0xff] %v7534_v41  ;;  %3952 = vrot.lane.b32.xlu1 %v7534_v41, %s5768_s7  ;;  %4023 = vrot.lane.b32.xlu0 %v7534_v41, %s5767_s8  ;;  %v3597_v43 = vrot.slane %v3595_v18, 4  ;;  %v3591_v58 = vrot.slane %v7582_v42, 5  ;;  %v3273_v50 = vshll.u32 %v7529_v49, 16  ;;  %v3596_v36 = vsel %vm5959_vm7, %v5173_v8, %v3595_v18  ;;  %v3002_v49 = vld [vmem:[#allocation3 + $0x60] sm:$0xf] }
 0x1ff   : > { %8721 = vst [vmem:[#allocation11_spill] sm:$0xff] %v7561_v5  ;;  %v3590_v63 = vrot.slane %v3588_v20, 4  ;;  %v3589_v10 = vsel %vm5959_vm7, %v5172_v30, %v3588_v20  ;;  %v2995_v8 = vld [vmem:[#allocation3 + $0x54] sm:$0xf]  ;;  %v3242_v39 = vrot.slane %v3240_v53, 4 }
 0x200   : > { %v3599_v26 = vsel %vm5959_vm7, %v3597_v43, %v3598_v9  ;;  %v3279_v43 = vrot.slane %v3277_v14, 4  ;;  %v3275_v18 = vrot.slane %v3273_v50, 5 }
 0x201   : > { %v7599_v2 = vcombine.low %v3596_v36, %v3599_v26  ;;  %v3592_v28 = vsel %vm5959_vm7, %v3590_v63, %v3591_v58 }
 0x202   : > { %3835 = vrot.lane.b32.xlu1 %v7544_v22, %s5764_s25  ;;  %4054 = vrot.lane.b32.xlu0 %v7544_v22, %s5768_s7  ;;  %v7607_v9 = vcombine.low %v3589_v10, %v3592_v28 }
 0x204   : > { %v5514_v35 = vpop.f32.mrb[12].mxu0 }
 0x205   : > { %v2430_v47 = vadd.f32 %v5514_v35, %v7236_v25  ;;  %v2421_v23 = vpop.f32.mrb[13].mxu0 }
 0x206   : > { %v2422_v40 = vadd.f32 %v7236_v25, %v2421_v23  ;;  %3950 = vrot.lane.b32.xlu1 %v7561_v5, %s5768_s7  ;;  %4021 = vrot.lane.b32.xlu0 %v7561_v5, %s5767_s8  ;;  %v5515_v4 = vpop.f32.mrb[14].mxu0  ;;  %v3030_v5 = vld [vmem:[#allocation3 + $0x90] sm:$0xf] }
 0x207   : > { %v2514_v59 = vmax.f32 %v2430_v47, 0.0  ;;  %v2433_v54 = vadd.f32 %v5515_v4, %v7236_v25  ;;  %v2424_v15 = vpop.f32.mrb[15].mxu0 }
 0x208   : > { %v2512_v13 = vmax.f32 %v2422_v40, 0.0  ;;  %v2425_v56 = vadd.f32 %v7236_v25, %v2424_v15 }
 0x209   : > { %v5326_v17 = vpack.c.bf16 %v2514_v59, %v2514_v59  ;;  %v2515_v29 = vmax.f32 %v2433_v54, 0.0 }
 0x20a   : > { %v5324_v45 = vpack.c.bf16 %v2512_v13, %v2512_v13  ;;  %v2513_v61 = vmax.f32 %v2425_v56, 0.0  ;;  %3833 = vrot.lane.b32.xlu1 %v7563_v19, %s5764_s25  ;;  %4052 = vrot.lane.b32.xlu0 %v7563_v19, %s5768_s7  ;;  %v3006_v56 = vld [vmem:[#allocation3 + $0x68] sm:$0x1] }
 0x20b   : > { %v2748_v24 = vshrl.u32 %v5326_v17, 16  ;;  %v5327_v51 = vpack.c.bf16 %v2515_v29, %v2515_v29  ;;  %v2751_v47 = vshll.u32 %v5326_v17, 16  ;;  %v3249_v17 = vshll.u32 %v7546_v62, 16 }
 0x20c   : > { %v2731_v57 = vshrl.u32 %v5324_v45, 16  ;;  %v5325_v48 = vpack.c.bf16 %v2513_v61, %v2513_v61  ;;  %v2734_v4 = vshll.u32 %v5324_v45, 16  ;;  %v2999_v61 = vld [vmem:[#allocation3 + $0x5c] sm:$0x1] }
 0x20d   : > { %v2750_v35 = vrot.slane %v2748_v24, 7  ;;  %v2756_v23 = vshrl.u32 %v5327_v51, 16  ;;  %v2759_v15 = vshll.u32 %v5327_v51, 16 }
 0x20e   : > { %v2733_v40 = vrot.slane %v2731_v57, 7  ;;  %v2739_v59 = vshrl.u32 %v5325_v48, 16  ;;  %3919 = vrot.lane.b32.xlu1 %v7599_v2, %s5767_s8  ;;  %3990 = vrot.lane.b32.xlu0 %v7599_v2, %s5764_s25  ;;  %v2742_v63 = vshll.u32 %v5325_v48, 16  ;;  %v3266_v57 = vrot.slane %v3264_v33, 4 }
 0x20f   : > { %v2753_v20 = vor.u32 %v2751_v47, %v2750_v35  ;;  %v2758_v54 = vrot.slane %v2756_v23, 7  ;;  %v2754_v29 = vrot.slane %v2750_v35, 4  ;;  %v3269_v48 = vrot.slane %v3267_v16, 5 }
 0x210   : > { %v2736_v13 = vor.u32 %v2734_v4, %v2733_v40  ;;  %v2741_v14 = vrot.slane %v2739_v59, 7  ;;  %v2737_v58 = vrot.slane %v2733_v40, 4  ;;  %v3251_v47 = vrot.slane %v3249_v17, 5 }
 0x211   : > { %v3003_v26 = vsel %vm7264_vm15, %v2753_v20, %v3002_v49  ;;  %v2761_v30 = vor.u32 %v2759_v15, %v2758_v54  ;;  %v2763_v45 = vrot.slane %v2758_v54, 4  ;;  %v3255_v23 = vrot.slane %v3253_v27, 4 }
 0x212   : > { %3004 = vst [vmem:[#allocation3 + $0x60] sm:$0xf] %v3003_v26  ;;  %v2996_v50 = vsel %vm7264_vm15, %v2736_v13, %v2995_v8  ;;  %v2744_v24 = vor.u32 %v2742_v63, %v2741_v14  ;;  %v2746_v51 = vrot.slane %v2741_v14, 4  ;;  %3917 = vrot.lane.b32.xlu1 %v7607_v9, %s5767_s8  ;;  %3988 = vrot.lane.b32.xlu0 %v7607_v9, %s5764_s25  ;;  %v3245_v16 = vrot.slane %v3243_v3, 5 }
 0x213   : > { %2997 = vst [vmem:[#allocation3 + $0x54] sm:$0xf] %v2996_v50  ;;  %v2762_v36 = vsel %vm6002_vm12, %v2754_v29, %v2761_v30  ;;  %v3007_v10 = vsel %vm7270_vm0, %v2763_v45, %v3006_v56  ;;  %v3280_v33 = vor.u32 %v3279_v43, %v3275_v18  ;;  %v3270_v49 = vor.u32 %v3269_v48, %v3266_v57 }
 0x214   : > { %3005 = vst.msk [vmem:[#allocation3 + $0x64] sm:$0xf] %vm280_vm13, %v2762_v36  ;;  %3008 = vst [vmem:[#allocation3 + $0x68] sm:$0x1] %v3007_v10  ;;  %v2745_v28 = vsel %vm6002_vm12, %v2737_v58, %v2744_v24  ;;  %v3000_v35 = vsel %vm7270_vm0, %v2746_v51, %v2999_v61  ;;  %v3283_v40 = vshll.u32 %v7565_v52, 16  ;;  %v3256_v4 = vor.u32 %v3255_v23, %v3251_v47 }
 0x215   : > { %2998 = vst.msk [vmem:[#allocation3 + $0x58] sm:$0xf] %vm280_vm13, %v2745_v28  ;;  %3001 = vst [vmem:[#allocation3 + $0x5c] sm:$0x1] %v3000_v35  ;;  %v3281_v59 = vrot.slane %v3280_v33, 4  ;;  %v3246_v20 = vor.u32 %v3245_v16, %v3242_v39  ;;  %v3259_v8 = vshll.u32 %v7582_v42, 16 }
 0x216   : > { %v3271_v54 = vrot.slane %v3270_v49, 4  ;;  %v3285_v43 = vrot.slane %v3283_v40, 5  ;;  %v3257_v34 = vrot.slane %v3256_v4, 4 }
 0x217   : > { %v3247_v52 = vrot.slane %v3246_v20, 4  ;;  %v3261_v42 = vrot.slane %v3259_v8, 5 }
 0x218   : > { %v3286_v3 = vsel %vm5994_vm11, %v3281_v59, %v3285_v43  ;;  %v3276_v15 = vsel %vm5994_vm11, %v3271_v54, %v3275_v18  ;;  %v7700_v59 = vld [vmem:[%s8682_s2] ss:$0 sm:$0xff] }
 0x219   : > { %v7640_v62 = vld [vmem:[#allocation3 + $0x60] sm:$0xf]  ;;  %v7656_v13 = vcombine.low %v3276_v15, %v3286_v3  ;;  %v3262_v14 = vsel %vm5994_vm11, %v3257_v34, %v3261_v42  ;;  %v3252_v18 = vsel %vm5994_vm11, %v3247_v52, %v3251_v47 }
 0x21a   : > { %v7667_v17 = vld [vmem:[#allocation3 + $0x54] sm:$0xf]  ;;  %v3312_v29 = vshrl.u32 %v7640_v62, 16  ;;  %v7672_v30 = vcombine.low %v3252_v18, %v3262_v14  ;;  %v3315_v58 = vshll.u32 %v7640_v62, 16  ;;  %v5175_v36 = vrot.slane %v7640_v62, 9 }
 0x21b   : > { %v7642_v27 = vld [vmem:[#allocation3 + $0x64] sm:$0xf]  ;;  %8723 = vst [vmem:[#allocation13_spill] sm:$0xff] %v7656_v13  ;;  %v7674_v45 = vld [vmem:[#allocation3 + $0x68] sm:$0x1]  ;;  %v3288_v57 = vshrl.u32 %v7667_v17, 16 }
 0x21c   : > { %v7646_v53 = vcombine.low %v7640_v62, %v7642_v27  ;;  %v7658_v56 = vld [vmem:[#allocation3 + $0x58] sm:$0xf]  ;;  %v3609_v63 = vrot.slane %v7642_v27, 5  ;;  %8724 = vst [vmem:[#allocation14_spill] sm:$0xff] %v7672_v30  ;;  %v7687_v47 = vld [vmem:[#allocation3 + $0x5c] sm:$0x1] }
 0x21d   : > { %v3602_v61 = vrot.slane %v7658_v56, 5  ;;  %v7681_v51 = vcombine.low %v7667_v17, %v7658_v56  ;;  %v3325_v23 = vshrl.u32 %v7642_v27, 16  ;;  %v3612_v49 = vrot.slane %v7674_v45, 5 }
 0x21e   : > { %8722 = vst [vmem:[#allocation12_spill] sm:$0xff] %v7646_v53  ;;  %3956 = vrot.lane.b32.xlu1 %v7646_v53, %s5768_s7  ;;  %4027 = vrot.lane.b32.xlu0 %v7646_v53, %s5767_s8  ;;  %v3611_v35 = vrot.slane %v3609_v63, 4  ;;  %v3301_v4 = vshrl.u32 %v7658_v56, 16  ;;  %v5174_v34 = vrot.slane %v7667_v17, 9  ;;  %v3321_v15 = vshll.u32 %v7642_v27, 16 }
 0x21f   : > { %8725 = vst [vmem:[#allocation15_spill] sm:$0xff] %v7681_v51  ;;  %v3604_v8 = vrot.slane %v3602_v61, 4  ;;  %v3327_v27 = vrot.slane %v3325_v23, 4 }
 0x220   : > { %v3613_v42 = vsel %vm5959_vm7, %v3611_v35, %v3612_v49  ;;  %v3016_v49 = vld [vmem:[#allocation3 + $0x78] sm:$0xf]  ;;  %v7720_v48 = vrot.slane %v3321_v15, 5  ;;  %v3303_v62 = vrot.slane %v3301_v4, 4 }
 0x222   : > { %3839 = vrot.lane.b32.xlu1 %v7656_v13, %s5764_s25  ;;  %4058 = vrot.lane.b32.xlu0 %v7656_v13, %s5768_s7 }
 0x223   : > { %v5518_v26 = vpop.f32.mrb[16].mxu0  ;;  %v8740_v12 = vld [vmem:[#allocation14_spill] sm:$0xff] }
 0x224   : > { %v2446_v50 = vadd.f32 %v5518_v26, %v7236_v25  ;;  %v2437_v24 = vpop.f32.mrb[17].mxu0  ;;  %v3610_v26 = vsel %vm5959_vm7, %v5175_v36, %v3609_v63  ;;  %v3009_v36 = vld [vmem:[#allocation3 + $0x6c] sm:$0xf] }
 0x225   : > { %v2438_v10 = vadd.f32 %v7236_v25, %v2437_v24  ;;  %v5519_v28 = vpop.f32.mrb[18].mxu0 }
 0x226   : > { %v2518_v33 = vmax.f32 %v2446_v50, 0.0  ;;  %3954 = vrot.lane.b32.xlu1 %v7681_v51, %s5768_s7  ;;  %4025 = vrot.lane.b32.xlu0 %v7681_v51, %s5767_s8  ;;  %v2449_v39 = vadd.f32 %v5519_v28, %v7236_v25  ;;  %v2440_v16 = vpop.f32.mrb[19].mxu0  ;;  %v3605_v25 = vrot.slane %v7687_v47, 5  ;;  %v3603_v50 = vsel %vm5959_vm7, %v5174_v34, %v3602_v61 }
 0x227   : > { %v2516_v40 = vmax.f32 %v2438_v10, 0.0  ;;  %v2441_v20 = vadd.f32 %v7700_v59, %v2440_v16  ;;  %v7718_v16 = vcombine.low %v3610_v26, %v3613_v42  ;;  %v3297_v42 = vshll.u32 %v7658_v56, 16 }
 0x228   : > { %v5330_v54 = vpack.c.bf16 %v2518_v33, %v2518_v33  ;;  %v2519_v43 = vmax.f32 %v2449_v39, 0.0  ;;  %v3606_v28 = vsel %vm5959_vm7, %v3604_v8, %v3605_v25 }
 0x229   : > { %v5328_v3 = vpack.c.bf16 %v2516_v40, %v2516_v40  ;;  %v2517_v52 = vmax.f32 %v2441_v20, 0.0  ;;  %v7728_v23 = vcombine.low %v3603_v50, %v3606_v28 }
 0x22a   : > { %v2782_v14 = vshrl.u32 %v5330_v54, 16  ;;  %v5331_v18 = vpack.c.bf16 %v2519_v43, %v2519_v43  ;;  %3837 = vrot.lane.b32.xlu1 %v7672_v30, %s5764_s25  ;;  %4056 = vrot.lane.b32.xlu0 %v7672_v30, %s5768_s7  ;;  %v2785_v33 = vshll.u32 %v5330_v54, 16  ;;  %v3020_v54 = vld [vmem:[#allocation3 + $0x80] sm:$0x1] }
 0x22b   : > { %v2765_v24 = vshrl.u32 %v5328_v3, 16  ;;  %v5329_v10 = vpack.c.bf16 %v2517_v52, %v2517_v52  ;;  %v2768_v20 = vshll.u32 %v5328_v3, 16  ;;  %v7722_v52 = vpop.permute.xlu1 %3827 }
 0x22c   : > { %v2784_v35 = vrot.slane %v2782_v14, 7  ;;  %v2790_v39 = vshrl.u32 %v5331_v18, 16  ;;  %v2793_v34 = vshll.u32 %v5331_v18, 16 }
 0x22d   : > { %v2767_v40 = vrot.slane %v2765_v24, 7  ;;  %v2773_v43 = vshrl.u32 %v5329_v10, 16  ;;  %v2776_v3 = vshll.u32 %v5329_v10, 16  ;;  %v3013_v24 = vld [vmem:[#allocation3 + $0x74] sm:$0x1] }
 0x22e   : > { %v2787_v63 = vor.u32 %v2785_v33, %v2784_v35  ;;  %v2792_v61 = vrot.slane %v2790_v39, 7  ;;  %3923 = vrot.lane.b32.xlu1 %v7718_v16, %s5767_s8  ;;  %3994 = vrot.lane.b32.xlu0 %v7718_v16, %s5764_s25  ;;  %v2788_v15 = vrot.slane %v2784_v35, 4 }
 0x22f   : > { %v2770_v8 = vor.u32 %v2768_v20, %v2767_v40  ;;  %v2775_v25 = vrot.slane %v2773_v43, 7  ;;  %v2771_v33 = vrot.slane %v2767_v40, 4  ;;  %v3317_v40 = vrot.slane %v3315_v58, 5 }
 0x230   : > { %v3017_v14 = vsel %vm7264_vm15, %v2787_v63, %v3016_v49  ;;  %v2795_v18 = vor.u32 %v2793_v34, %v2792_v61  ;;  %v2797_v26 = vrot.slane %v2792_v61, 4  ;;  %v3314_v49 = vrot.slane %v3312_v29, 4  ;;  %v7753_v63 = vpop.permute.xlu1 %3907 }
 0x231   : > { %3018 = vst [vmem:[#allocation3 + $0x78] sm:$0xf] %v3017_v14  ;;  %v3010_v39 = vsel %vm7264_vm15, %v2770_v8, %v3009_v36  ;;  %v2778_v50 = vor.u32 %v2776_v3, %v2775_v25  ;;  %v2780_v28 = vrot.slane %v2775_v25, 4  ;;  %v3328_v36 = vor.u32 %v3327_v27, %v7720_v48 }
 0x232   : > { %3011 = vst [vmem:[#allocation3 + $0x6c] sm:$0xf] %v3010_v39  ;;  %v2796_v10 = vsel %vm6002_vm12, %v2788_v15, %v2795_v18  ;;  %v3021_v35 = vsel %vm7270_vm0, %v2797_v26, %v3020_v54  ;;  %3921 = vrot.lane.b32.xlu1 %v7728_v23, %s5767_s8  ;;  %3992 = vrot.lane.b32.xlu0 %v7728_v23, %s5764_s25  ;;  %v3299_v29 = vrot.slane %v3297_v42, 5  ;;  %v3331_v58 = vshll.u32 %v7674_v45, 16 }
 0x233   : > { %3019 = vst.msk [vmem:[#allocation3 + $0x7c] sm:$0xf] %vm280_vm13, %v2796_v10  ;;  %3022 = vst [vmem:[#allocation3 + $0x80] sm:$0x1] %v3021_v35  ;;  %v2779_v20 = vsel %vm6002_vm12, %v2771_v33, %v2778_v50  ;;  %v3014_v43 = vsel %vm7270_vm0, %v2780_v28, %v3013_v24  ;;  %v3318_v61 = vor.u32 %v3317_v40, %v3314_v49  ;;  %v3290_v34 = vrot.slane %v3288_v57, 4 }
 0x234   : > { %3012 = vst.msk [vmem:[#allocation3 + $0x70] sm:$0xf] %vm280_vm13, %v2779_v20  ;;  %3015 = vst [vmem:[#allocation3 + $0x74] sm:$0x1] %v3014_v43  ;;  %v8726_v8 = vshll.u32 %v7667_v17, 16  ;;  %v3329_v25 = vrot.slane %v3328_v36, 4  ;;  %v3304_v3 = vor.u32 %v3303_v62, %v3299_v29  ;;  %v7763_v14 = vpop.permute.xlu1 %3944  ;;  %v7783_v33 = vpop.permute.xlu0 %4015 }
 0x235   : > { %v3333_v15 = vrot.slane %v3331_v58, 5  ;;  %v3319_v56 = vrot.slane %v3318_v61, 4  ;;  %v3307_v45 = vshll.u32 %v7687_v47, 16  ;;  %v7800_v49 = vld [vmem:[#allocation3] sm:$0xf] }
 0x236   : > { %v3293_v54 = vrot.slane %v8726_v8, 5  ;;  %v3305_v57 = vrot.slane %v3304_v3, 4  ;;  %v7802_v40 = vld [vmem:[#allocation3 + $0x4] sm:$0xf] }
 0x237   : > { %v3334_v17 = vsel %vm5994_vm11, %v3329_v25, %v3333_v15  ;;  %v3324_v26 = vsel %vm5994_vm11, %v3319_v56, %v7720_v48  ;;  %v3309_v47 = vrot.slane %v3307_v45, 5 }
 0x238   : > { %v7765_v18 = vld [vmem:[#allocation3 + $0x78] sm:$0xf]  ;;  %v3294_v4 = vor.u32 %v3293_v54, %v3290_v34  ;;  %v7785_v39 = vcombine.low %v3324_v26, %v3334_v17  ;;  %v7789_v28 = vpop.permute.xlu1 %3942 }
 0x239   : > { %v3310_v10 = vsel %vm5994_vm11, %v3305_v57, %v3309_v47  ;;  %v7798_v48 = vld [vmem:[#allocation3 + $0x6c] sm:$0xf]  ;;  %v3360_v58 = vshrl.u32 %v7765_v18, 16  ;;  %v3363_v61 = vshll.u32 %v7765_v18, 16  ;;  %v5177_v15 = vrot.slane %v7765_v18, 9 }
 0x23a   : > { %v7767_v27 = vld [vmem:[#allocation3 + $0x7c] sm:$0xf]  ;;  %v3295_v24 = vrot.slane %v3294_v4, 4  ;;  %8728 = vst [vmem:[#allocation17_spill] sm:$0xff] %v7785_v39  ;;  %v7808_v36 = vld [vmem:[#allocation3 + $0x80] sm:$0x1]  ;;  %v7822_v4 = vpop.permute.xlu0 %3982 }
 0x23b   : > { %v7772_v42 = vcombine.low %v7765_v18, %v7767_v27  ;;  %v7787_v50 = vld [vmem:[#allocation3 + $0x70] sm:$0xf]  ;;  %v3623_v35 = vrot.slane %v7767_v27, 5  ;;  %v3373_v45 = vshrl.u32 %v7767_v27, 16  ;;  %v7832_v47 = vld [vmem:[#allocation3 + $0x74] sm:$0x1] }
 0x23c   : > { %v3300_v43 = vsel %vm5994_vm11, %v3295_v24, %v3299_v29  ;;  %v3616_v62 = vrot.slane %v7787_v50, 5  ;;  %v7815_v8 = vcombine.low %v7798_v48, %v7787_v50  ;;  %v3626_v24 = vrot.slane %v7808_v36, 5  ;;  %v7834_v18 = vpop.permute.xlu1 %3911 }
 0x23d   : > { %8727 = vst [vmem:[#allocation16_spill] sm:$0xff] %v7772_v42  ;;  %3960 = vrot.lane.b32.xlu1 %v7772_v42, %s5768_s7  ;;  %4031 = vrot.lane.b32.xlu0 %v7772_v42, %s5767_s8  ;;  %v7817_v54 = vcombine.low %v3300_v43, %v3310_v10  ;;  %v3625_v56 = vrot.slane %v3623_v35, 4  ;;  %8731 = vst [vmem:[#allocation20_spill] sm:$0xff] %v7834_v18  ;;  %v3624_v42 = vsel %vm5959_vm7, %v5177_v15, %v3623_v35 }
 0x23e   : > { %8729 = vst [vmem:[#allocation18_spill] sm:$0xff] %v7815_v8  ;;  %v3618_v29 = vrot.slane %v3616_v62, 4  ;;  %v7851_v15 = vrot.slane %v3360_v58, 4 }
 0x23f   : > { %8730 = vst [vmem:[#allocation19_spill] sm:$0xff] %v7817_v54  ;;  %v3627_v51 = vsel %vm5959_vm7, %v3625_v56, %v3626_v24  ;;  %v7855_v24 = vrot.slane %v3363_v61, 5 }
 0x241   : > { %3843 = vrot.lane.b32.xlu1 %v7785_v39, %s5764_s25  ;;  %4062 = vrot.lane.b32.xlu0 %v7785_v39, %s5768_s7 }
 0x243   : > { %v5522_v34 = vpop.f32.mrb[20].mxu0 }
 0x244   : > { %v2462_v25 = vadd.f32 %v7700_v59, %v5522_v34  ;;  %v2453_v3 = vpop.f32.mrb[21].mxu0 }
 0x245   : > { %v2454_v17 = vadd.f32 %v7700_v59, %v2453_v3  ;;  %3958 = vrot.lane.b32.xlu1 %v7815_v8, %s5768_s7  ;;  %4029 = vrot.lane.b32.xlu0 %v7815_v8, %s5767_s8  ;;  %v5523_v26 = vpop.f32.mrb[22].mxu0  ;;  %v5176_v8 = vrot.slane %v7798_v48, 9 }
 0x246   : > { %v2522_v10 = vmax.f32 %v2462_v25, 0.0  ;;  %v2465_v34 = vadd.f32 %v7700_v59, %v5523_v26  ;;  %v2456_v3 = vpop.f32.mrb[23].mxu0  ;;  %v3619_v25 = vrot.slane %v7832_v47, 5 }
 0x247   : > { %v2520_v20 = vmax.f32 %v2454_v17, 0.0  ;;  %v2457_v57 = vadd.f32 %v7700_v59, %v2456_v3  ;;  %v3617_v35 = vsel %vm5959_vm7, %v5176_v8, %v3616_v62  ;;  %v3981_v3 = vpop.permute.xlu0 %3980  ;;  %v3375_v8 = vrot.slane %v3373_v45, 4  ;;  %v3034_v45 = vld [vmem:[#allocation3 + $0x98] sm:$0x1] }
 0x248   : > { %v5334_v53 = vpack.c.bf16 %v2522_v10, %v2522_v10  ;;  %v2523_v39 = vmax.f32 %v2465_v34, 0.0  ;;  %v3620_v56 = vsel %vm5959_vm7, %v3618_v29, %v3619_v25  ;;  %v7857_v10 = vcombine.low %v3624_v42, %v3627_v51 }
 0x249   : > { %v5332_v43 = vpack.c.bf16 %v2520_v20, %v2520_v20  ;;  %v2521_v41 = vmax.f32 %v2457_v57, 0.0  ;;  %3841 = vrot.lane.b32.xlu1 %v7817_v54, %s5764_s25  ;;  %4060 = vrot.lane.b32.xlu0 %v7817_v54, %s5768_s7  ;;  %v3369_v34 = vshll.u32 %v7767_v27, 16  ;;  %v7860_v54 = vpop.permute.xlu1 %3909  ;;  %v3023_v27 = vld [vmem:[#allocation3 + $0x84] sm:$0xf] }
 0x24a   : > { %v2816_v17 = vshrl.u32 %v5334_v53, 16  ;;  %v5335_v26 = vpack.c.bf16 %v2523_v39, %v2523_v39  ;;  %v2819_v62 = vshll.u32 %v5334_v53, 16  ;;  %v3345_v53 = vshll.u32 %v7787_v50, 16 }
 0x24b   : > { %v2799_v20 = vshrl.u32 %v5332_v43, 16  ;;  %v5333_v57 = vpack.c.bf16 %v2521_v41, %v2521_v41  ;;  %v2802_v37 = vshll.u32 %v5332_v43, 16  ;;  %v7866_v41 = vcombine.low %v3617_v35, %v3620_v56  ;;  %v3027_v35 = vld [vmem:[#allocation3 + $0x8c] sm:$0x1] }
 0x24c   : > { %v2818_v13 = vrot.slane %v2816_v17, 7  ;;  %v2824_v58 = vshrl.u32 %v5335_v26, 16  ;;  %v2827_v61 = vshll.u32 %v5335_v26, 16  ;;  %v7869_v43 = vrot.slane %v3369_v34, 5 }
 0x24d   : > { %v2801_v39 = vrot.slane %v2799_v20, 7  ;;  %v2807_v22 = vshrl.u32 %v5333_v57, 16  ;;  %3927 = vrot.lane.b32.xlu1 %v7857_v10, %s5767_s8  ;;  %3998 = vrot.lane.b32.xlu0 %v7857_v10, %s5764_s25  ;;  %v2810_v17 = vshll.u32 %v5333_v57, 16  ;;  %v8732_v34 = vshrl.u32 %v7787_v50, 16 }
 0x24e   : > { %v2821_v51 = vor.u32 %v2819_v62, %v2818_v13  ;;  %v2826_v42 = vrot.slane %v2824_v58, 7  ;;  %v2822_v20 = vrot.slane %v2818_v13, 4 }
 0x24f   : > { %v2804_v29 = vor.u32 %v2802_v37, %v2801_v39  ;;  %v2809_v25 = vrot.slane %v2807_v22, 7  ;;  %v2805_v26 = vrot.slane %v2801_v39, 4  ;;  %v3351_v58 = vrot.slane %v8732_v34, 4 }
 0x250   : > { %v3031_v30 = vsel %vm7264_vm15, %v2821_v51, %v3030_v5  ;;  %v2829_v7 = vor.u32 %v2827_v61, %v2826_v42  ;;  %v2831_v18 = vrot.slane %v2826_v42, 4  ;;  %v7873_v56 = vpop.permute.xlu1 %3948  ;;  %v7875_v62 = vpop.permute.xlu0 %4019  ;;  %v3376_v42 = vor.u32 %v3375_v8, %v7869_v43 }
 0x251   : > { %3032 = vst [vmem:[#allocation3 + $0x90] sm:$0xf] %v3031_v30  ;;  %v3024_v37 = vsel %vm7264_vm15, %v2804_v29, %v3023_v27  ;;  %v2812_v22 = vor.u32 %v2810_v17, %v2809_v25  ;;  %v2814_v57 = vrot.slane %v2809_v25, 4  ;;  %3925 = vrot.lane.b32.xlu1 %v7866_v41, %s5767_s8  ;;  %3996 = vrot.lane.b32.xlu0 %v7866_v41, %s5764_s25  ;;  %v7887_v30 = vrot.slane %v3345_v53, 5 }
 0x252   : > { %3025 = vst [vmem:[#allocation3 + $0x84] sm:$0xf] %v3024_v37  ;;  %v2830_v5 = vsel %vm6002_vm12, %v2822_v20, %v2829_v7  ;;  %v3035_v13 = vsel %vm7270_vm0, %v2831_v18, %v3034_v45  ;;  %v8733_v7 = vcombine.low %v7800_v49, %v7802_v40  ;;  %v8734_v61 = vshrl.u32 %v7798_v48, 16 }
 0x253   : > { %3033 = vst.msk [vmem:[#allocation3 + $0x94] sm:$0xf] %vm280_vm13, %v2830_v5  ;;  %3036 = vst [vmem:[#allocation3 + $0x98] sm:$0x1] %v3035_v13  ;;  %v2813_v39 = vsel %vm6002_vm12, %v2805_v26, %v2812_v22  ;;  %v3028_v51 = vsel %vm7270_vm0, %v2814_v57, %v3027_v35  ;;  %v8735_v29 = vshll.u32 %v7798_v48, 16  ;;  %v4217_v49 = vsel %vm2242_vm8, %v7476_v6, %v3981_v3 }
 0x254   : > { %v4087_v18 = vsel %vm2242_vm8, %v8733_v7, %v7722_v52  ;;  %3026 = vst.msk [vmem:[#allocation3 + $0x88] sm:$0xf] %vm280_vm13, %v2813_v39  ;;  %3029 = vst [vmem:[#allocation3 + $0x8c] sm:$0x1] %v3028_v51  ;;  %v7902_v50 = vpop.permute.xlu1 %3831  ;;  %v7904_v27 = vpop.permute.xlu0 %4017  ;;  %v3338_v53 = vrot.slane %v8734_v61, 4  ;;  %v3366_v52 = vor.u32 %v7855_v24, %v7851_v15  ;;  %v3379_v40 = vshll.u32 %v7808_v36, 16 }
 0x255   : > { %v3341_v45 = vrot.slane %v8735_v29, 5  ;;  %v3352_v25 = vor.u32 %v3351_v58, %v7887_v30  ;;  %v4135_v17 = vsel %vm4133_vm6, %v4087_v18, %v7753_v63  ;;  %v4264_v20 = vsel %vm4133_vm6, %v4217_v49, %v7783_v33  ;;  %v5684_v36 = vld [vmem:[%s8683_s3 + $0x88] sm:$0xff]  }
 0x256   : > { %v3377_v48 = vrot.slane %v3376_v42, 4  ;;  %v3355_v26 = vshll.u32 %v7832_v47, 16  ;;  %v3367_v15 = vrot.slane %v3366_v52, 4  ;;  %v4168_v24 = vsel %vm4166_vm9, %v4135_v17, %v7789_v28 }
 0x257   : > { %v3342_v35 = vor.u32 %v3341_v45, %v3338_v53  ;;  %v3381_v37 = vrot.slane %v3379_v40, 5  ;;  %v3353_v22 = vrot.slane %v3352_v25, 4 }
 0x258   : > { %v4051_v8 = vpop.permute.xlu0 %4050  ;;  %v7928_v63 = vpop.permute.xlu1 %3946  ;;  %v7930_v3 = vld [vmem:[#allocation3 + $0x90] sm:$0xf]  ;;  %v3357_v13 = vrot.slane %v3355_v26, 5  ;;  %v3372_v34 = vsel %vm5994_vm11, %v3367_v15, %v7869_v43 }
 0x259   : > { %v4296_v6 = vsel %vm4166_vm9, %v4264_v20, %v4051_v8  ;;  %v3382_v28 = vsel %vm5994_vm11, %v3377_v48, %v3381_v37  ;;  %v3343_v5 = vrot.slane %v3342_v35, 4  ;;  %v3408_v58 = vshrl.u32 %v7930_v3, 16  ;;  %v7961_v42 = vld [vmem:[#allocation3 + $0x84] sm:$0xf] }
 0x25a   : > { %4574 = vmatprep.mubr.bf16.mxu0 %v4296_v6  ;;  %v7932_v33 = vld [vmem:[#allocation3 + $0x94] sm:$0xf]  ;;  %v3358_v39 = vsel %vm5994_vm11, %v3353_v22, %v3357_v13  ;;  %v7959_v18 = vcombine.low %v3372_v34, %v3382_v28  ;;  %v3103_v61 = vld [vmem:[#allocation3 + $0x98] sm:$0x1]  ;;  %v5179_v49 = vrot.slane %v7930_v3, 9  ;;  %v3384_v17 = vshrl.u32 %v7961_v42, 16 }
 0x25b   : > { %4575 = vmatmul.mubr.bf16.vlgmr.msra.gmra.mrb[32].mxu0 %v4168_v24  ;;  %v7936_v47 = vcombine.low %v7930_v3, %v7932_v33  ;;  %v7938_v57 = vld [vmem:[#allocation3 + $0x88] sm:$0xf]  ;;  %v3421_v7 = vshrl.u32 %v7932_v33, 16  ;;  %v3417_v43 = vshll.u32 %v7932_v33, 16  ;;  %v3348_v29 = vsel %vm5994_vm11, %v3343_v5, %v7887_v30  ;;  %v7976_v40 = vld [vmem:[#allocation3 + $0x8c] sm:$0x1] }
 0x25c   : > { %5533 = vmatpush3.bf16.msra.mxu0 %v7464_v21  ;;  %5536 = vmatprep.mubr.msk.bf16.mxu0 %vm2242_vm8, %v7337_v32  ;;  %v3637_v21 = vrot.slane %v7932_v33, 5  ;;  %v3411_v32 = vshll.u32 %v7930_v3, 16  ;;  %v3630_v51 = vrot.slane %v7938_v57, 5  ;;  %v7964_v53 = vpop.permute.xlu1 %3829  ;;  %v7973_v45 = vcombine.low %v3348_v29, %v3358_v39  ;;  %v7993_v37 = vpop.permute.xlu0 %3986 }
 0x25d   : > { %8736 = vst [vmem:[#allocation21_spill] sm:$0xff] %v7936_v47  ;;  %3964 = vrot.lane.b32.xlu1 %v7936_v47, %s5768_s7  ;;  %4035 = vrot.lane.b32.xlu0 %v7936_v47, %s5767_s8  ;;  %v7980_v25 = vcombine.low %v7961_v42, %v7938_v57  ;;  %v3640_v30 = vrot.slane %v3103_v61, 5  ;;  %v3410_v48 = vrot.slane %v3408_v58, 4  ;;  %v7985_v26 = vrot.slane %v3417_v43, 5 }
 0x25e   : > { %5534 = vmatprep.subr.bf16.mxu0 %v5684_v36  ;;  %v3639_v52 = vrot.slane %v3637_v21, 4  ;;  %v3632_v8 = vrot.slane %v3630_v51, 4  ;;  %v3413_v35 = vrot.slane %v3411_v32, 5  ;;  %v3423_v6 = vrot.slane %v3421_v7, 4 }
 0x25f   : > { %8737 = vst [vmem:[#allocation22_spill] sm:$0xff] %v7980_v25  ;;  %v3397_v24 = vshrl.u32 %v7938_v57, 16  ;;  %v3387_v3 = vshll.u32 %v7961_v42, 16  ;;  %v3633_v33 = vrot.slane %v7976_v40, 5  ;;  %v5178_v28 = vrot.slane %v7961_v42, 9 }
 0x260   : > { %5535 = vmatpush3.bf16.msra.mxu0 %v5684_v36  ;;  %v3427_v5 = vshll.u32 %v3103_v61, 16  ;;  %v8003_v13 = vpop.permute.xlu1 %3915  ;;  %v3638_v39 = vsel %vm5959_vm7, %v5179_v49, %v3637_v21 }
 0x261   : > { %3847 = vrot.lane.b32.xlu1 %v7959_v18, %s5764_s25  ;;  %4066 = vrot.lane.b32.xlu0 %v7959_v18, %s5768_s7  ;;  %v3634_v7 = vsel %vm5959_vm7, %v3632_v8, %v3633_v33 }
 0x262   : > { %v3429_v49 = vrot.slane %v3427_v5, 5  ;;  %v3044_v5 = vld [vmem:[#allocation3 + $0xa8] sm:$0xf] }
 0x263   : > { %5537 = vmatmul.mubr.msk.bf16.vlgmr.msra.gmra.mrb[36].mxu0 %vm2242_vm8, %v7500_v11  ;;  %v5526_v20 = vpop.f32.mrb[24].mxu0 }
 0x264   : > { %v2478_v36 = vadd.f32 %v7700_v59, %v5526_v20  ;;  %5540 = vmatprep.mubr.msk.bf16.mxu0 %vm2242_vm8, %v7484_v55  ;;  %v2469_v15 = vpop.f32.mrb[25].mxu0  ;;  %v3641_v55 = vsel %vm5959_vm7, %v3639_v52, %v3640_v30  ;;  %v3414_v20 = vor.u32 %v3413_v35, %v3410_v48  ;;  %v3424_v52 = vor.u32 %v3423_v6, %v7985_v26 }
 0x265   : > { %v2470_v11 = vadd.f32 %v7700_v59, %v2469_v15  ;;  %3962 = vrot.lane.b32.xlu1 %v7980_v25, %s5768_s7  ;;  %4033 = vrot.lane.b32.xlu0 %v7980_v25, %s5767_s8  ;;  %v5527_v22 = vpop.f32.mrb[26].mxu0  ;;  %v8012_v30 = vcombine.low %v3638_v39, %v3641_v55  ;;  %v8022_v35 = vrot.slane %v3384_v17, 4  ;;  %v3393_v6 = vshll.u32 %v7938_v57, 16 }
 0x266   : > { %v2526_v34 = vmax.f32 %v2478_v36, 0.0  ;;  %v2481_v58 = vadd.f32 %v7700_v59, %v5527_v22  ;;  %v2472_v32 = vpop.f32.mrb[27].mxu0  ;;  %v3631_v36 = vsel %vm5959_vm7, %v5178_v28, %v3630_v51  ;;  %v3415_v51 = vrot.slane %v3414_v20, 4  ;;  %v3985_v28 = vpop.permute.xlu0 %3984  ;;  %v3037_v20 = vld [vmem:[#allocation3 + $0x9c] sm:$0xf] }
 0x267   : > { %v2524_v43 = vmax.f32 %v2470_v11, 0.0  ;;  %v2473_v29 = vadd.f32 %v7700_v59, %v2472_v32  ;;  %v8020_v21 = vcombine.low %v3631_v36, %v3634_v7  ;;  %v3425_v55 = vrot.slane %v3424_v52, 4 }
 0x268   : > { %v5338_v42 = vpack.c.bf16 %v2526_v34, %v2526_v34  ;;  %v2527_v61 = vmax.f32 %v2481_v58, 0.0  ;;  %v8027_v34 = vpop.permute.xlu1 %3913  ;;  %v3389_v17 = vrot.slane %v3387_v3, 5 }
 0x269   : > { %v5336_v15 = vpack.c.bf16 %v2524_v43, %v2524_v43  ;;  %v2525_v22 = vmax.f32 %v2473_v29, 0.0  ;;  %3845 = vrot.lane.b32.xlu1 %v7973_v45, %s5764_s25  ;;  %4064 = vrot.lane.b32.xlu0 %v7973_v45, %s5768_s7 }
 0x26a   : > { %v2850_v8 = vshrl.u32 %v5338_v42, 16  ;;  %v5339_v48 = vpack.c.bf16 %v2527_v61, %v2527_v61  ;;  %v2853_v32 = vshll.u32 %v5338_v42, 16  ;;  %v8035_v61 = vrot.slane %v3393_v6, 5 }
 0x26b   : > { %v2833_v33 = vshrl.u32 %v5336_v15, 16  ;;  %v5337_v11 = vpack.c.bf16 %v2525_v22, %v2525_v22  ;;  %5541 = vmatmul.mubr.msk.bf16.gmra.mrb[40].mxu0 %vm2242_vm8, %v7607_v9  ;;  %v2836_v57 = vshll.u32 %v5336_v15, 16  ;;  %v3399_v9 = vrot.slane %v3397_v24, 4  ;;  %v3041_v24 = vld [vmem:[#allocation3 + $0xa4] sm:$0x1] }
 0x26c   : > { %v2852_v58 = vrot.slane %v2850_v8, 7  ;;  %v2858_v39 = vshrl.u32 %v5339_v48, 16  ;;  %5544 = vmatprep.mubr.msk.bf16.mxu0 %vm2242_vm8, %v7599_v2  ;;  %v2861_v42 = vshll.u32 %v5339_v48, 16  ;;  %v3048_v2 = vld [vmem:[#allocation3 + $0xb0] sm:$0x1]  ;;  %v3430_v15 = vsel %vm5994_vm11, %v3425_v55, %v3429_v49 }
 0x26d   : > { %v2835_v7 = vrot.slane %v2833_v33, 7  ;;  %v2841_v43 = vshrl.u32 %v5337_v11, 16  ;;  %3931 = vrot.lane.b32.xlu1 %v8012_v30, %s5767_s8  ;;  %4002 = vrot.lane.b32.xlu0 %v8012_v30, %s5764_s25  ;;  %v2844_v22 = vshll.u32 %v5337_v11, 16 }
 0x26e   : > { %v2855_v29 = vor.u32 %v2853_v32, %v2852_v58  ;;  %v2860_v52 = vrot.slane %v2858_v39, 7  ;;  %v2856_v8 = vrot.slane %v2852_v58, 4  ;;  %v3420_v58 = vsel %vm5994_vm11, %v3415_v51, %v7985_v26 }
 0x26f   : > { %v2838_v36 = vor.u32 %v2836_v57, %v2835_v7  ;;  %v2843_v3 = vrot.slane %v2841_v43, 7  ;;  %v2839_v48 = vrot.slane %v2835_v7, 4  ;;  %v3390_v43 = vor.u32 %v3389_v17, %v8022_v35 }
 0x270   : > { %v3045_v33 = vsel %vm7264_vm15, %v2855_v29, %v3044_v5  ;;  %v2863_v47 = vor.u32 %v2861_v42, %v2860_v52  ;;  %v2865_v25 = vrot.slane %v2860_v52, 4  ;;  %v8041_v32 = vpop.permute.xlu1 %3952  ;;  %v8043_v39 = vpop.permute.xlu0 %4023  ;;  %v4220_v35 = vsel %vm2242_vm8, %v7434_v60, %v7822_v4 }
 0x271   : > { %3046 = vst [vmem:[#allocation3 + $0xa8] sm:$0xf] %v3045_v33  ;;  %v3038_v6 = vsel %vm7264_vm15, %v2838_v36, %v3037_v20  ;;  %v2846_v11 = vor.u32 %v2844_v22, %v2843_v3  ;;  %v2848_v57 = vrot.slane %v2843_v3, 4  ;;  %3929 = vrot.lane.b32.xlu1 %v8020_v21, %s5767_s8  ;;  %4000 = vrot.lane.b32.xlu0 %v8020_v21, %s5764_s25 }
 0x272   : > { %3039 = vst [vmem:[#allocation3 + $0x9c] sm:$0xf] %v3038_v6  ;;  %v2864_v49 = vsel %vm6002_vm12, %v2856_v8, %v2863_v47  ;;  %v3049_v55 = vsel %vm7270_vm0, %v2865_v25, %v3048_v2  ;;  %v8065_v47 = vcombine.low %v3420_v58, %v3430_v15  ;;  %v4090_v25 = vsel %vm2242_vm8, %v7329_v0, %v7964_v53 }
 0x273   : > { %3047 = vst.msk [vmem:[#allocation3 + $0xac] sm:$0xf] %vm280_vm13, %v2864_v49  ;;  %3050 = vst [vmem:[#allocation3 + $0xb0] sm:$0x1] %v3049_v55  ;;  %v2847_v5 = vsel %vm6002_vm12, %v2839_v48, %v2846_v11  ;;  %v3042_v7 = vsel %vm7270_vm0, %v2848_v57, %v3041_v24  ;;  %5545 = vmatmul.mubr.msk.bf16.gmra.mrb[44].mxu0 %vm2242_vm8, %v7728_v23  ;;  %v3400_v23 = vor.u32 %v3399_v9, %v8035_v61 }
 0x274   : > { %3040 = vst.msk [vmem:[#allocation3 + $0xa0] sm:$0xf] %vm280_vm13, %v2847_v5  ;;  %3043 = vst [vmem:[#allocation3 + $0xa4] sm:$0x1] %v3042_v7  ;;  %v8071_v26 = vpop.permute.xlu1 %3835  ;;  %5548 = vmatprep.mubr.msk.bf16.mxu0 %vm2242_vm8, %v7718_v16  ;;  %v4055_v51 = vpop.permute.xlu0 %4054  ;;  %v4137_v29 = vsel %vm4133_vm6, %v4090_v25, %v7860_v54  ;;  %v3403_v0 = vshll.u32 %v7976_v40, 16  ;;  %v4223_v53 = vsel %vm2242_vm8, %v7563_v19, %v3985_v28  ;;  %v3391_v16 = vrot.slane %v3390_v43, 4 }
 0x275   : > { %3851 = vrot.lane.b32.xlu1 %v8065_v47, %s5764_s25  ;;  %v3401_v9 = vrot.slane %v3400_v23, 4  ;;  %v4266_v54 = vsel %vm4133_vm6, %v4220_v35, %v7904_v27  ;;  %v4171_v28 = vsel %vm4166_vm9, %v4137_v29, %v7763_v14  ;;  %v4268_v27 = vsel %vm4133_vm6, %v4223_v53, %v7875_v62 }
 0x276   : > { %v3405_v2 = vrot.slane %v3403_v0, 5  ;;  %v4093_v25 = vsel %vm2242_vm8, %v7305_v44, %v7902_v50 }
 0x278   : > { %v8084_v20 = vpop.permute.xlu0 %4021  ;;  %v8086_v52 = vld [vmem:[#allocation3 + $0xa8] sm:$0xf]  ;;  %v8091_v17 = vpop.permute.xlu1 %3950 }
 0x279   : > { %v3456_v40 = vshrl.u32 %v8086_v52, 16  ;;  %v3104_v19 = vld [vmem:[#allocation3 + $0x9c] sm:$0xf]  ;;  %v3459_v36 = vshll.u32 %v8086_v52, 16 }
 0x27a   : > { %v8095_v42 = vld [vmem:[#allocation3 + $0xac] sm:$0xf]  ;;  %v3432_v33 = vshrl.u32 %v3104_v19, 16  ;;  %v3435_v48 = vshll.u32 %v3104_v19, 16  ;;  %v3109_v11 = vld [vmem:[#allocation3 + $0xb0] sm:$0x1] }
 0x27b   : > { %5549 = vmatmul.mubr.msk.bf16.gmra.mrb[48].mxu0 %vm2242_vm8, %v7866_v41  ;;  %v8105_v60 = vcombine.low %v8086_v52, %v8095_v42  ;;  %v3105_v4 = vld [vmem:[#allocation3 + $0xa0] sm:$0xf]  ;;  %v3469_v14 = vshrl.u32 %v8095_v42, 16  ;;  %v3396_v41 = vsel %vm5994_vm11, %v3391_v16, %v8035_v61  ;;  %v8117_v15 = vld [vmem:[#allocation3 + $0xa4] sm:$0x1]  ;;  %v3651_v24 = vrot.slane %v8095_v42, 5 }
 0x27c   : > { %5552 = vmatprep.mubr.msk.bf16.mxu0 %vm2242_vm8, %v7857_v10  ;;  %v4053_v3 = vpop.permute.xlu0 %4052  ;;  %v8112_v22 = vcombine.low %v3104_v19, %v3105_v4  ;;  %v3644_v8 = vrot.slane %v3105_v4, 5  ;;  %v3406_v10 = vsel %vm5994_vm11, %v3401_v9, %v3405_v2  ;;  %v4302_v61 = vsel %vm4166_vm9, %v4268_v27, %v4055_v51  ;;  %v8128_v49 = vpop.permute.xlu1 %3833 }
 0x27d   : > { %4039 = vrot.lane.b32.xlu0 %v8105_v60, %s5767_s8  ;;  %v4299_v62 = vsel %vm4166_vm9, %v4266_v54, %v4053_v3  ;;  %v3458_v57 = vrot.slane %v3456_v40, 4  ;;  %v3445_v55 = vshrl.u32 %v3105_v4, 16  ;;  %v3647_v58 = vrot.slane %v8117_v15, 5  ;;  %v8738_v40 = vld [vmem:[#allocation20_spill] sm:$0xff] }
 0x27e   : > { %4582 = vmatprep.mubr.bf16.mxu1 %v4299_v62  ;;  %3966 = vrot.lane.b32.xlu1 %v8112_v22, %s5768_s7  ;;  %v3646_v6 = vrot.slane %v3644_v8, 4  ;;  %v3461_v5 = vrot.slane %v3459_v36, 5  ;;  %v3465_v7 = vshll.u32 %v8095_v42, 16  ;;  %v8135_v43 = vcombine.low %v3396_v41, %v3406_v10 }
 0x27f   : > { %4583 = vmatmul.mubr.bf16.vlgmr.msra.gmra.mrb[0].mxu1 %v4171_v28  ;;  %v5180_v51 = vrot.slane %v3104_v19, 9  ;;  %v3471_v23 = vrot.slane %v3469_v14, 4  ;;  %v3653_v0 = vrot.slane %v3651_v24, 4  ;;  %v3475_v53 = vshll.u32 %v3109_v11, 16 }
 0x280   : > { %4590 = vmatprep.mubr.bf16.mxu1 %v4302_v61  ;;  %v3648_v29 = vsel %vm5959_vm7, %v3646_v6, %v3647_v58  ;;  %v3434_v16 = vrot.slane %v3432_v33, 4  ;;  %v3462_v44 = vor.u32 %v3461_v5, %v3458_v57  ;;  %v3467_v50 = vrot.slane %v3465_v7, 5  ;;  %v8167_v10 = vpop.permute.xlu0 %3990 }
 0x281   : > { %4070 = vrot.lane.b32.xlu0 %v8065_v47, %s5768_s7  ;;  %v3437_v35 = vrot.slane %v3435_v48, 5  ;;  %v3441_v9 = vshll.u32 %v3105_v4, 16  ;;  %v3645_v54 = vsel %vm5959_vm7, %v5180_v51, %v3644_v8  ;;  %v4139_v19 = vsel %vm4133_vm6, %v4093_v25, %v8738_v40 }
 0x282   : > { %3849 = vrot.lane.b32.xlu1 %v8135_v43, %s5764_s25  ;;  %v3654_v28 = vrot.slane %v3109_v11, 5  ;;  %v3447_v36 = vrot.slane %v3445_v55, 4  ;;  %v8153_v2 = vcombine.low %v3645_v54, %v3648_v29  ;;  %v4174_v4 = vsel %vm4166_vm9, %v4139_v19, %v7928_v63 }
 0x283   : > { %5553 = vmatmul.mubr.msk.bf16.gmra.mrb[52].mxu0 %vm2242_vm8, %v8020_v21  ;;  %v3472_v3 = vor.u32 %v3471_v23, %v3467_v50  ;;  %v8157_v14 = vrot.slane %v3441_v9, 5  ;;  %v8159_v21 = vpop.permute.xlu1 %3919  ;;  %v5181_v62 = vrot.slane %v8086_v52, 9  ;;  %v3477_v33 = vrot.slane %v3475_v53, 5 }
 0x284   : > { %v5530_v27 = vpop.f32.mrb[28].mxu0  ;;  %5556 = vmatprep.mubr.msk.bf16.mxu0 %vm2242_vm8, %v8012_v30  ;;  %v3655_v30 = vsel %vm5959_vm7, %v3653_v0, %v3654_v28  ;;  %v3463_v61 = vrot.slane %v3462_v44, 4  ;;  %v3438_v11 = vor.u32 %v3437_v35, %v3434_v16  ;;  %v3451_v5 = vshll.u32 %v8117_v15, 16  ;;  %v3989_v40 = vpop.permute.xlu0 %3988 }
 0x285   : > { %v2494_v41 = vadd.f32 %v7700_v59, %v5530_v27  ;;  %v2485_v8 = vpop.f32.mrb[29].mxu0  ;;  %4037 = vrot.lane.b32.xlu0 %v8112_v22, %s5767_s8  ;;  %v3473_v6 = vrot.slane %v3472_v3, 4  ;;  %v3448_v52 = vor.u32 %v3447_v36, %v8157_v14  ;;  %v3652_v51 = vsel %vm5959_vm7, %v5181_v62, %v3651_v24 }
 0x286   : > { %v2486_v63 = vadd.f32 %v7700_v59, %v2485_v8  ;;  %v5531_v48 = vpop.f32.mrb[30].mxu0  ;;  %3933 = vrot.lane.b32.xlu1 %v8153_v2, %s5767_s8  ;;  %v3439_v15 = vrot.slane %v3438_v11, 4  ;;  %v3468_v24 = vsel %vm5994_vm11, %v3463_v61, %v3467_v50  ;;  %v3453_v9 = vrot.slane %v3451_v5, 5  ;;  %v3058_v8 = vld [vmem:[#allocation3 + $0xc0] sm:$0xf] }
 0x287   : > { %v2530_v57 = vmax.f32 %v2494_v41, 0.0  ;;  %v2497_v55 = vadd.f32 %v7700_v59, %v5531_v48  ;;  %v2488_v58 = vpop.f32.mrb[31].mxu0  ;;  %4591 = vmatmul.mubr.bf16.gmra.mrb[4].mxu1 %v4174_v4  ;;  %v3478_v0 = vsel %vm5994_vm11, %v3473_v6, %v3477_v33  ;;  %v3449_v53 = vrot.slane %v3448_v52, 4  ;;  %v8190_v54 = vpop.permute.xlu1 %3917 }
 0x288   : > { %v2528_v7 = vmax.f32 %v2486_v63, 0.0  ;;  %v2489_v25 = vadd.f32 %v7700_v59, %v2488_v58  ;;  %v5231_v59 = vcombine.low %v3652_v51, %v3655_v30  ;;  %v8193_v36 = vcombine.low %v3468_v24, %v3478_v0  ;;  %v3051_v63 = vld [vmem:[#allocation3 + $0xb4] sm:$0xf]  ;;  %v3055_v0 = vld [vmem:[#allocation3 + $0xbc] sm:$0x1] }
 0x289   : > { %v5342_v23 = vpack.c.bf16 %v2530_v57, %v2530_v57  ;;  %v2531_v29 = vmax.f32 %v2497_v55, 0.0  ;;  %4068 = vrot.lane.b32.xlu0 %v8135_v43, %s5768_s7  ;;  %v3454_v41 = vsel %vm5994_vm11, %v3449_v53, %v3453_v9  ;;  %v3444_v6 = vsel %vm5994_vm11, %v3439_v15, %v8157_v14  ;;  %v3062_v57 = vld [vmem:[#allocation3 + $0xc8] sm:$0x1]  ;;  %v8739_v9 = vld [vmem:[#allocation8_spill] sm:$0xff] }
 0x28a   : > { %v5340_v16 = vpack.c.bf16 %v2528_v7, %v2528_v7  ;;  %v2529_v44 = vmax.f32 %v2489_v25, 0.0  ;;  %3968 = vrot.lane.b32.xlu1 %v8105_v60, %s5768_s7  ;;  %v8207_v7 = vcombine.low %v3444_v6, %v3454_v41 }
 0x28b   : > { %v2884_v42 = vshrl.u32 %v5342_v23, 16  ;;  %v5343_v35 = vpack.c.bf16 %v2531_v29, %v2531_v29  ;;  %5557 = vmatmul.mubr.msk.bf16.gmra.mrb[56].mxu0 %vm2242_vm8, %v8153_v2  ;;  %v2887_v4 = vshll.u32 %v5342_v23, 16 }
 0x28c   : > { %v2867_v19 = vshrl.u32 %v5340_v16, 16  ;;  %v5341_v28 = vpack.c.bf16 %v2529_v44, %v2529_v44  ;;  %5560 = vmatprep.mubr.msk.bf16.mxu0 %vm2242_vm8, %v5231_v59  ;;  %v2870_v62 = vshll.u32 %v5340_v16, 16 }
 0x28d   : > { %v2886_v27 = vrot.slane %v2884_v42, 7  ;;  %v2892_v3 = vshrl.u32 %v5343_v35, 16  ;;  %4006 = vrot.lane.b32.xlu0 %v5231_v59, %s5764_s25  ;;  %v2895_v61 = vshll.u32 %v5343_v35, 16 }
 0x28e   : > { %v2869_v50 = vrot.slane %v2867_v19, 7  ;;  %v2875_v30 = vshrl.u32 %v5341_v28, 16  ;;  %3855 = vrot.lane.b32.xlu1 %v8193_v36, %s5764_s25  ;;  %v2878_v58 = vshll.u32 %v5341_v28, 16  ;;  %v4096_v19 = vsel %vm2242_vm8, %v8739_v9, %v8128_v49  ;;  %v8237_v28 = vld [vmem:[#allocation3 + $0xd0] sm:$0xf] }
 0x28f   : > { %v2889_v33 = vor.u32 %v2887_v4, %v2886_v27  ;;  %v2894_v48 = vrot.slane %v2892_v3, 7  ;;  %v2890_v25 = vrot.slane %v2886_v27, 4  ;;  %v4229_v27 = vsel %vm2242_vm8, %v8740_v12, %v3989_v40  ;;  %v8741_v3 = vld [vmem:[#allocation10_spill] sm:$0xff]  ;;  %v8742_v40 = vld [vmem:[#allocation7_spill] sm:$0xff] }
 0x290   : > { %v2872_v11 = vor.u32 %v2870_v62, %v2869_v50  ;;  %v2877_v55 = vrot.slane %v2875_v30, 7  ;;  %v8203_v52 = vpop.permute.xlu1 %3956  ;;  %v8205_v5 = vpop.permute.xlu0 %4027  ;;  %v2873_v14 = vrot.slane %v2869_v50, 4  ;;  %v4141_v49 = vsel %vm4133_vm6, %v4096_v19, %v8027_v34 }
 0x291   : > { %v3059_v51 = vsel %vm7264_vm15, %v2889_v33, %v3058_v8  ;;  %v2897_v23 = vor.u32 %v2895_v61, %v2894_v48  ;;  %v2899_v29 = vrot.slane %v2894_v48, 4  ;;  %4004 = vrot.lane.b32.xlu0 %v8153_v2, %s5764_s25  ;;  %v4226_v41 = vsel %vm2242_vm8, %v8741_v3, %v7993_v37 }
 0x292   : > { %3060 = vst [vmem:[#allocation3 + $0xc0] sm:$0xf] %v3059_v51  ;;  %v3052_v53 = vsel %vm7264_vm15, %v2872_v11, %v3051_v63  ;;  %v2880_v16 = vor.u32 %v2878_v58, %v2877_v55  ;;  %v2882_v44 = vrot.slane %v2877_v55, 4  ;;  %3853 = vrot.lane.b32.xlu1 %v8207_v7, %s5764_s25  ;;  %v3698_v50 = vshrl.u32 %v8235_v46, 16 }
 0x293   : > { %3053 = vst [vmem:[#allocation3 + $0xb4] sm:$0xf] %v3052_v53  ;;  %v2898_v15 = vsel %vm6002_vm12, %v2890_v25, %v2897_v23  ;;  %v3063_v42 = vsel %vm7270_vm0, %v2899_v29, %v3062_v57  ;;  %v3701_v62 = vshll.u32 %v8235_v46, 16  ;;  %v8257_v30 = vsel %vm2242_vm8, %v8742_v40, %v8071_v26 }
 0x294   : > { %3061 = vst.msk [vmem:[#allocation3 + $0xc4] sm:$0xf] %vm280_vm13, %v2898_v15  ;;  %3064 = vst [vmem:[#allocation3 + $0xc8] sm:$0x1] %v3063_v42  ;;  %v2881_v2 = vsel %vm6002_vm12, %v2873_v14, %v2880_v16  ;;  %v3056_v31 = vsel %vm7270_vm0, %v2882_v44, %v3055_v0  ;;  %v8226_v35 = vpop.permute.xlu1 %3839  ;;  %v4059_v24 = vpop.permute.xlu0 %4058  ;;  %v4270_v34 = vsel %vm4133_vm6, %v4226_v41, %v8084_v20  ;;  %v3711_v37 = vshrl.u32 %v8237_v28, 16 }
 0x295   : > { %3054 = vst.msk [vmem:[#allocation3 + $0xb8] sm:$0xf] %vm280_vm13, %v2881_v2  ;;  %3057 = vst [vmem:[#allocation3 + $0xbc] sm:$0x1] %v3056_v31  ;;  %4074 = vrot.lane.b32.xlu0 %v8193_v36, %s5768_s7  ;;  %v3707_v63 = vshll.u32 %v8237_v28, 16  ;;  %v4177_v6 = vsel %vm4166_vm9, %v4141_v49, %v7873_v56  ;;  %v4272_v11 = vsel %vm4133_vm6, %v4229_v27, %v8043_v39 }
 0x296   : > { %3935 = vrot.lane.b32.xlu1 %v5231_v59, %s5767_s8  ;;  %v4308_v58 = vsel %vm4166_vm9, %v4272_v11, %v4059_v24  ;;  %v5236_v1 = vcombine.low %v8235_v46, %v8237_v28 }
 0x298   : > { %v8241_v4 = vpop.permute.xlu0 %4025  ;;  %v8248_v8 = vpop.permute.xlu1 %3954 }
 0x299   : > { %4072 = vrot.lane.b32.xlu0 %v8207_v7, %s5768_s7  ;;  %v3113_v59 = vld [vmem:[#allocation3 + $0xc0] sm:$0xf] }
 0x29a   : > { %v3110_v33 = vld [vmem:[#allocation3 + $0xb4] sm:$0xf]  ;;  %v3664_v25 = vshrl.u32 %v3113_v59, 16  ;;  %v3667_v20 = vshll.u32 %v3113_v59, 16  ;;  %v5183_v16 = vrot.slane %v3113_v59, 9 }
 0x29b   : > { %v3480_v48 = vshrl.u32 %v3110_v33, 16  ;;  %v3483_v61 = vshll.u32 %v3110_v33, 16  ;;  %v3114_v57 = vld [vmem:[#allocation3 + $0xc4] sm:$0xf]  ;;  %v3115_v53 = vld [vmem:[#allocation3 + $0xc8] sm:$0x1] }
 0x29c   : > { %v4057_v55 = vpop.permute.xlu0 %4056  ;;  %v3111_v26 = vld [vmem:[#allocation3 + $0xb8] sm:$0xf]  ;;  %v3692_v51 = vrot.slane %v3114_v57, 5  ;;  %v3112_v14 = vld [vmem:[#allocation3 + $0xbc] sm:$0x1]  ;;  %v3677_v56 = vshrl.u32 %v3114_v57, 16  ;;  %v8271_v42 = vpop.permute.xlu1 %3837  ;;  %v5233_v19 = vcombine.low %v3113_v59, %v3114_v57 }
 0x29d   : > { %v4305_v23 = vsel %vm4166_vm9, %v4270_v34, %v4057_v55  ;;  %v3493_v29 = vshrl.u32 %v3111_v26, 16  ;;  %v8269_v0 = vcombine.low %v3110_v33, %v3111_v26  ;;  %v5182_v44 = vrot.slane %v3110_v33, 9 }
 0x29e   : > { %4598 = vmatprep.mubr.bf16.mxu1 %v4305_v23  ;;  %v3658_v39 = vrot.slane %v3111_v26, 5  ;;  %v3694_v15 = vrot.slane %v3692_v51, 4  ;;  %v3695_v2 = vrot.slane %v3115_v53, 5  ;;  %v3482_v31 = vrot.slane %v3480_v48, 4 }
 0x29f   : > { %3970 = vrot.lane.b32.xlu1 %v8269_v0, %s5768_s7  ;;  %4041 = vrot.lane.b32.xlu0 %v8269_v0, %s5767_s8  ;;  %v3485_v24 = vrot.slane %v3483_v61, 5  ;;  %v3489_v9 = vshll.u32 %v3111_v26, 16  ;;  %v3661_v27 = vrot.slane %v3112_v14, 5  ;;  %v3495_v49 = vrot.slane %v3493_v29, 4 }
 0x2a0   : > { %4599 = vmatmul.mubr.bf16.gmra.mrb[8].mxu1 %v4177_v6  ;;  %v3660_v12 = vrot.slane %v3658_v39, 4  ;;  %v3696_v3 = vsel %vm5959_vm7, %v3694_v15, %v3695_v2  ;;  %v3499_v34 = vshll.u32 %v3112_v14, 16  ;;  %v3659_v33 = vsel %vm5959_vm7, %v5182_v44, %v3658_v39  ;;  %v8286_v15 = vpop.permute.xlu1 %3923  ;;  %v8288_v44 = vpop.permute.xlu0 %3994 }
 0x2a1   : > { %4606 = vmatprep.mubr.bf16.mxu1 %v4308_v58  ;;  %v3486_v41 = vor.u32 %v3485_v24, %v3482_v31  ;;  %v3491_v40 = vrot.slane %v3489_v9, 5  ;;  %v3693_v61 = vsel %vm5959_vm7, %v5183_v16, %v3692_v51  ;;  %v3666_v59 = vrot.slane %v3664_v25, 4 }
 0x2a2   : > { %v3662_v48 = vsel %vm5959_vm7, %v3660_v12, %v3661_v27  ;;  %v3669_v26 = vrot.slane %v3667_v20, 5  ;;  %v5235_v58 = vcombine.low %v3693_v61, %v3696_v3  ;;  %v3673_v23 = vshll.u32 %v3114_v57, 16 }
 0x2a3   : > { %4043 = vrot.lane.b32.xlu0 %v5233_v19, %s5767_s8  ;;  %v5232_v6 = vcombine.low %v3659_v33, %v3662_v48  ;;  %v3487_v11 = vrot.slane %v3486_v41, 4  ;;  %v3496_v55 = vor.u32 %v3495_v49, %v3491_v40  ;;  %v3679_v29 = vrot.slane %v3677_v56, 4 }
 0x2a4   : > { %v3700_v14 = vrot.slane %v3698_v50, 4  ;;  %v3501_v25 = vrot.slane %v3499_v34, 5  ;;  %v3670_v16 = vor.u32 %v3669_v26, %v3666_v59  ;;  %v3683_v39 = vshll.u32 %v3115_v53, 16  ;;  %v8315_v3 = vpop.permute.xlu1 %3921  ;;  %v3993_v41 = vpop.permute.xlu0 %3992 }
 0x2a5   : > { %3937 = vrot.lane.b32.xlu1 %v5232_v6, %s5767_s8  ;;  %5561 = vmatmul.mubr.msk.bf16.gmra.mrb[60].mxu0 %vm2242_vm8, %v5232_v6  ;;  %v3497_v51 = vrot.slane %v3496_v55, 4  ;;  %v4143_v57 = vsel %vm4133_vm6, %v8257_v30, %v8003_v13  ;;  %v3675_v20 = vrot.slane %v3673_v23, 5  ;;  %v3703_v50 = vrot.slane %v3701_v62, 5 }
 0x2a6   : > { %5564 = vmatprep.mubr.msk.bf16.mxu0 %vm2242_vm8, %v5235_v58  ;;  %v3709_v56 = vrot.slane %v3707_v63, 5  ;;  %v4180_v2 = vsel %vm4166_vm9, %v4143_v57, %v8091_v17  ;;  %v3492_v53 = vsel %vm5994_vm11, %v3487_v11, %v3491_v40  ;;  %v3713_v13 = vrot.slane %v3711_v37, 4  ;;  %v3118_v63 = vld [vmem:[#allocation3 + $0xd4] sm:$0x1]  ;;  %v8743_v57 = vld [vmem:[#allocation11_spill] sm:$0xff] }
 0x2a7   : > { %4008 = vrot.lane.b32.xlu0 %v5232_v6, %s5764_s25  ;;  %v3502_v31 = vsel %vm5994_vm11, %v3497_v51, %v3501_v25  ;;  %v3671_v62 = vrot.slane %v3670_v16, 4  ;;  %v3680_v24 = vor.u32 %v3679_v29, %v3675_v20  ;;  %v3685_v9 = vrot.slane %v3683_v39, 5 }
 0x2a8   : > { %4607 = vmatmul.mubr.bf16.gmra.mrb[12].mxu1 %v4180_v2  ;;  %v8309_v30 = vcombine.low %v3492_v53, %v3502_v31  ;;  %v5184_v12 = vrot.slane %v8235_v46, 9  ;;  %v3726_v27 = vrot.slane %v8237_v28, 5  ;;  %v3729_v49 = vrot.slane %v3118_v63, 5  ;;  %v8744_v53 = vld [vmem:[#allocation13_spill] sm:$0xff]  ;;  %v8745_v46 = vld [vmem:[#allocation19_spill] sm:$0xff] }
 0x2a9   : > { %v3681_v17 = vrot.slane %v3680_v24, 4  ;;  %v3704_v37 = vor.u32 %v3703_v50, %v3700_v14  ;;  %v3714_v40 = vor.u32 %v3713_v13, %v3709_v56  ;;  %v3717_v34 = vshll.u32 %v3118_v63, 16 }
 0x2aa   : > { %3857 = vrot.lane.b32.xlu1 %v8309_v30, %s5764_s25  ;;  %v3676_v33 = vsel %vm5994_vm11, %v3671_v62, %v3675_v20  ;;  %v3727_v61 = vsel %vm5959_vm7, %v5184_v12, %v3726_v27  ;;  %v3728_v59 = vrot.slane %v3726_v27, 4  ;;  %v4102_v20 = vsel %vm2242_vm8, %v8743_v57, %v8271_v42 }
 0x2ab   : > { %4076 = vrot.lane.b32.xlu0 %v8309_v30, %s5768_s7  ;;  %v3686_v48 = vsel %vm5994_vm11, %v3681_v17, %v3685_v9  ;;  %v3705_v29 = vrot.slane %v3704_v37, 4  ;;  %v3715_v14 = vrot.slane %v3714_v40, 4  ;;  %v3719_v51 = vrot.slane %v3717_v34, 5  ;;  %v8747_v34 = vld [vmem:[#allocation15_spill] sm:$0xff] }
 0x2ac   : > { %v8325_v6 = vcombine.low %v3676_v33, %v3686_v48  ;;  %v3730_v11 = vsel %vm5959_vm7, %v3728_v59, %v3729_v49  ;;  %v4232_v31 = vsel %vm2242_vm8, %v8744_v53, %v8167_v10  ;;  %v4235_v28 = vsel %vm2242_vm8, %v8745_v46, %v3993_v41 }
 0x2ad   : > { %v5238_v23 = vcombine.low %v3727_v61, %v3730_v11  ;;  %v3720_v39 = vsel %vm5994_vm11, %v3715_v14, %v3719_v51  ;;  %v4145_v38 = vsel %vm4133_vm6, %v4102_v20, %v8190_v54  ;;  %v4276_v10 = vsel %vm4133_vm6, %v4235_v28, %v8205_v5  ;;  %v8746_v54 = vld [vmem:[#allocation9_spill] sm:$0xff] }
 0x2ae   : > { %3972 = vrot.lane.b32.xlu1 %v5233_v19, %s5768_s7  ;;  %v3710_v19 = vsel %vm5994_vm11, %v3705_v29, %v3709_v56  ;;  %v4274_v56 = vsel %vm4133_vm6, %v4232_v31, %v8241_v4  ;;  %v4183_v62 = vsel %vm4166_vm9, %v4145_v38, %v8041_v32  ;;  %v4105_v4 = vsel %vm2242_vm8, %v8746_v54, %v8226_v35  ;;  %v8750_v31 = vld [vmem:[#allocation18_spill] sm:$0xff] }
 0x2af   : > { %4078 = vrot.lane.b32.xlu0 %v8325_v6, %s5768_s7  ;;  %v8332_v55 = vpop.permute.xlu1 %3960  ;;  %v4032_v26 = vpop.permute.xlu0 %4031  ;;  %5565 = vmatmul.mubr.msk.bf16.gmra.mrb[64].mxu0 %vm2242_vm8, %v5238_v23  ;;  %v5237_v2 = vcombine.low %v3710_v19, %v3720_v39  ;;  %v4147_v9 = vsel %vm4133_vm6, %v4105_v4, %v8159_v21  ;;  %v8748_v21 = vld [vmem:[#allocation17_spill] sm:$0xff] }
 0x2b0   : > { %v4186_v32 = vsel %vm4166_vm9, %v4147_v9, %v8248_v8  ;;  %v4238_v61 = vsel %vm2242_vm8, %v8748_v21, %v8288_v44 }
 0x2b3   : > { %4010 = vrot.lane.b32.xlu0 %v5235_v58, %s5764_s25  ;;  %v3844_v25 = vpop.permute.xlu1 %3843  ;;  %v4063_v16 = vpop.permute.xlu0 %4062  ;;  %s215_s25 = sand.u32 1, %s5748_s19  }
 0x2b4   : > { %v4314_v24 = vsel %vm4166_vm9, %v4276_v10, %v4063_v16  ;;  %s5008_s14 = sshll.u32 %s215_s25, 8  ;;  %s8638_s22 = scalar_lea.sflag [#allocation5], %s215_s25 }
 0x2b5   : > { %s8459_s15 = scalar_lea.vmem [#allocation4], %s5008_s14 }
 0x2b6   : > { %s4942_s17 = sshll.u32 %s8459_s15, 4  ;;  %s8632_s17 = int_to_ptr.vmem [resolvable:$true] %s4942_s17 }
 0x2b7   : > { %4045 = vrot.lane.b32.xlu0 %v5236_v1, %s5767_s8  ;;  %v4030_v50 = vpop.permute.xlu0 %4029  ;;  %v3959_v58 = vpop.permute.xlu1 %3958  ;;  %s5694_s6 = scalar_lea.vmem %s8632_s17, 4096  ;;  %p5701_p0 = scmp.lt.s32.totalorder %s8632_s17, %s5699_s11 }
 0x2b8   : > { %v4278_v11 = vsel %vm4133_vm6, %v4238_v61, %v4030_v50  ;;  %p5695_p11 = scmp.ne.s32.totalorder %s8632_s17, %s5694_s6  ;;  %p5702_p1 = scmp.lt.s32.totalorder %s5700_s12, %s5694_s6 }
 0x2ba   : > { %p5696_p12 = pnand %p5695_p11, %p5839_p5  ;;  %p5703_p2 = por %p5702_p1, %p5701_p0 }
 0x2bb   : > { %4080 = vrot.lane.b32.xlu0 %v5237_v2, %s5768_s7  ;;  %v4061_v42 = vpop.permute.xlu0 %4060  ;;  %v3842_v63 = vpop.permute.xlu1 %3841 }
 0x2bc   : > { %v4311_v13 = vsel %vm4166_vm9, %v4274_v56, %v4061_v42  ;;  %v4108_v33 = vsel %vm2242_vm8, %v8747_v34, %v3842_v63  ;;  %p5697_p13 = pneg %p5696_p12 }
 0x2bd   : > { %4614 = vmatprep.mubr.bf16.mxu1 %v4311_v13  ;;  %v4149_v59 = vsel %vm4133_vm6, %v4108_v33, %v8315_v3 }
 0x2be   : > { %4615 = vmatmul.mubr.bf16.gmra.mrb[16].mxu1 %v4183_v62  ;;  %v4189_v51 = vsel %vm4166_vm9, %v4149_v59, %v8203_v52  ;;  %p5704_p3 = pnand %p5703_p2, %p5697_p13 }
 0x2bf   : > { %4622 = vmatprep.mubr.bf16.mxu1 %v4314_v24  ;;  %v3928_v17 = vpop.permute.xlu1 %3927  ;;  %v3999_v12 = vpop.permute.xlu0 %3998 }
 0x2c3   : > { %v3926_v27 = vpop.permute.xlu1 %3925  ;;  %v3997_v5 = vpop.permute.xlu0 %3996 }
 0x2c4   : > { %v4241_v8 = vsel %vm2242_vm8, %v7973_v45, %v3997_v5  ;;  %v8749_v45 = vld [vmem:[#allocation12_spill] sm:$0xff] }
 0x2c5   : > { %v4280_v16 = vsel %vm4133_vm6, %v4241_v8, %v4032_v26  ;;  %v4111_v1 = vsel %vm2242_vm8, %v8749_v45, %v3844_v25  ;;  %v4244_v25 = vsel %vm2242_vm8, %v7959_v18, %v3999_v12  ;;  %v8753_v8 = vld [vmem:[#allocation21_spill] sm:$0xff] }
 0x2c6   : > { %4623 = vmatmul.mubr.bf16.gmra.mrb[20].mxu1 %v4186_v32  ;;  %v4151_v19 = vsel %vm4133_vm6, %v4111_v1, %v8286_v15 }
 0x2c7   : > { %v4192_v57 = vsel %vm4166_vm9, %v4151_v19, %v3959_v58 }
 0x2cf   : > { %v8369_v49 = vpop.permute.xlu1 %3964  ;;  %v4036_v41 = vpop.permute.xlu0 %4035 }
 0x2d3   : > { %v3848_v37 = vpop.permute.xlu1 %3847  ;;  %v4067_v40 = vpop.permute.xlu0 %4066 }
 0x2d4   : > { %v4320_v44 = vsel %vm4166_vm9, %v4280_v16, %v4067_v40 }
 0x2d7   : > { %v3963_v35 = vpop.permute.xlu1 %3962  ;;  %v4034_v48 = vpop.permute.xlu0 %4033 }
 0x2d8   : > { %v4282_v56 = vsel %vm4133_vm6, %v4244_v25, %v4034_v48 }
 0x2db   : > { %v4065_v23 = vpop.permute.xlu0 %4064  ;;  %v3846_v29 = vpop.permute.xlu1 %3845 }
 0x2dc   : > { %v4317_v14 = vsel %vm4166_vm9, %v4278_v11, %v4065_v23  ;;  %v4114_v46 = vsel %vm2242_vm8, %v8750_v31, %v3846_v29 }
 0x2dd   : > { %4630 = vmatprep.mubr.bf16.mxu1 %v4317_v14  ;;  %v4153_v58 = vsel %vm4133_vm6, %v4114_v46, %v3926_v27  ;;  %v8752_v27 = vld [vmem:[#allocation22_spill] sm:$0xff] }
 0x2de   : > { %4631 = vmatmul.mubr.bf16.gmra.mrb[24].mxu1 %v4189_v51  ;;  %v4195_v62 = vsel %vm4166_vm9, %v4153_v58, %v8332_v55 }
 0x2df   : > { %4638 = vmatprep.mubr.bf16.mxu1 %v4320_v44  ;;  %v3932_v3 = vpop.permute.xlu1 %3931  ;;  %v4003_v39 = vpop.permute.xlu0 %4002 }
 0x2e3   : > { %v3930_v20 = vpop.permute.xlu1 %3929  ;;  %v4001_v50 = vpop.permute.xlu0 %4000 }
 0x2e4   : > { %v4247_v15 = vsel %vm2242_vm8, %v8135_v43, %v4001_v50  ;;  %v8751_v43 = vld [vmem:[#allocation16_spill] sm:$0xff] }
 0x2e5   : > { %v4284_v10 = vsel %vm4133_vm6, %v4247_v15, %v4036_v41  ;;  %v4117_v54 = vsel %vm2242_vm8, %v8751_v43, %v3848_v37  ;;  %v4250_v41 = vsel %vm2242_vm8, %v8065_v47, %v4003_v39 }
 0x2e6   : > { %4639 = vmatmul.mubr.bf16.gmra.mrb[28].mxu1 %v4192_v57  ;;  %v4155_v12 = vsel %vm4133_vm6, %v4117_v54, %v3928_v17 }
 0x2e7   : > { %v3852_v52 = vpop.permute.xlu1 %3851  ;;  %v4198_v32 = vsel %vm4166_vm9, %v4155_v12, %v3963_v35 }
 0x2ef   : > { %v4040_v2 = vpop.permute.xlu0 %4039 }
 0x2f0   : > { %v3967_v26 = vpop.permute.xlu1 %3966 }
 0x2f3   : > { %v4071_v53 = vpop.permute.xlu0 %4070 }
 0x2f4   : > { %v3850_v38 = vpop.permute.xlu1 %3849  ;;  %v4326_v18 = vsel %vm4166_vm9, %v4284_v10, %v4071_v53 }
 0x2f5   : > { %v4120_v55 = vsel %vm2242_vm8, %v8752_v27, %v3850_v38 }
 0x2f6   : > { %v4157_v37 = vsel %vm4133_vm6, %v4120_v55, %v3930_v20 }
 0x2f7   : > { %v4038_v28 = vpop.permute.xlu0 %4037  ;;  %v4201_v35 = vsel %vm4166_vm9, %v4157_v37, %v8369_v49 }
 0x2f8   : > { %v3934_v24 = vpop.permute.xlu1 %3933  ;;  %v4286_v33 = vsel %vm4133_vm6, %v4250_v41, %v4038_v28 }
 0x2fb   : > { %v4069_v42 = vpop.permute.xlu0 %4068 }
 0x2fc   : > { %v4323_v13 = vsel %vm4166_vm9, %v4282_v56, %v4069_v42  ;;  %v3969_v9 = vpop.permute.xlu1 %3968 }
 0x2fd   : > { %4646 = vmatprep.mubr.bf16.mxu1 %v4323_v13 }
 0x2fe   : > { %4647 = vmatmul.mubr.bf16.gmra.mrb[32].mxu1 %v4195_v62 }
 0x2ff   : > { %4654 = vmatprep.mubr.bf16.mxu1 %v4326_v18  ;;  %v4007_v63 = vpop.permute.xlu0 %4006 }
 0x300   : > { %v3856_v40 = vpop.permute.xlu1 %3855  ;;  %v4256_v44 = vsel %vm2242_vm8, %v8193_v36, %v4007_v63 }
 0x303   : > { %v4005_v4 = vpop.permute.xlu0 %4004 }
 0x304   : > { %v4253_v34 = vsel %vm2242_vm8, %v8207_v7, %v4005_v4  ;;  %v3854_v61 = vpop.permute.xlu1 %3853  ;;  %v4123_v7 = vsel %vm2242_vm8, %v8753_v8, %v3852_v52  ;;  %v4129_v52 = vsel %vm2242_vm8, %v8105_v60, %v3856_v40 }
 0x305   : > { %v4288_v21 = vsel %vm4133_vm6, %v4253_v34, %v4040_v2  ;;  %v4159_v11 = vsel %vm4133_vm6, %v4123_v7, %v3932_v3  ;;  %v4126_v49 = vsel %vm2242_vm8, %v8112_v22, %v3854_v61 }
 0x306   : > { %4655 = vmatmul.mubr.bf16.gmra.mrb[36].mxu1 %v4198_v32  ;;  %v4204_v29 = vsel %vm4166_vm9, %v4159_v11, %v3967_v26  ;;  %v4161_v45 = vsel %vm4133_vm6, %v4126_v49, %v3934_v24 }
 0x307   : > { %v4075_v5 = vpop.permute.xlu0 %4074  ;;  %v4207_v57 = vsel %vm4166_vm9, %v4161_v45, %v3969_v9 }
 0x308   : > { %v4332_v47 = vsel %vm4166_vm9, %v4288_v21, %v4075_v5  ;;  %v3936_v14 = vpop.permute.xlu1 %3935 }
 0x309   : > { %v4163_v26 = vsel %vm4133_vm6, %v4129_v52, %v3936_v14 }
 0x30b   : > { %v4073_v48 = vpop.permute.xlu0 %4072 }
 0x30c   : > { %v4329_v17 = vsel %vm4166_vm9, %v4286_v33, %v4073_v48 }
 0x30d   : > { %4662 = vmatprep.mubr.bf16.mxu1 %v4329_v17 }
 0x30e   : > { %4663 = vmatmul.mubr.bf16.gmra.mrb[40].mxu1 %v4201_v35 }
 0x30f   : > { %4670 = vmatprep.mubr.bf16.mxu1 %v4332_v47 }
 0x311   : > { %v4042_v59 = vpop.permute.xlu0 %4041  ;;  %v3971_v16 = vpop.permute.xlu1 %3970 }
 0x312   : > { %v4290_v1 = vsel %vm4133_vm6, %v4256_v44, %v4042_v59  ;;  %v4210_v53 = vsel %vm4166_vm9, %v4163_v26, %v3971_v16 }
 0x315   : > { %v4044_v23 = vpop.permute.xlu0 %4043 }
 0x316   : > { %4671 = vmatmul.mubr.bf16.gmra.mrb[44].mxu1 %v4204_v29 }
 0x317   : > { %v3938_v20 = vpop.permute.xlu1 %3937 }
 0x319   : > { %v4009_v51 = vpop.permute.xlu0 %4008 }
 0x31a   : > { %v4259_v3 = vsel %vm2242_vm8, %v8309_v30, %v4009_v51 }
 0x31b   : > { %v4292_v50 = vsel %vm4133_vm6, %v4259_v3, %v4044_v23 }
 0x31c   : > { %v3858_v30 = vpop.permute.xlu1 %3857 }
 0x31d   : > { %v4077_v19 = vpop.permute.xlu0 %4076  ;;  %v4132_v46 = vsel %vm2242_vm8, %v8269_v0, %v3858_v30 }
 0x31e   : > { %v4335_v39 = vsel %vm4166_vm9, %v4290_v1, %v4077_v19  ;;  %v4165_v56 = vsel %vm4133_vm6, %v4132_v46, %v3938_v20 }
 0x31f   : > { %4678 = vmatprep.mubr.bf16.mxu1 %v4335_v39 }
 0x320   : > { %4679 = vmatmul.mubr.bf16.gmra.mrb[48].mxu1 %v4207_v57  ;;  %v3973_v28 = vpop.permute.xlu1 %3972 }
 0x321   : > { %v4079_v22 = vpop.permute.xlu0 %4078  ;;  %v4213_v13 = vsel %vm4166_vm9, %v4165_v56, %v3973_v28 }
 0x322   : > { %v4338_v36 = vsel %vm4166_vm9, %v4292_v50, %v4079_v22 }
 0x323   : > { %4686 = vmatprep.mubr.bf16.mxu1 %v4338_v36 }
 0x325   : > { %v4011_v2 = vpop.permute.xlu0 %4010 }
 0x326   : > { %v4262_v38 = vsel %vm2242_vm8, %v8325_v6, %v4011_v2  ;;  %v8453_v6 = vld [vmem:[%s8684_s4] ss:$0 sm:$0xff] }
 0x328   : > { %4687 = vmatmul.mubr.bf16.gmra.mrb[52].mxu1 %v4210_v53 }
 0x329   : > { %v4046_v31 = vpop.permute.xlu0 %4045 }
 0x32a   : > { %v4294_v25 = vsel %vm4133_vm6, %v4262_v38, %v4046_v31 }
 0x32d   : > { %v4081_v60 = vpop.permute.xlu0 %4080 }
 0x32e   : > { %v5380_v15 = vpop.f32.mrb[32].mxu0  ;;  %v4341_v58 = vsel %vm4166_vm9, %v4294_v25, %v4081_v60 }
 0x32f   : > { %v5381_v42 = vpop.f32.mrb[33].mxu0  ;;  %4694 = vmatprep.mubr.bf16.mxu1 %v4341_v58 }
 0x330   : > { %v5382_v62 = vadd.f32 %v5381_v42, %v5380_v15  ;;  %v5383_v0 = vpop.f32.mrb[34].mxu0  ;;  %4695 = vmatmul.mubr.bf16.gmra.mrb[56].mxu1 %v4213_v13 }
 0x331   : > { %v5384_v10 = vpop.f32.mrb[35].mxu0 }
 0x332   : > { %v5385_v24 = vadd.f32 %v5384_v10, %v5383_v0  ;;  %v4577_v63 = vadd.f32 %v5382_v62, %v8453_v6 }
 0x334   : > { %v4580_v9 = vadd.f32 %v5385_v24, %v8453_v6 }
 0x336   : > { %v5538_v18 = vpop.f32.mrb[36].mxu0 }
 0x337   : > { %v4737_v43 = vpop.f32.mrb[37].mxu0 }
 0x338   : > { %v4738_v54 = vadd.f32 %v4737_v43, %v4577_v63  ;;  %v5539_v4 = vpop.f32.mrb[38].mxu0 }
 0x339   : > { %v4740_v12 = vpop.f32.mrb[39].mxu0 }
 0x33a   : > { %v4864_v32 = vmax.f32 %v4738_v54, 0.0  ;;  %v4741_v27 = vadd.f32 %v4740_v12, %v4580_v9 }
 0x33c   : > { %4896 = vst.msk [vmem:[%s8459_s15] sm:$0xff] %vm2242_vm8, %v4864_v32  ;;  %v4865_v55 = vmax.f32 %v4741_v27, 0.0 }
 0x33e   : > { %4897 = vst.msk [vmem:[%s8459_s15 + $0x8] sm:$0xff] %vm2242_vm8, %v4865_v55  ;;  %v5542_v5 = vpop.f32.mrb[40].mxu0 }
 0x33f   : > { %v4753_v41 = vpop.f32.mrb[41].mxu0 }
 0x340   : > { %v5543_v40 = vpop.f32.mrb[42].mxu0 }
 0x341   : > { %v4756_v34 = vpop.f32.mrb[43].mxu0 }
 0x346   : > { %v8465_v37 = vpop.f32.mrb[44].mxu0 }
 0x347   : > { %v8467_v33 = vpop.f32.mrb[45].mxu0 }
 0x348   : > { %v8469_v48 = vpop.f32.mrb[46].mxu0 }
 0x349   : > { %v8471_v17 = vpop.f32.mrb[47].mxu0 }
 0x34e   : > { %v8473_v35 = vpop.f32.mrb[48].mxu0 }
 0x34f   : > { %v8475_v21 = vpop.f32.mrb[49].mxu0 }
 0x350   : > { %v8477_v47 = vpop.f32.mrb[50].mxu0 }
 0x351   : > { %v8479_v61 = vpop.f32.mrb[51].mxu0 }
 0x352   : > { %v5386_v8 = vpop.f32.mrb[0].mxu1 }
 0x353   : > { %v5387_v7 = vpop.f32.mrb[1].mxu1 }
 0x354   : > { %v5388_v59 = vadd.f32 %v5387_v7, %v5386_v8  ;;  %v5389_v11 = vpop.f32.mrb[2].mxu1 }
 0x355   : > { %v5390_v23 = vpop.f32.mrb[3].mxu1 }
 0x356   : > { %v4585_v29 = vadd.f32 %v5388_v59, %v8453_v6  ;;  %v5391_v14 = vadd.f32 %v5390_v23, %v5389_v11  ;;  %v8482_v49 = vpop.f32.mrb[52].mxu0 }
 0x357   : > { %v8484_v51 = vpop.f32.mrb[53].mxu0 }
 0x358   : > { %v4746_v16 = vadd.f32 %v5538_v18, %v4585_v29  ;;  %v4588_v44 = vadd.f32 %v5391_v14, %v8453_v6  ;;  %v8487_v45 = vpop.f32.mrb[54].mxu0 }
 0x359   : > { %v8489_v1 = vpop.f32.mrb[55].mxu0 }
 0x35a   : > { %v4866_v19 = vmax.f32 %v4746_v16, 0.0  ;;  %v4749_v3 = vadd.f32 %v5539_v4, %v4588_v44  ;;  %v5392_v39 = vpop.f32.mrb[4].mxu1 }
 0x35b   : > { %v5393_v57 = vpop.f32.mrb[5].mxu1 }
 0x35c   : > { %4898 = vst.msk [vmem:[%s8459_s15 + $0x10] sm:$0xff] %vm2242_vm8, %v4866_v19  ;;  %v4867_v20 = vmax.f32 %v4749_v3, 0.0  ;;  %v5394_v22 = vadd.f32 %v5393_v57, %v5392_v39  ;;  %v5395_v50 = vpop.f32.mrb[6].mxu1 }
 0x35d   : > { %v5396_v36 = vpop.f32.mrb[7].mxu1 }
 0x35e   : > { %4899 = vst.msk [vmem:[%s8459_s15 + $0x18] sm:$0xff] %vm2242_vm8, %v4867_v20  ;;  %v4593_v52 = vadd.f32 %v5394_v22, %v8453_v6  ;;  %v5397_v2 = vadd.f32 %v5396_v36, %v5395_v50  ;;  %v8496_v26 = vpop.f32.mrb[56].mxu0 }
 0x35f   : > { %v8498_v30 = vpop.f32.mrb[57].mxu0 }
 0x360   : > { %v4754_v53 = vadd.f32 %v4753_v41, %v4593_v52  ;;  %v4596_v31 = vadd.f32 %v5397_v2, %v8453_v6  ;;  %v8501_v46 = vpop.f32.mrb[58].mxu0 }
 0x361   : > { %v8503_v28 = vpop.f32.mrb[59].mxu0 }
 0x362   : > { %v4868_v38 = vmax.f32 %v4754_v53, 0.0  ;;  %v4757_v25 = vadd.f32 %v4756_v34, %v4596_v31 }
 0x364   : > { %4900 = vst.msk [vmem:[%s8459_s15 + $0x20] sm:$0xff] %vm2242_vm8, %v4868_v38  ;;  %v4869_v60 = vmax.f32 %v4757_v25, 0.0 }
 0x366   : > { %4901 = vst.msk [vmem:[%s8459_s15 + $0x28] sm:$0xff] %vm2242_vm8, %v4869_v60 }
 0x373   : > { %v5398_v15 = vpop.f32.mrb[8].mxu1 }
 0x374   : > { %v5399_v58 = vpop.f32.mrb[9].mxu1 }
 0x375   : > { %v5400_v56 = vadd.f32 %v5399_v58, %v5398_v15  ;;  %v5401_v42 = vpop.f32.mrb[10].mxu1 }
 0x376   : > { %v5402_v13 = vpop.f32.mrb[11].mxu1 }
 0x377   : > { %v4601_v62 = vadd.f32 %v5400_v56, %v8453_v6  ;;  %v5403_v0 = vadd.f32 %v5402_v13, %v5401_v42 }
 0x378   : > { %v8510_v10 = vpop.f32.mrb[60].mxu0 }
 0x379   : > { %v4762_v24 = vadd.f32 %v5542_v5, %v4601_v62  ;;  %v4604_v18 = vadd.f32 %v5403_v0, %v8453_v6  ;;  %v8513_v63 = vpop.f32.mrb[61].mxu0 }
 0x37a   : > { %v8515_v43 = vpop.f32.mrb[62].mxu0 }
 0x37b   : > { %v4870_v54 = vmax.f32 %v4762_v24, 0.0  ;;  %v4765_v4 = vadd.f32 %v5543_v40, %v4604_v18  ;;  %v5404_v9 = vpop.f32.mrb[12].mxu1  ;;  %v8517_v12 = vpop.f32.mrb[63].mxu0 }
 0x37c   : > { %v5405_v32 = vpop.f32.mrb[13].mxu1 }
 0x37d   : > { %4902 = vst.msk [vmem:[%s8459_s15 + $0x30] sm:$0xff] %vm2242_vm8, %v4870_v54  ;;  %v4871_v27 = vmax.f32 %v4765_v4, 0.0  ;;  %v5406_v55 = vadd.f32 %v5405_v32, %v5404_v9  ;;  %v5407_v41 = vpop.f32.mrb[14].mxu1 }
 0x37e   : > { %v5408_v5 = vpop.f32.mrb[15].mxu1 }
 0x37f   : > { %4903 = vst.msk [vmem:[%s8459_s15 + $0x38] sm:$0xff] %vm2242_vm8, %v4871_v27  ;;  %v4609_v34 = vadd.f32 %v5406_v55, %v8453_v6  ;;  %v5409_v8 = vadd.f32 %v5408_v5, %v5407_v41 }
 0x381   : > { %v4770_v7 = vadd.f32 %v8467_v33, %v4609_v34  ;;  %v4612_v40 = vadd.f32 %v5409_v8, %v8453_v6 }
 0x382   : > { %v8527_v23 = vpop.f32.mrb[64].mxu0 }
 0x383   : > { %v4872_v59 = vmax.f32 %v4770_v7, 0.0  ;;  %v4773_v11 = vadd.f32 %v8471_v17, %v4612_v40  ;;  %v8531_v14 = vpop.f32.mrb[65].mxu0 }
 0x384   : > { %v8533_v16 = vpop.f32.mrb[66].mxu0 }
 0x385   : > { %4904 = vst.msk [vmem:[%s8459_s15 + $0x40] sm:$0xff] %vm2242_vm8, %v4872_v59  ;;  %v4873_v29 = vmax.f32 %v4773_v11, 0.0  ;;  %v8537_v44 = vpop.f32.mrb[67].mxu0 }
 0x387   : > { %4905 = vst.msk [vmem:[%s8459_s15 + $0x48] sm:$0xff] %vm2242_vm8, %v4873_v29 }
 0x391   : > { %v5410_v33 = vpop.f32.mrb[16].mxu1 }
 0x392   : > { %v5411_v19 = vpop.f32.mrb[17].mxu1 }
 0x393   : > { %v5412_v3 = vadd.f32 %v5411_v19, %v5410_v33  ;;  %v5413_v39 = vpop.f32.mrb[18].mxu1 }
 0x394   : > { %v5414_v17 = vpop.f32.mrb[19].mxu1 }
 0x395   : > { %v4617_v57 = vadd.f32 %v5412_v3, %v8453_v6  ;;  %v5415_v20 = vadd.f32 %v5414_v17, %v5413_v39 }
 0x397   : > { %v4778_v22 = vadd.f32 %v8465_v37, %v4617_v57  ;;  %v4620_v50 = vadd.f32 %v5415_v20, %v8453_v6 }
 0x399   : > { %v4874_v36 = vmax.f32 %v4778_v22, 0.0  ;;  %v4781_v52 = vadd.f32 %v8469_v48, %v4620_v50  ;;  %v5416_v2 = vpop.f32.mrb[20].mxu1 }
 0x39a   : > { %v5417_v53 = vpop.f32.mrb[21].mxu1 }
 0x39b   : > { %4906 = vst.msk [vmem:[%s8459_s15 + $0x50] sm:$0xff] %vm2242_vm8, %v4874_v36  ;;  %v4875_v31 = vmax.f32 %v4781_v52, 0.0  ;;  %v5418_v38 = vadd.f32 %v5417_v53, %v5416_v2  ;;  %v5419_v25 = vpop.f32.mrb[22].mxu1 }
 0x39c   : > { %v5420_v60 = vpop.f32.mrb[23].mxu1 }
 0x39d   : > { %4907 = vst.msk [vmem:[%s8459_s15 + $0x58] sm:$0xff] %vm2242_vm8, %v4875_v31  ;;  %v4625_v15 = vadd.f32 %v5418_v38, %v8453_v6  ;;  %v5421_v37 = vadd.f32 %v5420_v60, %v5419_v25 }
 0x39f   : > { %v4786_v58 = vadd.f32 %v8475_v21, %v4625_v15  ;;  %v4628_v56 = vadd.f32 %v5421_v37, %v8453_v6 }
 0x3a1   : > { %v4876_v42 = vmax.f32 %v4786_v58, 0.0  ;;  %v4789_v48 = vadd.f32 %v8479_v61, %v4628_v56 }
 0x3a3   : > { %4908 = vst.msk [vmem:[%s8459_s15 + $0x60] sm:$0xff] %vm2242_vm8, %v4876_v42  ;;  %v4877_v13 = vmax.f32 %v4789_v48, 0.0 }
 0x3a5   : > { %4909 = vst.msk [vmem:[%s8459_s15 + $0x68] sm:$0xff] %vm2242_vm8, %v4877_v13 }
 0x3b1   : > { %v5422_v62 = vpop.f32.mrb[24].mxu1 }
 0x3b2   : > { %v5423_v0 = vpop.f32.mrb[25].mxu1 }
 0x3b3   : > { %v5424_v24 = vadd.f32 %v5423_v0, %v5422_v62  ;;  %v5425_v18 = vpop.f32.mrb[26].mxu1 }
 0x3b4   : > { %v5426_v54 = vpop.f32.mrb[27].mxu1 }
 0x3b5   : > { %v4633_v4 = vadd.f32 %v5424_v24, %v8453_v6  ;;  %v5427_v21 = vadd.f32 %v5426_v54, %v5425_v18 }
 0x3b7   : > { %v4794_v9 = vadd.f32 %v8473_v35, %v4633_v4  ;;  %v4636_v32 = vadd.f32 %v5427_v21, %v8453_v6 }
 0x3b9   : > { %v4878_v61 = vmax.f32 %v4794_v9, 0.0  ;;  %v4797_v27 = vadd.f32 %v8477_v47, %v4636_v32  ;;  %v5428_v55 = vpop.f32.mrb[28].mxu1 }
 0x3ba   : > { %v5429_v41 = vpop.f32.mrb[29].mxu1 }
 0x3bb   : > { %4910 = vst.msk [vmem:[%s8459_s15 + $0x70] sm:$0xff] %vm2242_vm8, %v4878_v61  ;;  %v4879_v5 = vmax.f32 %v4797_v27, 0.0  ;;  %v5430_v34 = vadd.f32 %v5429_v41, %v5428_v55  ;;  %v5431_v8 = vpop.f32.mrb[30].mxu1 }
 0x3bc   : > { %v5432_v7 = vpop.f32.mrb[31].mxu1 }
 0x3bd   : > { %4911 = vst.msk [vmem:[%s8459_s15 + $0x78] sm:$0xff] %vm2242_vm8, %v4879_v5  ;;  %v4641_v40 = vadd.f32 %v5430_v34, %v8453_v6  ;;  %v5433_v35 = vadd.f32 %v5432_v7, %v5431_v8 }
 0x3bf   : > { %v4802_v59 = vadd.f32 %v8484_v51, %v4641_v40  ;;  %v4644_v11 = vadd.f32 %v5433_v35, %v8453_v6 }
 0x3c1   : > { %v4880_v29 = vmax.f32 %v4802_v59, 0.0  ;;  %v4805_v47 = vadd.f32 %v8489_v1, %v4644_v11 }
 0x3c3   : > { %4912 = vst.msk [vmem:[%s8459_s15 + $0x80] sm:$0xff] %vm2242_vm8, %v4880_v29  ;;  %v4881_v33 = vmax.f32 %v4805_v47, 0.0 }
 0x3c5   : > { %4913 = vst.msk [vmem:[%s8459_s15 + $0x88] sm:$0xff] %vm2242_vm8, %v4881_v33 }
 0x3d1   : > { %v5434_v19 = vpop.f32.mrb[32].mxu1 }
 0x3d2   : > { %v5435_v3 = vpop.f32.mrb[33].mxu1 }
 0x3d3   : > { %v5436_v39 = vadd.f32 %v5435_v3, %v5434_v19  ;;  %v5437_v17 = vpop.f32.mrb[34].mxu1 }
 0x3d4   : > { %v5438_v57 = vpop.f32.mrb[35].mxu1 }
 0x3d5   : > { %v4649_v20 = vadd.f32 %v5436_v39, %v8453_v6  ;;  %v5439_v51 = vadd.f32 %v5438_v57, %v5437_v17 }
 0x3d7   : > { %v4810_v22 = vadd.f32 %v8482_v49, %v4649_v20  ;;  %v4652_v50 = vadd.f32 %v5439_v51, %v8453_v6 }
 0x3d9   : > { %v4882_v1 = vmax.f32 %v4810_v22, 0.0  ;;  %v4813_v36 = vadd.f32 %v8487_v45, %v4652_v50  ;;  %v5440_v52 = vpop.f32.mrb[36].mxu1 }
 0x3da   : > { %v5441_v2 = vpop.f32.mrb[37].mxu1 }
 0x3db   : > { %4914 = vst.msk [vmem:[%s8459_s15 + $0x90] sm:$0xff] %vm2242_vm8, %v4882_v1  ;;  %v4883_v53 = vmax.f32 %v4813_v36, 0.0  ;;  %v5442_v31 = vadd.f32 %v5441_v2, %v5440_v52  ;;  %v5443_v38 = vpop.f32.mrb[38].mxu1 }
 0x3dc   : > { %v5444_v25 = vpop.f32.mrb[39].mxu1 }
 0x3dd   : > { %4915 = vst.msk [vmem:[%s8459_s15 + $0x98] sm:$0xff] %vm2242_vm8, %v4883_v53  ;;  %v4657_v60 = vadd.f32 %v5442_v31, %v8453_v6  ;;  %v5445_v49 = vadd.f32 %v5444_v25, %v5443_v38 }
 0x3df   : > { %v4818_v15 = vadd.f32 %v8498_v30, %v4657_v60  ;;  %v4660_v37 = vadd.f32 %v5445_v49, %v8453_v6 }
 0x3e1   : > { %v4884_v45 = vmax.f32 %v4818_v15, 0.0  ;;  %v4821_v58 = vadd.f32 %v8503_v28, %v4660_v37  ;;  %v5446_v56 = vpop.f32.mrb[40].mxu1 }
 0x3e2   : > { %v5447_v42 = vpop.f32.mrb[41].mxu1 }
 0x3e3   : > { %4916 = vst.msk [vmem:[%s8459_s15 + $0xa0] sm:$0xff] %vm2242_vm8, %v4884_v45  ;;  %v4885_v48 = vmax.f32 %v4821_v58, 0.0  ;;  %v5448_v13 = vadd.f32 %v5447_v42, %v5446_v56  ;;  %v5449_v62 = vpop.f32.mrb[42].mxu1 }
 0x3e4   : > { %v5450_v0 = vpop.f32.mrb[43].mxu1 }
 0x3e5   : > { %4917 = vst.msk [vmem:[%s8459_s15 + $0xa8] sm:$0xff] %vm2242_vm8, %v4885_v48  ;;  %v4665_v24 = vadd.f32 %v5448_v13, %v8453_v6  ;;  %v5451_v30 = vadd.f32 %v5450_v0, %v5449_v62 }
 0x3e7   : > { %v4826_v18 = vadd.f32 %v8496_v26, %v4665_v24  ;;  %v4668_v54 = vadd.f32 %v5451_v30, %v8453_v6 }
 0x3e9   : > { %v4886_v28 = vmax.f32 %v4826_v18, 0.0  ;;  %v4829_v4 = vadd.f32 %v8501_v46, %v4668_v54  ;;  %v5452_v21 = vpop.f32.mrb[44].mxu1 }
 0x3ea   : > { %v5453_v9 = vpop.f32.mrb[45].mxu1 }
 0x3eb   : > { %4918 = vst.msk [vmem:[%s8459_s15 + $0xb0] sm:$0xff] %vm2242_vm8, %v4886_v28  ;;  %v4887_v32 = vmax.f32 %v4829_v4, 0.0  ;;  %v5454_v61 = vadd.f32 %v5453_v9, %v5452_v21  ;;  %v5455_v27 = vpop.f32.mrb[46].mxu1 }
 0x3ec   : > { %v5456_v55 = vpop.f32.mrb[47].mxu1 }
 0x3ed   : > { %4919 = vst.msk [vmem:[%s8459_s15 + $0xb8] sm:$0xff] %vm2242_vm8, %v4887_v32  ;;  %v4673_v41 = vadd.f32 %v5454_v61, %v8453_v6  ;;  %v5457_v26 = vadd.f32 %v5456_v55, %v5455_v27 }
 0x3ef   : > { %v4834_v5 = vadd.f32 %v8513_v63, %v4673_v41  ;;  %v4676_v34 = vadd.f32 %v5457_v26, %v8453_v6 }
 0x3f1   : > { %v4888_v8 = vmax.f32 %v4834_v5, 0.0  ;;  %v4837_v46 = vadd.f32 %v8517_v12, %v4676_v34 }
 0x3f3   : > { %4920 = vst.msk [vmem:[%s8459_s15 + $0xc0] sm:$0xff] %vm2242_vm8, %v4888_v8  ;;  %v4889_v7 = vmax.f32 %v4837_v46, 0.0  ;;  %v5458_v40 = vpop.f32.mrb[48].mxu1 }
 0x3f4   : > { %v5459_v35 = vpop.f32.mrb[49].mxu1 }
 0x3f5   : > { %4921 = vst.msk [vmem:[%s8459_s15 + $0xc8] sm:$0xff] %vm2242_vm8, %v4889_v7  ;;  %v5460_v59 = vadd.f32 %v5459_v35, %v5458_v40  ;;  %v5461_v11 = vpop.f32.mrb[50].mxu1 }
 0x3f6   : > { %v5462_v29 = vpop.f32.mrb[51].mxu1 }
 0x3f7   : > { %v4681_v47 = vadd.f32 %v5460_v59, %v8453_v6  ;;  %v5463_v63 = vadd.f32 %v5462_v29, %v5461_v11 }
 0x3f9   : > { %v4842_v33 = vadd.f32 %v8510_v10, %v4681_v47  ;;  %v4684_v19 = vadd.f32 %v5463_v63, %v8453_v6 }
 0x3fb   : > { %v4890_v12 = vmax.f32 %v4842_v33, 0.0  ;;  %v4845_v3 = vadd.f32 %v8515_v43, %v4684_v19  ;;  %v5464_v39 = vpop.f32.mrb[52].mxu1 }
 0x3fc   : > { %v5465_v17 = vpop.f32.mrb[53].mxu1 }
 0x3fd   : > { %4922 = vst.msk [vmem:[%s8459_s15 + $0xd0] sm:$0xff] %vm2242_vm8, %v4890_v12  ;;  %v4891_v57 = vmax.f32 %v4845_v3, 0.0  ;;  %v5466_v20 = vadd.f32 %v5465_v17, %v5464_v39  ;;  %v5467_v51 = vpop.f32.mrb[54].mxu1 }
 0x3fe   : > { %v5468_v22 = vpop.f32.mrb[55].mxu1 }
 0x3ff   : > { %4923 = vst.msk [vmem:[%s8459_s15 + $0xd8] sm:$0xff] %vm2242_vm8, %v4891_v57  ;;  %v5469_v50 = vadd.f32 %v5468_v22, %v5467_v51  ;;  %v4689_v10 = vadd.f32 %v5466_v20, %v8453_v6 }
 0x401   : > { %v4850_v1 = vadd.f32 %v8531_v14, %v4689_v10  ;;  %v4692_v43 = vadd.f32 %v5469_v50, %v8453_v6 }
 0x403   : > { %v4892_v36 = vmax.f32 %v4850_v1, 0.0  ;;  %v4853_v52 = vadd.f32 %v8537_v44, %v4692_v43  ;;  %v5470_v2 = vpop.f32.mrb[56].mxu1 }
 0x404   : > { %v5471_v53 = vpop.f32.mrb[57].mxu1 }
 0x405   : > { %4924 = vst.msk [vmem:[%s8459_s15 + $0xe0] sm:$0xff] %vm2242_vm8, %v4892_v36  ;;  %v4893_v31 = vmax.f32 %v4853_v52, 0.0  ;;  %v5472_v38 = vadd.f32 %v5471_v53, %v5470_v2  ;;  %v5473_v25 = vpop.f32.mrb[58].mxu1 }
 0x406   : > { %v5474_v60 = vpop.f32.mrb[59].mxu1 }
 0x407   : > { %4925 = vst.msk [vmem:[%s8459_s15 + $0xe8] sm:$0xff] %vm2242_vm8, %v4893_v31  ;;  %v4697_v14 = vadd.f32 %v5472_v38, %v8453_v6  ;;  %v5475_v49 = vadd.f32 %v5474_v60, %v5473_v25 }
 0x409   : > { %v4858_v15 = vadd.f32 %v8527_v23, %v4697_v14  ;;  %v4700_v44 = vadd.f32 %v5475_v49, %v8453_v6 }
 0x40b   : > { %v4894_v37 = vmax.f32 %v4858_v15, 0.0  ;;  %v4861_v45 = vadd.f32 %v8533_v16, %v4700_v44 }
 0x40d   : > { %4926 = vst.msk [vmem:[%s8459_s15 + $0xf0] sm:$0xff] %vm2242_vm8, %v4894_v37  ;;  %v4895_v58 = vmax.f32 %v4861_v45, 0.0 }
 0x40f   : > { %4927 = vst.msk [vmem:[%s8459_s15 + $0xf8] sm:$0xff] %vm2242_vm8, %v4895_v58 }
 0x410   : > { %5707 = shalt.err (!%p5704_p3)
}
 0x411   : > { %s5708_s13 = scalar_lea.hbm %s8628_s30, 4096  ;;  %s5712_s7 = scalar_lea.hbm %s8685_s5, 8192 }
 0x412   : > { %p5709_p4 = scmp.ne.s32.totalorder %s8628_s30, %s5708_s13  ;;  %p5713_p9 = scmp.lt.u32.totalorder %s8628_s30, %s8685_s5 }
 0x413   : > { %p5714_p10 = scmp.lt.u32.totalorder %s5712_s7, %s5708_s13  ;;  %p5716_p12 = scmp.lt.u32.totalorder %s5708_s13, %s8628_s30 }
 0x414   : > { %p5710_p7 = pnand %p5709_p4, %p5839_p5 }
 0x415   : > { %p5715_p11 = por %p5714_p10, %p5713_p9 }
 0x416   : > { %p5711_p8 = pneg %p5710_p7 }
 0x417   : > { %p5717_p13 = por %p5716_p12, %p5715_p11 }
 0x419   : > { %p5718_p0 = pnand %p5717_p13, %p5711_p8 }
 0x41b   : > { %5721 = shalt.err (!%p5718_p0)
}
 0x41c   : > { %s5770_s16 = smov 128  }
 0x41d   : > { %5585 = dma.vmem_to_hbm [thread:$0]  (%p5839_p5), %s8632_s17, 4096, %s8628_s30, %s8638_s22, %s5770_s16, %s5770_s16, %s5759_s10  }
 0x41e PF: > { %p5591_p1 = scmp.ge.s32.totalorder %s5756_s21, 2  ;;  %s4957_s23 = sand.u32 1, %s5744_s18  }
 0x41f   : > { %s4958_s26 = scalar_lea.sflag [#allocation5], %s4957_s23 }
 0x420   : > { %p5588_p2 = pnand %p5591_p1, %p5843_p6 }
 0x422   : > { %5739 = dma.done.wait (!%p5588_p2), %s4958_s26, 4096  }
 0x423   : > { %5741 = vsyncadd (!%p5588_p2), %s4958_s26, 4294963200  ;;  %p15_p3 = scmp.ge.s32.totalorder %s5826_s24, 4   ;;  %s8754_s18 = smov %s5748_s19 }
 0x424   : > { %s8755_s19 = smov %s5752_s20  ;;  %s8756_s20 = smov %s5837_s27 }
 0x425   : > { %s8757_s21 = smov %s5826_s24  ;;  %17 = sbr.rel (!%p15_p3) target bundleno = 3 (0x3), region = 77 }
 0x42c   :  { %4963 = vsyncpa [#allocation5], 1 }
 0x42d   :  { %4965 = vsyncpa [#allocation5 + $0x1], 1 }

</bundles_post_ra>
